<compile_context>
chip_gen: v7x
topology: tpu7x:2x2x1
jax: 0.10.0
libtpu: 0.0.40
codegen_flags: <defaults>
</compile_context>

<pallas_src>
import math
import functools
from dataclasses import dataclass

import jax
import jax.numpy as jnp
from jax.experimental import pallas as pl
from jax.experimental.pallas import tpu as pltpu

_VMEM_LIMIT = 32 * 1024 * 1024


def _round_up(x, m):
    return (x + m - 1) // m * m


def _cdiv(a, b):
    return (a + b - 1) // b


# ----------------------------- Pallas kernels ------------------------------

def _ln_rows(x, g, b, d_real, eps):
    """LayerNorm over the last dim, assuming columns >= d_real are zero."""
    s1 = jnp.sum(x, axis=-1, keepdims=True)
    s2 = jnp.sum(x * x, axis=-1, keepdims=True)
    mu = s1 / d_real
    var = jnp.maximum(s2 / d_real - mu * mu, 0.0)
    return (x - mu) * jax.lax.rsqrt(var + eps) * g + b


def _conv_bn_glu_pool_kernel(x_ref, w_ref, bc_ref, sc_ref, sh_ref, wg_ref, bg_ref,
                             o_ref, *, F, T, F2):
    """One batch element: 3x3 'same' conv (9-tap shifted accumulate) + BN(eval)
    + GLU (lin(x)*sigmoid(x)) + AvgPool((2,1)) over F."""
    Cin = x_ref.shape[-1]
    Cout = o_ref.shape[-1]
    xp = x_ref[...]                       # (F+2, T+2, Cin), halo-padded
    w_all = w_ref[...]                    # (9, Cin, Cout)
    acc = jnp.zeros((F * T, Cout), jnp.float32)
    for i in range(3):
        for j in range(3):
            tap = xp[i:i + F, j:j + T, :].reshape(F * T, Cin)
            wt = w_all[3 * i + j]
            if Cin == 1:
                acc = acc + tap * wt                                  # VPU broadcast
            else:
                acc = acc + jnp.dot(tap.astype(jnp.bfloat16),
                                    wt.astype(jnp.bfloat16),
                                    preferred_element_type=jnp.float32)
    y = acc + bc_ref[...]
    y = y * sc_ref[...] + sh_ref[...]                                 # BatchNorm(eval)
    lin = jnp.dot(y.astype(jnp.bfloat16), wg_ref[...],
                  preferred_element_type=jnp.float32) + bg_ref[...]
    g = lin * jax.nn.sigmoid(y)                                       # GLU
    g = g.reshape(F, T, Cout)[: 2 * F2].reshape(F2, 2, T, Cout)
    o_ref[...] = 0.5 * (g[:, 0] + g[:, 1])                            # AvgPool (2,1)


def _proj_ln_pe_kernel(x_ref, w_ref, b_ref, g_ref, beta_ref, pe_ref, o_ref,
                       *, d_real, eps):
    # out = LayerNorm(x @ W + b) + PE      (one batch element)
    y = jnp.dot(x_ref[...].astype(jnp.bfloat16), w_ref[...],
                preferred_element_type=jnp.float32) + b_ref[...]
    o_ref[...] = _ln_rows(y, g_ref[...], beta_ref[...], d_real, eps) + pe_ref[...]


def _ln_qkv_kernel(z_ref, g_ref, b_ref, w_ref, wb_ref, q_ref, k_ref, v_ref,
                   *, d_real, eps, hd):
    # q/k/v = LayerNorm(z) @ Wqkv + b  (head-padded lane slabs, scale folded in Wq)
    h = _ln_rows(z_ref[...], g_ref[...], b_ref[...], d_real, eps)
    y = jnp.dot(h.astype(jnp.bfloat16), w_ref[...],
                preferred_element_type=jnp.float32) + wb_ref[...]
    q_ref[...] = y[:, :hd]
    k_ref[...] = y[:, hd:2 * hd]
    v_ref[...] = y[:, 2 * hd:]


def _attn_kernel(q_ref, k_ref, v_ref, o_ref):
    # One (batch, head): blocks are (S, Dh_pad).  Scale already folded into q.
    q = q_ref[...].astype(jnp.bfloat16)
    k = k_ref[...].astype(jnp.bfloat16)
    v = v_ref[...].astype(jnp.bfloat16)
    s = jnp.einsum("qd,kd->qk", q, k, preferred_element_type=jnp.float32)
    m = jnp.max(s, axis=-1, keepdims=True)
    p = jnp.exp(s - m)
    p = p * pl.reciprocal(jnp.sum(p, axis=-1, keepdims=True), approx=True)
    o_ref[...] = jnp.dot(p.astype(jnp.bfloat16), v,
                         preferred_element_type=jnp.float32)


def _oproj_ffn_kernel(o_ref, z_ref, wo_ref, bo_ref, g_ref, b_ref,
                      w1_ref, b1_ref, w2_ref, b2_ref, out_ref, *, d_real, eps):
    # z1 = z + o @ Wo + bo ;  out = z1 + relu(LN(z1) @ W1 + b1) @ W2 + b2
    z1 = z_ref[...] + jnp.dot(o_ref[...].astype(jnp.bfloat16), wo_ref[...],
                              preferred_element_type=jnp.float32) + bo_ref[...]
    h = _ln_rows(z1, g_ref[...], b_ref[...], d_real, eps)
    f = jnp.maximum(jnp.dot(h.astype(jnp.bfloat16), w1_ref[...],
                            preferred_element_type=jnp.float32) + b1_ref[...], 0.0)
    out_ref[...] = z1 + jnp.dot(f.astype(jnp.bfloat16), w2_ref[...],
                                preferred_element_type=jnp.float32) + b2_ref[...]


def _matmul_kernel(x_ref, w_ref, b_ref, o_ref):
    o_ref[...] = jnp.dot(x_ref[...].astype(jnp.bfloat16), w_ref[...],
                         preferred_element_type=jnp.float32) + b_ref[...]


# --------------------------- pallas_call wrappers ---------------------------

def _row_call(kernel, inputs, out_cols, *, tm, out_dtype=jnp.float32):
    """Row(M)-tiled pallas_call. Row-tiled inputs must already have Mp (= k*tm)
    rows (no per-call pad/slice). `out_cols` may be an int or a list (multi-out)."""
    Mp = next(a.shape[0] for a, t in inputs if t)
    assert Mp % tm == 0
    arrs, specs = [], []
    for a, tiled in inputs:
        arrs.append(a)
        if tiled:
            assert a.shape[0] == Mp
            specs.append(pl.BlockSpec((tm, a.shape[1]), lambda i: (i, 0)))
        else:
            specs.append(pl.BlockSpec(a.shape, lambda i: (0, 0)))
    multi = isinstance(out_cols, (list, tuple))
    cols = list(out_cols) if multi else [out_cols]
    dts = list(out_dtype) if isinstance(out_dtype, (list, tuple)) else [out_dtype] * len(cols)
    out_shape = [jax.ShapeDtypeStruct((Mp, c), d) for c, d in zip(cols, dts)]
    out_specs = [pl.BlockSpec((tm, c), lambda i: (i, 0)) for c in cols]
    return pl.pallas_call(
        kernel,
        grid=(Mp // tm,),
        out_shape=out_shape if multi else out_shape[0],
        in_specs=specs,
        out_specs=out_specs if multi else out_specs[0],
        compiler_params=pltpu.CompilerParams(
            dimension_semantics=("parallel",), vmem_limit_bytes=_VMEM_LIMIT),
    )(*arrs)


def mha_attention(q, k, v, *, B, S, H, Dhp, M):
    """q, k, v: (Mp, H*Dhp) f32 (head-padded slabs). Returns o: (Mp, H*Dhp) f32."""
    HD = H * Dhp
    Mp = q.shape[0]
    cp = pltpu.CompilerParams(dimension_semantics=("parallel", "parallel"),
                              vmem_limit_bytes=_VMEM_LIMIT)
    if S % 8 == 0:
        spec = pl.BlockSpec((S, Dhp), lambda b, h: (b, h))
        return pl.pallas_call(
            _attn_kernel, grid=(B, H),
            out_shape=jax.ShapeDtypeStruct((Mp, HD), jnp.float32),
            in_specs=[spec, spec, spec], out_specs=spec,
            compiler_params=cp)(q, k, v)
    # Fallback for ragged S: go through a (B, S, HD) view (extra copies).
    def r(t):
        return t[:M].reshape(B, S, HD)
    spec3 = pl.BlockSpec((None, S, Dhp), lambda b, h: (b, 0, h))
    o = pl.pallas_call(
        _attn_kernel, grid=(B, H),
        out_shape=jax.ShapeDtypeStruct((B, S, HD), jnp.float32),
        in_specs=[spec3, spec3, spec3], out_specs=spec3,
        compiler_params=cp)(r(q), r(k), r(v))
    o = o.reshape(M, HD)
    return jnp.pad(o, ((0, Mp - M), (0, 0))) if Mp != M else o


# ------------------------------- model glue --------------------------------

@dataclass
class CNNTFConfig:
    n_classes: int
    dims: list
    d_tf: int = 192
    n_tf_layers: int = 4
    n_heads: int = 8


def sinusoidal_pe(seq_len, d_model, d_pad):
    pos = jnp.arange(seq_len, dtype=jnp.float32)[:, None]
    div = jnp.exp(jnp.arange(0, d_model, 2, dtype=jnp.float32)
                  * (-math.log(10000.0) / d_model))
    pe = jnp.zeros((seq_len, d_pad), jnp.float32)
    pe = pe.at[:, 0:d_model:2].set(jnp.sin(pos * div))
    pe = pe.at[:, 1:d_model:2].set(jnp.cos(pos * div))
    return pe


def init_params(key, cfg):
    keys = iter(jax.random.split(key, 128))
    p = {}
    dims = [1] + list(cfg.dims)
    blocks = []
    for kblk in range(len(cfg.dims)):
        cin, cout = dims[kblk], dims[kblk + 1]
        blocks.append(dict(
            conv_w=jax.random.normal(next(keys), (cout, cin, 3, 3)) / math.sqrt(cin * 9),
            conv_b=0.01 * jax.random.normal(next(keys), (cout,)),
            bn_gamma=1.0 + 0.1 * jax.random.normal(next(keys), (cout,)),
            bn_beta=0.1 * jax.random.normal(next(keys), (cout,)),
            bn_mean=0.1 * jax.random.normal(next(keys), (cout,)),
            bn_var=1.0 + 0.1 * jax.random.uniform(next(keys), (cout,)),
            glu_w=jax.random.normal(next(keys), (cout, cout)) / math.sqrt(cout),
            glu_b=0.01 * jax.random.normal(next(keys), (cout,)),
        ))
    p["blocks"] = blocks
    D = cfg.d_tf
    p["proj_w"] = jax.random.normal(next(keys), (cfg.dims[-1], D)) / math.sqrt(cfg.dims[-1])
    p["proj_b"] = 0.01 * jax.random.normal(next(keys), (D,))
    p["proj_ln_g"] = jnp.ones((D,), jnp.float32)
    p["proj_ln_b"] = jnp.zeros((D,), jnp.float32)
    layers = []
    for _ in range(cfg.n_tf_layers):
        layers.append(dict(
            ln1_g=jnp.ones((D,)), ln1_b=jnp.zeros((D,)),
            wq=jax.random.normal(next(keys), (D, D)) / math.sqrt(D),
            wk=jax.random.normal(next(keys), (D, D)) / math.sqrt(D),
            wv=jax.random.normal(next(keys), (D, D)) / math.sqrt(D),
            bq=jnp.zeros((D,)), bk=jnp.zeros((D,)), bv=jnp.zeros((D,)),
            wo=jax.random.normal(next(keys), (D, D)) / math.sqrt(D),
            bo=jnp.zeros((D,)),
            ln2_g=jnp.ones((D,)), ln2_b=jnp.zeros((D,)),
            w1=jax.random.normal(next(keys), (D, 4 * D)) / math.sqrt(D),
            b1=jnp.zeros((4 * D,)),
            w2=jax.random.normal(next(keys), (4 * D, D)) / math.sqrt(4 * D),
            b2=jnp.zeros((D,)),
        ))
    p["layers"] = layers
    p["head_w"] = jax.random.normal(next(keys), (D, cfg.n_classes)) / math.sqrt(D)
    p["head_b"] = 0.01 * jax.random.normal(next(keys), (cfg.n_classes,))
    return p


def prepare_params(params, cfg):
    """Pad / fuse / cast weights ONCE: lane-dense padded layouts, fused+scaled QKV
    with head-padded slabs, bf16 MXU operands, fused BN scale/shift."""
    D = cfg.d_tf
    H = cfg.n_heads
    Dh = D // H
    Dp = _round_up(D, 128)
    Dhp = _round_up(Dh, 128)
    HD = H * Dhp
    Hfp = _round_up(4 * D, 128)
    Ncp = _round_up(cfg.n_classes, 128)
    q_scale = 1.0 / math.sqrt(Dh)

    def pad2(a, rows, cols, dtype=jnp.float32):
        out = jnp.zeros((rows, cols), jnp.float32)
        out = out.at[:a.shape[0], :a.shape[1]].set(a.astype(jnp.float32))
        return out.astype(dtype)

    prep = {"blocks": []}
    for blk in params["blocks"]:
        cout, cin = blk["conv_w"].shape[0], blk["conv_w"].shape[1]
        inv_std = 1.0 / jnp.sqrt(blk["bn_var"] + 1e-5)
        scale = blk["bn_gamma"] * inv_std
        shift = blk["bn_beta"] - blk["bn_mean"] * scale
        prep["blocks"].append(dict(
            # tap order i*3+j, each tap is (Cin, Cout)
            w_taps=blk["conv_w"].transpose(2, 3, 1, 0).reshape(9, cin, cout).astype(jnp.float32),
            bc=blk["conv_b"].reshape(1, cout).astype(jnp.float32),
            scale=scale.reshape(1, cout).astype(jnp.float32),
            shift=shift.reshape(1, cout).astype(jnp.float32),
            wg=blk["glu_w"].astype(jnp.bfloat16),
            bg=blk["glu_b"].reshape(1, cout).astype(jnp.float32),
        ))

    C = cfg.dims[-1]
    prep["proj_w"] = pad2(params["proj_w"], C, Dp, jnp.bfloat16)
    prep["proj_b"] = pad2(params["proj_b"].reshape(1, -1), 1, Dp)
    prep["proj_ln_g"] = pad2(params["proj_ln_g"].reshape(1, -1), 1, Dp)
    prep["proj_ln_b"] = pad2(params["proj_ln_b"].reshape(1, -1), 1, Dp)

    prep["layers"] = []
    for lyr in params["layers"]:
        wqkv = jnp.zeros((Dp, 3 * HD), jnp.float32)
        bqkv = jnp.zeros((1, 3 * HD), jnp.float32)
        for h in range(H):
            sl = slice(h * Dh, (h + 1) * Dh)
            wqkv = wqkv.at[:D, h * Dhp:h * Dhp + Dh].set(lyr["wq"][:, sl] * q_scale)
            wqkv = wqkv.at[:D, HD + h * Dhp:HD + h * Dhp + Dh].set(lyr["wk"][:, sl])
            wqkv = wqkv.at[:D, 2 * HD + h * Dhp:2 * HD + h * Dhp + Dh].set(lyr["wv"][:, sl])
            bqkv = bqkv.at[0, h * Dhp:h * Dhp + Dh].set(lyr["bq"][sl] * q_scale)
            bqkv = bqkv.at[0, HD + h * Dhp:HD + h * Dhp + Dh].set(lyr["bk"][sl])
            bqkv = bqkv.at[0, 2 * HD + h * Dhp:2 * HD + h * Dhp + Dh].set(lyr["bv"][sl])
        wo_p = jnp.zeros((HD, Dp), jnp.float32)
        for h in range(H):
            wo_p = wo_p.at[h * Dhp:h * Dhp + Dh, :D].set(lyr["wo"][h * Dh:(h + 1) * Dh, :])
        prep["layers"].append(dict(
            ln1_g=pad2(lyr["ln1_g"].reshape(1, -1), 1, Dp),
            ln1_b=pad2(lyr["ln1_b"].reshape(1, -1), 1, Dp),
            wqkv=wqkv.astype(jnp.bfloat16),
            bqkv=bqkv,
            wo=wo_p.astype(jnp.bfloat16),
            bo=pad2(lyr["bo"].reshape(1, -1), 1, Dp),
            ln2_g=pad2(lyr["ln2_g"].reshape(1, -1), 1, Dp),
            ln2_b=pad2(lyr["ln2_b"].reshape(1, -1), 1, Dp),
            w1=pad2(lyr["w1"], Dp, Hfp, jnp.bfloat16),
            b1=pad2(lyr["b1"].reshape(1, -1), 1, Hfp),
            w2=pad2(lyr["w2"], Hfp, Dp, jnp.bfloat16),
            b2=pad2(lyr["b2"].reshape(1, -1), 1, Dp),
        ))

    prep["head_w"] = pad2(params["head_w"], Dp, Ncp, jnp.bfloat16)
    prep["head_b"] = pad2(params["head_b"].reshape(1, -1), 1, Ncp)
    return prep


def conv_block(h, blk):
    """ConvBlock: Conv2d(3x3,'same') + BatchNorm2d(eval) + GLU + AvgPool2d((2,1)).
    h: (B, F, T, C_in) channels-last.  One fused per-batch Pallas call; the 3x3
    conv is a 9-tap shifted accumulate inside the kernel (no im2col in HBM)."""
    B, F, T, Cin = h.shape
    Cout = blk["w_taps"].shape[-1]
    F2 = F // 2
    xp = jnp.pad(h, ((0, 0), (1, 1), (1, 1), (0, 0)))
    kern = functools.partial(_conv_bn_glu_pool_kernel, F=F, T=T, F2=F2)
    return pl.pallas_call(
        kern,
        grid=(B,),
        out_shape=jax.ShapeDtypeStruct((B, F2, T, Cout), jnp.float32),
        in_specs=[
            pl.BlockSpec((None, F + 2, T + 2, Cin), lambda b: (b, 0, 0, 0)),
            pl.BlockSpec((9, Cin, Cout), lambda b: (0, 0, 0)),
            pl.BlockSpec((1, Cout), lambda b: (0, 0)),
            pl.BlockSpec((1, Cout), lambda b: (0, 0)),
            pl.BlockSpec((1, Cout), lambda b: (0, 0)),
            pl.BlockSpec((Cout, Cout), lambda b: (0, 0)),
            pl.BlockSpec((1, Cout), lambda b: (0, 0)),
        ],
        out_specs=pl.BlockSpec((None, F2, T, Cout), lambda b: (b, 0, 0, 0)),
        compiler_params=pltpu.CompilerParams(
            dimension_semantics=("parallel",), vmem_limit_bytes=_VMEM_LIMIT),
    )(xp, blk["w_taps"], blk["bc"], blk["scale"], blk["shift"], blk["wg"], blk["bg"])


def cnntf_forward(prep, x, cfg):
    """x: (B, F, T) spectrogram (PyTorch input before unsqueeze(1))."""
    B, F, T = x.shape
    h = x[..., None].astype(jnp.float32)                # (B, F, T, 1)
    for blk in prep["blocks"]:
        h = conv_block(h, blk)
    # x.mean(dim=2) over frequency then permute(0, 2, 1) -> (B, T, C)
    # TODO(synk): tiny frequency-mean reduction kept as XLA glue.
    h = h.mean(axis=1)                                   # (B, S, C)
    B, S, C = h.shape
    D = cfg.d_tf
    H = cfg.n_heads
    Dh = D // H
    Dp = _round_up(D, 128)
    Dhp = _round_up(Dh, 128)
    HD = H * Dhp
    M = B * S

    # Row tiling: balanced tiles, >= 2 grid steps when possible (v7x 2 TCs),
    # padded ONCE; all transformer calls run on exactly Mp rows.
    tm_max = 256
    nsteps = max(1, _cdiv(M, tm_max))
    if M >= 16:
        nsteps = max(nsteps, 2)
    tm = _round_up(_cdiv(M, nsteps), 8)
    Mp = nsteps * tm

    # proj Linear + LayerNorm + positional encoding, per-batch grid (PE resident).
    pe = sinusoidal_pe(S, D, Dp)
    z = pl.pallas_call(
        functools.partial(_proj_ln_pe_kernel, d_real=D, eps=1e-5),
        grid=(B,),
        out_shape=jax.ShapeDtypeStruct((B, S, Dp), jnp.float32),
        in_specs=[
            pl.BlockSpec((None, S, C), lambda b: (b, 0, 0)),
            pl.BlockSpec(prep["proj_w"].shape, lambda b: (0, 0)),
            pl.BlockSpec((1, Dp), lambda b: (0, 0)),
            pl.BlockSpec((1, Dp), lambda b: (0, 0)),
            pl.BlockSpec((1, Dp), lambda b: (0, 0)),
            pl.BlockSpec((S, Dp), lambda b: (0, 0)),
        ],
        out_specs=pl.BlockSpec((None, S, Dp), lambda b: (b, 0, 0)),
        compiler_params=pltpu.CompilerParams(
            dimension_semantics=("parallel",), vmem_limit_bytes=_VMEM_LIMIT),
    )(h, prep["proj_w"], prep["proj_b"], prep["proj_ln_g"], prep["proj_ln_b"], pe)
    z = z.reshape(M, Dp)
    if Mp != M:
        z = jnp.pad(z, ((0, Mp - M), (0, 0)))            # padded once; zero rows

    # Transformer encoder (norm_first=True, batch_first=True, eval): 3 calls/layer.
    for lyr in prep["layers"]:
        q, k, v = _row_call(
            functools.partial(_ln_qkv_kernel, d_real=D, eps=1e-5, hd=HD),
            [(z, True), (lyr["ln1_g"], False), (lyr["ln1_b"], False),
             (lyr["wqkv"], False), (lyr["bqkv"], False)],
            [HD, HD, HD], tm=tm)
        o = mha_attention(q, k, v, B=B, S=S, H=H, Dhp=Dhp, M=M)
        z = _row_call(
            functools.partial(_oproj_ffn_kernel, d_real=D, eps=1e-5),
            [(o, True), (z, True), (lyr["wo"], False), (lyr["bo"], False),
             (lyr["ln2_g"], False), (lyr["ln2_b"], False),
             (lyr["w1"], False), (lyr["b1"], False),
             (lyr["w2"], False), (lyr["b2"], False)],
            Dp, tm=tm)

    Ncp = prep["head_w"].shape[1]
    logits = _row_call(
        _matmul_kernel,
        [(z, True), (prep["head_w"], False), (prep["head_b"], False)],
        Ncp, tm=tm)
    return logits[:M, :cfg.n_classes].reshape(B, S, cfg.n_classes)


if __name__ == "__main__":
    cfg = CNNTFConfig(n_classes=5, dims=[8, 16], d_tf=32, n_tf_layers=2, n_heads=4)
    key = jax.random.PRNGKey(0)
    pkey, xkey = jax.random.split(key)
    params = init_params(pkey, cfg)
    prep = prepare_params(params, cfg)
    # (B, freq, time): freq 16 is pooled 16 -> 8 -> 4 by the two (2,1) AvgPools.
    x = jax.random.normal(xkey, (2, 16, 8), jnp.float32)
    fwd = jax.jit(lambda p, xx: cnntf_forward(p, xx, cfg))
    out = jax.block_until_ready(fwd(prep, x))
    assert out.shape == (2, 8, cfg.n_classes), out.shape
    assert bool(jnp.all(jnp.isfinite(out)))
    print("KERNEL_OK")
</pallas_src>

<mosaic_0001>
module attributes {stable_mosaic.version = 11 : i64} {
  func.func @_conv_bn_glu_pool_kernel(%arg0: i32, %arg1: memref<1x18x10x1xf32, #tpu.memory_space<vmem>>, %arg2: memref<9x1x8xf32, #tpu.memory_space<vmem>>, %arg3: memref<1x8xf32, #tpu.memory_space<vmem>>, %arg4: memref<1x8xf32, #tpu.memory_space<vmem>>, %arg5: memref<1x8xf32, #tpu.memory_space<vmem>>, %arg6: memref<8x8xbf16, #tpu.memory_space<vmem>>, %arg7: memref<1x8xf32, #tpu.memory_space<vmem>>, %arg8: memref<1x8x8x8xf32, #tpu.memory_space<vmem>>) attributes {dimension_semantics = [#tpu.dimension_semantics<parallel>], iteration_bounds = array<i64: 2>, scalar_prefetch = 0 : i64, scratch_operands = 0 : i64, tpu.core_type = #tpu.core_type<tc>, window_params = [{transform_indices = @transform_0, window_bounds = array<i64: 1, 18, 10, 1>}, {pipeline_mode = #tpu.pipeline_mode<synchronous>, transform_indices = @transform_1, window_bounds = array<i64: 9, 1, 8>}, {pipeline_mode = #tpu.pipeline_mode<synchronous>, transform_indices = @transform_2, window_bounds = array<i64: 1, 8>}, {pipeline_mode = #tpu.pipeline_mode<synchronous>, transform_indices = @transform_3, window_bounds = array<i64: 1, 8>}, {pipeline_mode = #tpu.pipeline_mode<synchronous>, transform_indices = @transform_4, window_bounds = array<i64: 1, 8>}, {pipeline_mode = #tpu.pipeline_mode<synchronous>, transform_indices = @transform_5, window_bounds = array<i64: 8, 8>}, {pipeline_mode = #tpu.pipeline_mode<synchronous>, transform_indices = @transform_6, window_bounds = array<i64: 1, 8>}, {transform_indices = @transform_7, window_bounds = array<i64: 1, 8, 8, 8>}]} {
    %c0 = arith.constant 0 : index
    %c0_0 = arith.constant 0 : index
    %c0_1 = arith.constant 0 : index
    %c0_2 = arith.constant 0 : index
    %0 = vector.load %arg1[%c0, %c0_0, %c0_1, %c0_2] : memref<1x18x10x1xf32, #tpu.memory_space<vmem>>, vector<1x18x10x1xf32>
    %1 = vector.shape_cast %0 : vector<1x18x10x1xf32> to vector<18x10x1xf32>
    %c0_3 = arith.constant 0 : index
    %c0_4 = arith.constant 0 : index
    %c0_5 = arith.constant 0 : index
    %2 = vector.load %arg2[%c0_3, %c0_4, %c0_5] : memref<9x1x8xf32, #tpu.memory_space<vmem>>, vector<9x1x8xf32>
    %cst = arith.constant 0.000000e+00 : f32
    %3 = vector.broadcast %cst : f32 to vector<128x8xf32>
    %4 = vector.extract_strided_slice %1 {offsets = [0, 0, 0], sizes = [16, 8, 1], strides = [1, 1, 1]} : vector<18x10x1xf32> to vector<16x8x1xf32>
    %5 = vector.shape_cast %4 : vector<16x8x1xf32> to vector<128x1xf32>
    %6 = vector.extract_strided_slice %2 {offsets = [0, 0, 0], sizes = [1, 1, 8], strides = [1, 1, 1]} : vector<9x1x8xf32> to vector<1x1x8xf32>
    %7 = vector.shape_cast %6 : vector<1x1x8xf32> to vector<1x8xf32>
    %8 = vector.broadcast %5 : vector<128x1xf32> to vector<128x8xf32>
    %9 = vector.broadcast %7 : vector<1x8xf32> to vector<128x8xf32>
    %10 = arith.mulf %8, %9 : vector<128x8xf32>
    %11 = arith.addf %3, %10 : vector<128x8xf32>
    %12 = vector.extract_strided_slice %1 {offsets = [0, 1, 0], sizes = [16, 8, 1], strides = [1, 1, 1]} : vector<18x10x1xf32> to vector<16x8x1xf32>
    %13 = vector.shape_cast %12 : vector<16x8x1xf32> to vector<128x1xf32>
    %14 = vector.extract_strided_slice %2 {offsets = [1, 0, 0], sizes = [1, 1, 8], strides = [1, 1, 1]} : vector<9x1x8xf32> to vector<1x1x8xf32>
    %15 = vector.shape_cast %14 : vector<1x1x8xf32> to vector<1x8xf32>
    %16 = vector.broadcast %13 : vector<128x1xf32> to vector<128x8xf32>
    %17 = vector.broadcast %15 : vector<1x8xf32> to vector<128x8xf32>
    %18 = arith.mulf %16, %17 : vector<128x8xf32>
    %19 = arith.addf %11, %18 : vector<128x8xf32>
    %20 = vector.extract_strided_slice %1 {offsets = [0, 2, 0], sizes = [16, 8, 1], strides = [1, 1, 1]} : vector<18x10x1xf32> to vector<16x8x1xf32>
    %21 = vector.shape_cast %20 : vector<16x8x1xf32> to vector<128x1xf32>
    %22 = vector.extract_strided_slice %2 {offsets = [2, 0, 0], sizes = [1, 1, 8], strides = [1, 1, 1]} : vector<9x1x8xf32> to vector<1x1x8xf32>
    %23 = vector.shape_cast %22 : vector<1x1x8xf32> to vector<1x8xf32>
    %24 = vector.broadcast %21 : vector<128x1xf32> to vector<128x8xf32>
    %25 = vector.broadcast %23 : vector<1x8xf32> to vector<128x8xf32>
    %26 = arith.mulf %24, %25 : vector<128x8xf32>
    %27 = arith.addf %19, %26 : vector<128x8xf32>
    %28 = vector.extract_strided_slice %1 {offsets = [1, 0, 0], sizes = [16, 8, 1], strides = [1, 1, 1]} : vector<18x10x1xf32> to vector<16x8x1xf32>
    %29 = vector.shape_cast %28 : vector<16x8x1xf32> to vector<128x1xf32>
    %30 = vector.extract_strided_slice %2 {offsets = [3, 0, 0], sizes = [1, 1, 8], strides = [1, 1, 1]} : vector<9x1x8xf32> to vector<1x1x8xf32>
    %31 = vector.shape_cast %30 : vector<1x1x8xf32> to vector<1x8xf32>
    %32 = vector.broadcast %29 : vector<128x1xf32> to vector<128x8xf32>
    %33 = vector.broadcast %31 : vector<1x8xf32> to vector<128x8xf32>
    %34 = arith.mulf %32, %33 : vector<128x8xf32>
    %35 = arith.addf %27, %34 : vector<128x8xf32>
    %36 = vector.extract_strided_slice %1 {offsets = [1, 1, 0], sizes = [16, 8, 1], strides = [1, 1, 1]} : vector<18x10x1xf32> to vector<16x8x1xf32>
    %37 = vector.shape_cast %36 : vector<16x8x1xf32> to vector<128x1xf32>
    %38 = vector.extract_strided_slice %2 {offsets = [4, 0, 0], sizes = [1, 1, 8], strides = [1, 1, 1]} : vector<9x1x8xf32> to vector<1x1x8xf32>
    %39 = vector.shape_cast %38 : vector<1x1x8xf32> to vector<1x8xf32>
    %40 = vector.broadcast %37 : vector<128x1xf32> to vector<128x8xf32>
    %41 = vector.broadcast %39 : vector<1x8xf32> to vector<128x8xf32>
    %42 = arith.mulf %40, %41 : vector<128x8xf32>
    %43 = arith.addf %35, %42 : vector<128x8xf32>
    %44 = vector.extract_strided_slice %1 {offsets = [1, 2, 0], sizes = [16, 8, 1], strides = [1, 1, 1]} : vector<18x10x1xf32> to vector<16x8x1xf32>
    %45 = vector.shape_cast %44 : vector<16x8x1xf32> to vector<128x1xf32>
    %46 = vector.extract_strided_slice %2 {offsets = [5, 0, 0], sizes = [1, 1, 8], strides = [1, 1, 1]} : vector<9x1x8xf32> to vector<1x1x8xf32>
    %47 = vector.shape_cast %46 : vector<1x1x8xf32> to vector<1x8xf32>
    %48 = vector.broadcast %45 : vector<128x1xf32> to vector<128x8xf32>
    %49 = vector.broadcast %47 : vector<1x8xf32> to vector<128x8xf32>
    %50 = arith.mulf %48, %49 : vector<128x8xf32>
    %51 = arith.addf %43, %50 : vector<128x8xf32>
    %52 = vector.extract_strided_slice %1 {offsets = [2, 0, 0], sizes = [16, 8, 1], strides = [1, 1, 1]} : vector<18x10x1xf32> to vector<16x8x1xf32>
    %53 = vector.shape_cast %52 : vector<16x8x1xf32> to vector<128x1xf32>
    %54 = vector.extract_strided_slice %2 {offsets = [6, 0, 0], sizes = [1, 1, 8], strides = [1, 1, 1]} : vector<9x1x8xf32> to vector<1x1x8xf32>
    %55 = vector.shape_cast %54 : vector<1x1x8xf32> to vector<1x8xf32>
    %56 = vector.broadcast %53 : vector<128x1xf32> to vector<128x8xf32>
    %57 = vector.broadcast %55 : vector<1x8xf32> to vector<128x8xf32>
    %58 = arith.mulf %56, %57 : vector<128x8xf32>
    %59 = arith.addf %51, %58 : vector<128x8xf32>
    %60 = vector.extract_strided_slice %1 {offsets = [2, 1, 0], sizes = [16, 8, 1], strides = [1, 1, 1]} : vector<18x10x1xf32> to vector<16x8x1xf32>
    %61 = vector.shape_cast %60 : vector<16x8x1xf32> to vector<128x1xf32>
    %62 = vector.extract_strided_slice %2 {offsets = [7, 0, 0], sizes = [1, 1, 8], strides = [1, 1, 1]} : vector<9x1x8xf32> to vector<1x1x8xf32>
    %63 = vector.shape_cast %62 : vector<1x1x8xf32> to vector<1x8xf32>
    %64 = vector.broadcast %61 : vector<128x1xf32> to vector<128x8xf32>
    %65 = vector.broadcast %63 : vector<1x8xf32> to vector<128x8xf32>
    %66 = arith.mulf %64, %65 : vector<128x8xf32>
    %67 = arith.addf %59, %66 : vector<128x8xf32>
    %68 = vector.extract_strided_slice %1 {offsets = [2, 2, 0], sizes = [16, 8, 1], strides = [1, 1, 1]} : vector<18x10x1xf32> to vector<16x8x1xf32>
    %69 = vector.shape_cast %68 : vector<16x8x1xf32> to vector<128x1xf32>
    %70 = vector.extract_strided_slice %2 {offsets = [8, 0, 0], sizes = [1, 1, 8], strides = [1, 1, 1]} : vector<9x1x8xf32> to vector<1x1x8xf32>
    %71 = vector.shape_cast %70 : vector<1x1x8xf32> to vector<1x8xf32>
    %72 = vector.broadcast %69 : vector<128x1xf32> to vector<128x8xf32>
    %73 = vector.broadcast %71 : vector<1x8xf32> to vector<128x8xf32>
    %74 = arith.mulf %72, %73 : vector<128x8xf32>
    %75 = arith.addf %67, %74 : vector<128x8xf32>
    %c0_6 = arith.constant 0 : index
    %c0_7 = arith.constant 0 : index
    %76 = vector.load %arg3[%c0_6, %c0_7] : memref<1x8xf32, #tpu.memory_space<vmem>>, vector<1x8xf32>
    %77 = vector.broadcast %76 : vector<1x8xf32> to vector<128x8xf32>
    %78 = arith.addf %75, %77 : vector<128x8xf32>
    %c0_8 = arith.constant 0 : index
    %c0_9 = arith.constant 0 : index
    %79 = vector.load %arg4[%c0_8, %c0_9] : memref<1x8xf32, #tpu.memory_space<vmem>>, vector<1x8xf32>
    %80 = vector.broadcast %79 : vector<1x8xf32> to vector<128x8xf32>
    %81 = arith.mulf %78, %80 : vector<128x8xf32>
    %c0_10 = arith.constant 0 : index
    %c0_11 = arith.constant 0 : index
    %82 = vector.load %arg5[%c0_10, %c0_11] : memref<1x8xf32, #tpu.memory_space<vmem>>, vector<1x8xf32>
    %83 = vector.broadcast %82 : vector<1x8xf32> to vector<128x8xf32>
    %84 = arith.addf %81, %83 : vector<128x8xf32>
    %85 = arith.truncf %84 : vector<128x8xf32> to vector<128x8xbf16>
    %c0_12 = arith.constant 0 : index
    %c0_13 = arith.constant 0 : index
    %86 = vector.load %arg6[%c0_12, %c0_13] : memref<8x8xbf16, #tpu.memory_space<vmem>>, vector<8x8xbf16>
    %cst_14 = arith.constant dense<0.000000e+00> : vector<128x8xf32>
    %87 = tpu.matmul %85, %86, %cst_14 {dimension_numbers = #tpu.dot_dimension_numbers<[1], [0], [0], [1], [0, 0, 1, 1], [], []>} : vector<128x8xbf16>, vector<8x8xbf16>, vector<128x8xf32> -> vector<128x8xf32>
    %c0_15 = arith.constant 0 : index
    %c0_16 = arith.constant 0 : index
    %88 = vector.load %arg7[%c0_15, %c0_16] : memref<1x8xf32, #tpu.memory_space<vmem>>, vector<1x8xf32>
    %89 = vector.broadcast %88 : vector<1x8xf32> to vector<128x8xf32>
    %90 = arith.addf %87, %89 : vector<128x8xf32>
    %91 = arith.negf %84 : vector<128x8xf32>
    %92 = math.exp %91 : vector<128x8xf32>
    %cst_17 = arith.constant 1.000000e+00 : f32
    %93 = vector.broadcast %cst_17 : f32 to vector<128x8xf32>
    %94 = arith.addf %93, %92 : vector<128x8xf32>
    %95 = arith.divf %93, %94 : vector<128x8xf32>
    %96 = arith.mulf %90, %95 : vector<128x8xf32>
    %97 = vector.shape_cast %96 : vector<128x8xf32> to vector<16x8x8xf32>
    %98 = vector.shape_cast %97 : vector<16x8x8xf32> to vector<8x2x8x8xf32>
    %99 = vector.extract_strided_slice %98 {offsets = [0, 0, 0, 0], sizes = [8, 1, 8, 8], strides = [1, 1, 1, 1]} : vector<8x2x8x8xf32> to vector<8x1x8x8xf32>
    %100 = vector.shape_cast %99 : vector<8x1x8x8xf32> to vector<8x8x8xf32>
    %101 = vector.extract_strided_slice %98 {offsets = [0, 1, 0, 0], sizes = [8, 1, 8, 8], strides = [1, 1, 1, 1]} : vector<8x2x8x8xf32> to vector<8x1x8x8xf32>
    %102 = vector.shape_cast %101 : vector<8x1x8x8xf32> to vector<8x8x8xf32>
    %103 = arith.addf %100, %102 : vector<8x8x8xf32>
    %cst_18 = arith.constant 5.000000e-01 : f32
    %104 = vector.broadcast %cst_18 : f32 to vector<8x8x8xf32>
    %105 = arith.mulf %104, %103 : vector<8x8x8xf32>
    %c0_19 = arith.constant 0 : index
    %c0_20 = arith.constant 0 : index
    %c0_21 = arith.constant 0 : index
    %c0_22 = arith.constant 0 : index
    %106 = vector.load %arg8[%c0_19, %c0_20, %c0_21, %c0_22] : memref<1x8x8x8xf32, #tpu.memory_space<vmem>>, vector<1x8x8x8xf32>
    %107 = vector.shape_cast %106 : vector<1x8x8x8xf32> to vector<8x8x8xf32>
    %108 = vector.shape_cast %105 : vector<8x8x8xf32> to vector<1x8x8x8xf32>
    tpu.vector_store %arg8[%c0_19, %c0_20, %c0_21, %c0_22], %108 {strides = array<i32>} : memref<1x8x8x8xf32, #tpu.memory_space<vmem>>, vector<1x8x8x8xf32>,
    return
  }
  func.func @transform_0(%arg0: i32) -> (i32, i32, i32, i32) {
    %c0_i32 = arith.constant 0 : i32
    %c0_i32_0 = arith.constant 0 : i32
    %c0_i32_1 = arith.constant 0 : i32
    %c0_i32_2 = arith.constant 0 : i32
    return %arg0, %c0_i32, %c0_i32_0, %c0_i32_1 : i32, i32, i32, i32
  }
  func.func @transform_1(%arg0: i32) -> (i32, i32, i32) {
    %c0_i32 = arith.constant 0 : i32
    %c0_i32_0 = arith.constant 0 : i32
    %c0_i32_1 = arith.constant 0 : i32
    %c0_i32_2 = arith.constant 0 : i32
    return %c0_i32, %c0_i32_0, %c0_i32_1 : i32, i32, i32
  }
  func.func @transform_2(%arg0: i32) -> (i32, i32) {
    %c0_i32 = arith.constant 0 : i32
    %c0_i32_0 = arith.constant 0 : i32
    %c0_i32_1 = arith.constant 0 : i32
    return %c0_i32, %c0_i32_0 : i32, i32
  }
  func.func @transform_3(%arg0: i32) -> (i32, i32) {
    %c0_i32 = arith.constant 0 : i32
    %c0_i32_0 = arith.constant 0 : i32
    %c0_i32_1 = arith.constant 0 : i32
    return %c0_i32, %c0_i32_0 : i32, i32
  }
  func.func @transform_4(%arg0: i32) -> (i32, i32) {
    %c0_i32 = arith.constant 0 : i32
    %c0_i32_0 = arith.constant 0 : i32
    %c0_i32_1 = arith.constant 0 : i32
    return %c0_i32, %c0_i32_0 : i32, i32
  }
  func.func @transform_5(%arg0: i32) -> (i32, i32) {
    %c0_i32 = arith.constant 0 : i32
    %c0_i32_0 = arith.constant 0 : i32
    %c0_i32_1 = arith.constant 0 : i32
    return %c0_i32, %c0_i32_0 : i32, i32
  }
  func.func @transform_6(%arg0: i32) -> (i32, i32) {
    %c0_i32 = arith.constant 0 : i32
    %c0_i32_0 = arith.constant 0 : i32
    %c0_i32_1 = arith.constant 0 : i32
    return %c0_i32, %c0_i32_0 : i32, i32
  }
  func.func @transform_7(%arg0: i32) -> (i32, i32, i32, i32) {
    %c0_i32 = arith.constant 0 : i32
    %c0_i32_0 = arith.constant 0 : i32
    %c0_i32_1 = arith.constant 0 : i32
    %c0_i32_2 = arith.constant 0 : i32
    return %arg0, %c0_i32, %c0_i32_0, %c0_i32_1 : i32, i32, i32, i32
  }
}

module attributes {stable_mosaic.version = 11 : i64} {
  func.func @_conv_bn_glu_pool_kernel(%arg0: i32, %arg1: memref<1x10x10x8xf32, #tpu.memory_space<vmem>>, %arg2: memref<9x8x16xf32, #tpu.memory_space<vmem>>, %arg3: memref<1x16xf32, #tpu.memory_space<vmem>>, %arg4: memref<1x16xf32, #tpu.memory_space<vmem>>, %arg5: memref<1x16xf32, #tpu.memory_space<vmem>>, %arg6: memref<16x16xbf16, #tpu.memory_space<vmem>>, %arg7: memref<1x16xf32, #tpu.memory_space<vmem>>, %arg8: memref<1x4x8x16xf32, #tpu.memory_space<vmem>>) attributes {dimension_semantics = [#tpu.dimension_semantics<parallel>], iteration_bounds = array<i64: 2>, scalar_prefetch = 0 : i64, scratch_operands = 0 : i64, tpu.core_type = #tpu.core_type<tc>, window_params = [{transform_indices = @transform_0, window_bounds = array<i64: 1, 10, 10, 8>}, {pipeline_mode = #tpu.pipeline_mode<synchronous>, transform_indices = @transform_1, window_bounds = array<i64: 9, 8, 16>}, {pipeline_mode = #tpu.pipeline_mode<synchronous>, transform_indices = @transform_2, window_bounds = array<i64: 1, 16>}, {pipeline_mode = #tpu.pipeline_mode<synchronous>, transform_indices = @transform_3, window_bounds = array<i64: 1, 16>}, {pipeline_mode = #tpu.pipeline_mode<synchronous>, transform_indices = @transform_4, window_bounds = array<i64: 1, 16>}, {pipeline_mode = #tpu.pipeline_mode<synchronous>, transform_indices = @transform_5, window_bounds = array<i64: 16, 16>}, {pipeline_mode = #tpu.pipeline_mode<synchronous>, transform_indices = @transform_6, window_bounds = array<i64: 1, 16>}, {transform_indices = @transform_7, window_bounds = array<i64: 1, 4, 8, 16>}]} {
    %c0 = arith.constant 0 : index
    %c0_0 = arith.constant 0 : index
    %c0_1 = arith.constant 0 : index
    %c0_2 = arith.constant 0 : index
    %0 = vector.load %arg1[%c0, %c0_0, %c0_1, %c0_2] : memref<1x10x10x8xf32, #tpu.memory_space<vmem>>, vector<1x10x10x8xf32>
    %1 = vector.shape_cast %0 : vector<1x10x10x8xf32> to vector<10x10x8xf32>
    %c0_3 = arith.constant 0 : index
    %c0_4 = arith.constant 0 : index
    %c0_5 = arith.constant 0 : index
    %2 = vector.load %arg2[%c0_3, %c0_4, %c0_5] : memref<9x8x16xf32, #tpu.memory_space<vmem>>, vector<9x8x16xf32>
    %cst = arith.constant 0.000000e+00 : f32
    %3 = vector.broadcast %cst : f32 to vector<64x16xf32>
    %4 = vector.extract_strided_slice %1 {offsets = [0, 0, 0], sizes = [8, 8, 8], strides = [1, 1, 1]} : vector<10x10x8xf32> to vector<8x8x8xf32>
    %5 = vector.shape_cast %4 : vector<8x8x8xf32> to vector<64x8xf32>
    %6 = vector.extract_strided_slice %2 {offsets = [0, 0, 0], sizes = [1, 8, 16], strides = [1, 1, 1]} : vector<9x8x16xf32> to vector<1x8x16xf32>
    %7 = vector.shape_cast %6 : vector<1x8x16xf32> to vector<8x16xf32>
    %8 = arith.truncf %5 : vector<64x8xf32> to vector<64x8xbf16>
    %9 = arith.truncf %7 : vector<8x16xf32> to vector<8x16xbf16>
    %cst_6 = arith.constant dense<0.000000e+00> : vector<64x16xf32>
    %10 = tpu.matmul %8, %9, %cst_6 {dimension_numbers = #tpu.dot_dimension_numbers<[1], [0], [0], [1], [0, 0, 1, 1], [], []>} : vector<64x8xbf16>, vector<8x16xbf16>, vector<64x16xf32> -> vector<64x16xf32>
    %11 = arith.addf %3, %10 : vector<64x16xf32>
    %12 = vector.extract_strided_slice %1 {offsets = [0, 1, 0], sizes = [8, 8, 8], strides = [1, 1, 1]} : vector<10x10x8xf32> to vector<8x8x8xf32>
    %13 = vector.shape_cast %12 : vector<8x8x8xf32> to vector<64x8xf32>
    %14 = vector.extract_strided_slice %2 {offsets = [1, 0, 0], sizes = [1, 8, 16], strides = [1, 1, 1]} : vector<9x8x16xf32> to vector<1x8x16xf32>
    %15 = vector.shape_cast %14 : vector<1x8x16xf32> to vector<8x16xf32>
    %16 = arith.truncf %13 : vector<64x8xf32> to vector<64x8xbf16>
    %17 = arith.truncf %15 : vector<8x16xf32> to vector<8x16xbf16>
    %cst_7 = arith.constant dense<0.000000e+00> : vector<64x16xf32>
    %18 = tpu.matmul %16, %17, %cst_7 {dimension_numbers = #tpu.dot_dimension_numbers<[1], [0], [0], [1], [0, 0, 1, 1], [], []>} : vector<64x8xbf16>, vector<8x16xbf16>, vector<64x16xf32> -> vector<64x16xf32>
    %19 = arith.addf %11, %18 : vector<64x16xf32>
    %20 = vector.extract_strided_slice %1 {offsets = [0, 2, 0], sizes = [8, 8, 8], strides = [1, 1, 1]} : vector<10x10x8xf32> to vector<8x8x8xf32>
    %21 = vector.shape_cast %20 : vector<8x8x8xf32> to vector<64x8xf32>
    %22 = vector.extract_strided_slice %2 {offsets = [2, 0, 0], sizes = [1, 8, 16], strides = [1, 1, 1]} : vector<9x8x16xf32> to vector<1x8x16xf32>
    %23 = vector.shape_cast %22 : vector<1x8x16xf32> to vector<8x16xf32>
    %24 = arith.truncf %21 : vector<64x8xf32> to vector<64x8xbf16>
    %25 = arith.truncf %23 : vector<8x16xf32> to vector<8x16xbf16>
    %cst_8 = arith.constant dense<0.000000e+00> : vector<64x16xf32>
    %26 = tpu.matmul %24, %25, %cst_8 {dimension_numbers = #tpu.dot_dimension_numbers<[1], [0], [0], [1], [0, 0, 1, 1], [], []>} : vector<64x8xbf16>, vector<8x16xbf16>, vector<64x16xf32> -> vector<64x16xf32>
    %27 = arith.addf %19, %26 : vector<64x16xf32>
    %28 = vector.extract_strided_slice %1 {offsets = [1, 0, 0], sizes = [8, 8, 8], strides = [1, 1, 1]} : vector<10x10x8xf32> to vector<8x8x8xf32>
    %29 = vector.shape_cast %28 : vector<8x8x8xf32> to vector<64x8xf32>
    %30 = vector.extract_strided_slice %2 {offsets = [3, 0, 0], sizes = [1, 8, 16], strides = [1, 1, 1]} : vector<9x8x16xf32> to vector<1x8x16xf32>
    %31 = vector.shape_cast %30 : vector<1x8x16xf32> to vector<8x16xf32>
    %32 = arith.truncf %29 : vector<64x8xf32> to vector<64x8xbf16>
    %33 = arith.truncf %31 : vector<8x16xf32> to vector<8x16xbf16>
    %cst_9 = arith.constant dense<0.000000e+00> : vector<64x16xf32>
    %34 = tpu.matmul %32, %33, %cst_9 {dimension_numbers = #tpu.dot_dimension_numbers<[1], [0], [0], [1], [0, 0, 1, 1], [], []>} : vector<64x8xbf16>, vector<8x16xbf16>, vector<64x16xf32> -> vector<64x16xf32>
    %35 = arith.addf %27, %34 : vector<64x16xf32>
    %36 = vector.extract_strided_slice %1 {offsets = [1, 1, 0], sizes = [8, 8, 8], strides = [1, 1, 1]} : vector<10x10x8xf32> to vector<8x8x8xf32>
    %37 = vector.shape_cast %36 : vector<8x8x8xf32> to vector<64x8xf32>
    %38 = vector.extract_strided_slice %2 {offsets = [4, 0, 0], sizes = [1, 8, 16], strides = [1, 1, 1]} : vector<9x8x16xf32> to vector<1x8x16xf32>
    %39 = vector.shape_cast %38 : vector<1x8x16xf32> to vector<8x16xf32>
    %40 = arith.truncf %37 : vector<64x8xf32> to vector<64x8xbf16>
    %41 = arith.truncf %39 : vector<8x16xf32> to vector<8x16xbf16>
    %cst_10 = arith.constant dense<0.000000e+00> : vector<64x16xf32>
    %42 = tpu.matmul %40, %41, %cst_10 {dimension_numbers = #tpu.dot_dimension_numbers<[1], [0], [0], [1], [0, 0, 1, 1], [], []>} : vector<64x8xbf16>, vector<8x16xbf16>, vector<64x16xf32> -> vector<64x16xf32>
    %43 = arith.addf %35, %42 : vector<64x16xf32>
    %44 = vector.extract_strided_slice %1 {offsets = [1, 2, 0], sizes = [8, 8, 8], strides = [1, 1, 1]} : vector<10x10x8xf32> to vector<8x8x8xf32>
    %45 = vector.shape_cast %44 : vector<8x8x8xf32> to vector<64x8xf32>
    %46 = vector.extract_strided_slice %2 {offsets = [5, 0, 0], sizes = [1, 8, 16], strides = [1, 1, 1]} : vector<9x8x16xf32> to vector<1x8x16xf32>
    %47 = vector.shape_cast %46 : vector<1x8x16xf32> to vector<8x16xf32>
    %48 = arith.truncf %45 : vector<64x8xf32> to vector<64x8xbf16>
    %49 = arith.truncf %47 : vector<8x16xf32> to vector<8x16xbf16>
    %cst_11 = arith.constant dense<0.000000e+00> : vector<64x16xf32>
    %50 = tpu.matmul %48, %49, %cst_11 {dimension_numbers = #tpu.dot_dimension_numbers<[1], [0], [0], [1], [0, 0, 1, 1], [], []>} : vector<64x8xbf16>, vector<8x16xbf16>, vector<64x16xf32> -> vector<64x16xf32>
    %51 = arith.addf %43, %50 : vector<64x16xf32>
    %52 = vector.extract_strided_slice %1 {offsets = [2, 0, 0], sizes = [8, 8, 8], strides = [1, 1, 1]} : vector<10x10x8xf32> to vector<8x8x8xf32>
    %53 = vector.shape_cast %52 : vector<8x8x8xf32> to vector<64x8xf32>
    %54 = vector.extract_strided_slice %2 {offsets = [6, 0, 0], sizes = [1, 8, 16], strides = [1, 1, 1]} : vector<9x8x16xf32> to vector<1x8x16xf32>
    %55 = vector.shape_cast %54 : vector<1x8x16xf32> to vector<8x16xf32>
    %56 = arith.truncf %53 : vector<64x8xf32> to vector<64x8xbf16>
    %57 = arith.truncf %55 : vector<8x16xf32> to vector<8x16xbf16>
    %cst_12 = arith.constant dense<0.000000e+00> : vector<64x16xf32>
    %58 = tpu.matmul %56, %57, %cst_12 {dimension_numbers = #tpu.dot_dimension_numbers<[1], [0], [0], [1], [0, 0, 1, 1], [], []>} : vector<64x8xbf16>, vector<8x16xbf16>, vector<64x16xf32> -> vector<64x16xf32>
    %59 = arith.addf %51, %58 : vector<64x16xf32>
    %60 = vector.extract_strided_slice %1 {offsets = [2, 1, 0], sizes = [8, 8, 8], strides = [1, 1, 1]} : vector<10x10x8xf32> to vector<8x8x8xf32>
    %61 = vector.shape_cast %60 : vector<8x8x8xf32> to vector<64x8xf32>
    %62 = vector.extract_strided_slice %2 {offsets = [7, 0, 0], sizes = [1, 8, 16], strides = [1, 1, 1]} : vector<9x8x16xf32> to vector<1x8x16xf32>
    %63 = vector.shape_cast %62 : vector<1x8x16xf32> to vector<8x16xf32>
    %64 = arith.truncf %61 : vector<64x8xf32> to vector<64x8xbf16>
    %65 = arith.truncf %63 : vector<8x16xf32> to vector<8x16xbf16>
    %cst_13 = arith.constant dense<0.000000e+00> : vector<64x16xf32>
    %66 = tpu.matmul %64, %65, %cst_13 {dimension_numbers = #tpu.dot_dimension_numbers<[1], [0], [0], [1], [0, 0, 1, 1], [], []>} : vector<64x8xbf16>, vector<8x16xbf16>, vector<64x16xf32> -> vector<64x16xf32>
    %67 = arith.addf %59, %66 : vector<64x16xf32>
    %68 = vector.extract_strided_slice %1 {offsets = [2, 2, 0], sizes = [8, 8, 8], strides = [1, 1, 1]} : vector<10x10x8xf32> to vector<8x8x8xf32>
    %69 = vector.shape_cast %68 : vector<8x8x8xf32> to vector<64x8xf32>
    %70 = vector.extract_strided_slice %2 {offsets = [8, 0, 0], sizes = [1, 8, 16], strides = [1, 1, 1]} : vector<9x8x16xf32> to vector<1x8x16xf32>
    %71 = vector.shape_cast %70 : vector<1x8x16xf32> to vector<8x16xf32>
    %72 = arith.truncf %69 : vector<64x8xf32> to vector<64x8xbf16>
    %73 = arith.truncf %71 : vector<8x16xf32> to vector<8x16xbf16>
    %cst_14 = arith.constant dense<0.000000e+00> : vector<64x16xf32>
    %74 = tpu.matmul %72, %73, %cst_14 {dimension_numbers = #tpu.dot_dimension_numbers<[1], [0], [0], [1], [0, 0, 1, 1], [], []>} : vector<64x8xbf16>, vector<8x16xbf16>, vector<64x16xf32> -> vector<64x16xf32>
    %75 = arith.addf %67, %74 : vector<64x16xf32>
    %c0_15 = arith.constant 0 : index
    %c0_16 = arith.constant 0 : index
    %76 = vector.load %arg3[%c0_15, %c0_16] : memref<1x16xf32, #tpu.memory_space<vmem>>, vector<1x16xf32>
    %77 = vector.broadcast %76 : vector<1x16xf32> to vector<64x16xf32>
    %78 = arith.addf %75, %77 : vector<64x16xf32>
    %c0_17 = arith.constant 0 : index
    %c0_18 = arith.constant 0 : index
    %79 = vector.load %arg4[%c0_17, %c0_18] : memref<1x16xf32, #tpu.memory_space<vmem>>, vector<1x16xf32>
    %80 = vector.broadcast %79 : vector<1x16xf32> to vector<64x16xf32>
    %81 = arith.mulf %78, %80 : vector<64x16xf32>
    %c0_19 = arith.constant 0 : index
    %c0_20 = arith.constant 0 : index
    %82 = vector.load %arg5[%c0_19, %c0_20] : memref<1x16xf32, #tpu.memory_space<vmem>>, vector<1x16xf32>
    %83 = vector.broadcast %82 : vector<1x16xf32> to vector<64x16xf32>
    %84 = arith.addf %81, %83 : vector<64x16xf32>
    %85 = arith.truncf %84 : vector<64x16xf32> to vector<64x16xbf16>
    %c0_21 = arith.constant 0 : index
    %c0_22 = arith.constant 0 : index
    %86 = vector.load %arg6[%c0_21, %c0_22] : memref<16x16xbf16, #tpu.memory_space<vmem>>, vector<16x16xbf16>
    %cst_23 = arith.constant dense<0.000000e+00> : vector<64x16xf32>
    %87 = tpu.matmul %85, %86, %cst_23 {dimension_numbers = #tpu.dot_dimension_numbers<[1], [0], [0], [1], [0, 0, 1, 1], [], []>} : vector<64x16xbf16>, vector<16x16xbf16>, vector<64x16xf32> -> vector<64x16xf32>
    %c0_24 = arith.constant 0 : index
    %c0_25 = arith.constant 0 : index
    %88 = vector.load %arg7[%c0_24, %c0_25] : memref<1x16xf32, #tpu.memory_space<vmem>>, vector<1x16xf32>
    %89 = vector.broadcast %88 : vector<1x16xf32> to vector<64x16xf32>
    %90 = arith.addf %87, %89 : vector<64x16xf32>
    %91 = arith.negf %84 : vector<64x16xf32>
    %92 = math.exp %91 : vector<64x16xf32>
    %cst_26 = arith.constant 1.000000e+00 : f32
    %93 = vector.broadcast %cst_26 : f32 to vector<64x16xf32>
    %94 = arith.addf %93, %92 : vector<64x16xf32>
    %95 = arith.divf %93, %94 : vector<64x16xf32>
    %96 = arith.mulf %90, %95 : vector<64x16xf32>
    %97 = vector.shape_cast %96 : vector<64x16xf32> to vector<8x8x16xf32>
    %98 = vector.shape_cast %97 : vector<8x8x16xf32> to vector<4x2x8x16xf32>
    %99 = vector.extract_strided_slice %98 {offsets = [0, 0, 0, 0], sizes = [4, 1, 8, 16], strides = [1, 1, 1, 1]} : vector<4x2x8x16xf32> to vector<4x1x8x16xf32>
    %100 = vector.shape_cast %99 : vector<4x1x8x16xf32> to vector<4x8x16xf32>
    %101 = vector.extract_strided_slice %98 {offsets = [0, 1, 0, 0], sizes = [4, 1, 8, 16], strides = [1, 1, 1, 1]} : vector<4x2x8x16xf32> to vector<4x1x8x16xf32>
    %102 = vector.shape_cast %101 : vector<4x1x8x16xf32> to vector<4x8x16xf32>
    %103 = arith.addf %100, %102 : vector<4x8x16xf32>
    %cst_27 = arith.constant 5.000000e-01 : f32
    %104 = vector.broadcast %cst_27 : f32 to vector<4x8x16xf32>
    %105 = arith.mulf %104, %103 : vector<4x8x16xf32>
    %c0_28 = arith.constant 0 : index
    %c0_29 = arith.constant 0 : index
    %c0_30 = arith.constant 0 : index
    %c0_31 = arith.constant 0 : index
    %106 = vector.load %arg8[%c0_28, %c0_29, %c0_30, %c0_31] : memref<1x4x8x16xf32, #tpu.memory_space<vmem>>, vector<1x4x8x16xf32>
    %107 = vector.shape_cast %106 : vector<1x4x8x16xf32> to vector<4x8x16xf32>
    %108 = vector.shape_cast %105 : vector<4x8x16xf32> to vector<1x4x8x16xf32>
    tpu.vector_store %arg8[%c0_28, %c0_29, %c0_30, %c0_31], %108 {strides = array<i32>} : memref<1x4x8x16xf32, #tpu.memory_space<vmem>>, vector<1x4x8x16xf32>,
    return
  }
  func.func @transform_0(%arg0: i32) -> (i32, i32, i32, i32) {
    %c0_i32 = arith.constant 0 : i32
    %c0_i32_0 = arith.constant 0 : i32
    %c0_i32_1 = arith.constant 0 : i32
    %c0_i32_2 = arith.constant 0 : i32
    return %arg0, %c0_i32, %c0_i32_0, %c0_i32_1 : i32, i32, i32, i32
  }
  func.func @transform_1(%arg0: i32) -> (i32, i32, i32) {
    %c0_i32 = arith.constant 0 : i32
    %c0_i32_0 = arith.constant 0 : i32
    %c0_i32_1 = arith.constant 0 : i32
    %c0_i32_2 = arith.constant 0 : i32
    return %c0_i32, %c0_i32_0, %c0_i32_1 : i32, i32, i32
  }
  func.func @transform_2(%arg0: i32) -> (i32, i32) {
    %c0_i32 = arith.constant 0 : i32
    %c0_i32_0 = arith.constant 0 : i32
    %c0_i32_1 = arith.constant 0 : i32
    return %c0_i32, %c0_i32_0 : i32, i32
  }
  func.func @transform_3(%arg0: i32) -> (i32, i32) {
    %c0_i32 = arith.constant 0 : i32
    %c0_i32_0 = arith.constant 0 : i32
    %c0_i32_1 = arith.constant 0 : i32
    return %c0_i32, %c0_i32_0 : i32, i32
  }
  func.func @transform_4(%arg0: i32) -> (i32, i32) {
    %c0_i32 = arith.constant 0 : i32
    %c0_i32_0 = arith.constant 0 : i32
    %c0_i32_1 = arith.constant 0 : i32
    return %c0_i32, %c0_i32_0 : i32, i32
  }
  func.func @transform_5(%arg0: i32) -> (i32, i32) {
    %c0_i32 = arith.constant 0 : i32
    %c0_i32_0 = arith.constant 0 : i32
    %c0_i32_1 = arith.constant 0 : i32
    return %c0_i32, %c0_i32_0 : i32, i32
  }
  func.func @transform_6(%arg0: i32) -> (i32, i32) {
    %c0_i32 = arith.constant 0 : i32
    %c0_i32_0 = arith.constant 0 : i32
    %c0_i32_1 = arith.constant 0 : i32
    return %c0_i32, %c0_i32_0 : i32, i32
  }
  func.func @transform_7(%arg0: i32) -> (i32, i32, i32, i32) {
    %c0_i32 = arith.constant 0 : i32
    %c0_i32_0 = arith.constant 0 : i32
    %c0_i32_1 = arith.constant 0 : i32
    %c0_i32_2 = arith.constant 0 : i32
    return %arg0, %c0_i32, %c0_i32_0, %c0_i32_1 : i32, i32, i32, i32
  }
}

module attributes {stable_mosaic.version = 11 : i64} {
  func.func @_proj_ln_pe_kernel(%arg0: i32, %arg1: memref<1x8x16xf32, #tpu.memory_space<vmem>>, %arg2: memref<16x128xbf16, #tpu.memory_space<vmem>>, %arg3: memref<1x128xf32, #tpu.memory_space<vmem>>, %arg4: memref<1x128xf32, #tpu.memory_space<vmem>>, %arg5: memref<1x128xf32, #tpu.memory_space<vmem>>, %arg6: memref<8x128xf32, #tpu.memory_space<vmem>>, %arg7: memref<1x8x128xf32, #tpu.memory_space<vmem>>) attributes {dimension_semantics = [#tpu.dimension_semantics<parallel>], iteration_bounds = array<i64: 2>, scalar_prefetch = 0 : i64, scratch_operands = 0 : i64, tpu.core_type = #tpu.core_type<tc>, window_params = [{transform_indices = @transform_0, window_bounds = array<i64: 1, 8, 16>}, {pipeline_mode = #tpu.pipeline_mode<synchronous>, transform_indices = @transform_1, window_bounds = array<i64: 16, 128>}, {pipeline_mode = #tpu.pipeline_mode<synchronous>, transform_indices = @transform_2, window_bounds = array<i64: 1, 128>}, {pipeline_mode = #tpu.pipeline_mode<synchronous>, transform_indices = @transform_3, window_bounds = array<i64: 1, 128>}, {pipeline_mode = #tpu.pipeline_mode<synchronous>, transform_indices = @transform_4, window_bounds = array<i64: 1, 128>}, {pipeline_mode = #tpu.pipeline_mode<synchronous>, transform_indices = @transform_5, window_bounds = array<i64: 8, 128>}, {transform_indices = @transform_6, window_bounds = array<i64: 1, 8, 128>}]} {
    %c0 = arith.constant 0 : index
    %c0_0 = arith.constant 0 : index
    %c0_1 = arith.constant 0 : index
    %0 = vector.load %arg1[%c0, %c0_0, %c0_1] : memref<1x8x16xf32, #tpu.memory_space<vmem>>, vector<1x8x16xf32>
    %1 = vector.shape_cast %0 : vector<1x8x16xf32> to vector<8x16xf32>
    %2 = arith.truncf %1 : vector<8x16xf32> to vector<8x16xbf16>
    %c0_2 = arith.constant 0 : index
    %c0_3 = arith.constant 0 : index
    %3 = vector.load %arg2[%c0_2, %c0_3] : memref<16x128xbf16, #tpu.memory_space<vmem>>, vector<16x128xbf16>
    %cst = arith.constant dense<0.000000e+00> : vector<8x128xf32>
    %4 = tpu.matmul %2, %3, %cst {dimension_numbers = #tpu.dot_dimension_numbers<[1], [0], [0], [1], [0, 0, 1, 1], [], []>} : vector<8x16xbf16>, vector<16x128xbf16>, vector<8x128xf32> -> vector<8x128xf32>
    %c0_4 = arith.constant 0 : index
    %c0_5 = arith.constant 0 : index
    %5 = vector.load %arg3[%c0_4, %c0_5] : memref<1x128xf32, #tpu.memory_space<vmem>>, vector<1x128xf32>
    %6 = vector.broadcast %5 : vector<1x128xf32> to vector<8x128xf32>
    %7 = arith.addf %4, %6 : vector<8x128xf32>
    %c0_6 = arith.constant 0 : index
    %c0_7 = arith.constant 0 : index
    %8 = vector.load %arg4[%c0_6, %c0_7] : memref<1x128xf32, #tpu.memory_space<vmem>>, vector<1x128xf32>
    %c0_8 = arith.constant 0 : index
    %c0_9 = arith.constant 0 : index
    %9 = vector.load %arg5[%c0_8, %c0_9] : memref<1x128xf32, #tpu.memory_space<vmem>>, vector<1x128xf32>
    %cst_10 = arith.constant dense<0.000000e+00> : vector<8xf32>
    %10 = vector.multi_reduction <add>, %7, %cst_10 [1] : vector<8x128xf32> to vector<8xf32>
    %11 = vector.shape_cast %10 : vector<8xf32> to vector<8x1xf32>
    %12 = arith.mulf %7, %7 : vector<8x128xf32>
    %cst_11 = arith.constant dense<0.000000e+00> : vector<8xf32>
    %13 = vector.multi_reduction <add>, %12, %cst_11 [1] : vector<8x128xf32> to vector<8xf32>
    %14 = vector.shape_cast %13 : vector<8xf32> to vector<8x1xf32>
    %cst_12 = arith.constant 3.200000e+01 : f32
    %15 = vector.broadcast %cst_12 : f32 to vector<8x1xf32>
    %16 = arith.divf %11, %15 : vector<8x1xf32>
    %cst_13 = arith.constant 3.200000e+01 : f32
    %17 = vector.broadcast %cst_13 : f32 to vector<8x1xf32>
    %18 = arith.divf %14, %17 : vector<8x1xf32>
    %19 = arith.mulf %16, %16 : vector<8x1xf32>
    %20 = arith.subf %18, %19 : vector<8x1xf32>
    %cst_14 = arith.constant 0.000000e+00 : f32
    %21 = vector.broadcast %cst_14 : f32 to vector<8x1xf32>
    %22 = arith.maximumf %20, %21 : vector<8x1xf32>
    %23 = vector.broadcast %16 : vector<8x1xf32> to vector<8x128xf32>
    %24 = arith.subf %7, %23 : vector<8x128xf32>
    %cst_15 = arith.constant 9.99999974E-6 : f32
    %25 = vector.broadcast %cst_15 : f32 to vector<8x1xf32>
    %26 = arith.addf %22, %25 : vector<8x1xf32>
    %27 = math.rsqrt %26 : vector<8x1xf32>
    %28 = vector.broadcast %27 : vector<8x1xf32> to vector<8x128xf32>
    %29 = arith.mulf %24, %28 : vector<8x128xf32>
    %30 = vector.broadcast %8 : vector<1x128xf32> to vector<8x128xf32>
    %31 = arith.mulf %29, %30 : vector<8x128xf32>
    %32 = vector.broadcast %9 : vector<1x128xf32> to vector<8x128xf32>
    %33 = arith.addf %31, %32 : vector<8x128xf32>
    %c0_16 = arith.constant 0 : index
    %c0_17 = arith.constant 0 : index
    %34 = vector.load %arg6[%c0_16, %c0_17] : memref<8x128xf32, #tpu.memory_space<vmem>>, vector<8x128xf32>
    %35 = arith.addf %33, %34 : vector<8x128xf32>
    %c0_18 = arith.constant 0 : index
    %c0_19 = arith.constant 0 : index
    %c0_20 = arith.constant 0 : index
    %36 = vector.load %arg7[%c0_18, %c0_19, %c0_20] : memref<1x8x128xf32, #tpu.memory_space<vmem>>, vector<1x8x128xf32>
    %37 = vector.shape_cast %36 : vector<1x8x128xf32> to vector<8x128xf32>
    %38 = vector.shape_cast %35 : vector<8x128xf32> to vector<1x8x128xf32>
    tpu.vector_store %arg7[%c0_18, %c0_19, %c0_20], %38 {strides = array<i32>} : memref<1x8x128xf32, #tpu.memory_space<vmem>>, vector<1x8x128xf32>,
    return
  }
  func.func @transform_0(%arg0: i32) -> (i32, i32, i32) {
    %c0_i32 = arith.constant 0 : i32
    %c0_i32_0 = arith.constant 0 : i32
    %c0_i32_1 = arith.constant 0 : i32
    return %arg0, %c0_i32, %c0_i32_0 : i32, i32, i32
  }
  func.func @transform_1(%arg0: i32) -> (i32, i32) {
    %c0_i32 = arith.constant 0 : i32
    %c0_i32_0 = arith.constant 0 : i32
    %c0_i32_1 = arith.constant 0 : i32
    return %c0_i32, %c0_i32_0 : i32, i32
  }
  func.func @transform_2(%arg0: i32) -> (i32, i32) {
    %c0_i32 = arith.constant 0 : i32
    %c0_i32_0 = arith.constant 0 : i32
    %c0_i32_1 = arith.constant 0 : i32
    return %c0_i32, %c0_i32_0 : i32, i32
  }
  func.func @transform_3(%arg0: i32) -> (i32, i32) {
    %c0_i32 = arith.constant 0 : i32
    %c0_i32_0 = arith.constant 0 : i32
    %c0_i32_1 = arith.constant 0 : i32
    return %c0_i32, %c0_i32_0 : i32, i32
  }
  func.func @transform_4(%arg0: i32) -> (i32, i32) {
    %c0_i32 = arith.constant 0 : i32
    %c0_i32_0 = arith.constant 0 : i32
    %c0_i32_1 = arith.constant 0 : i32
    return %c0_i32, %c0_i32_0 : i32, i32
  }
  func.func @transform_5(%arg0: i32) -> (i32, i32) {
    %c0_i32 = arith.constant 0 : i32
    %c0_i32_0 = arith.constant 0 : i32
    %c0_i32_1 = arith.constant 0 : i32
    return %c0_i32, %c0_i32_0 : i32, i32
  }
  func.func @transform_6(%arg0: i32) -> (i32, i32, i32) {
    %c0_i32 = arith.constant 0 : i32
    %c0_i32_0 = arith.constant 0 : i32
    %c0_i32_1 = arith.constant 0 : i32
    return %arg0, %c0_i32, %c0_i32_0 : i32, i32, i32
  }
}

module attributes {stable_mosaic.version = 11 : i64} {
  func.func @_ln_qkv_kernel(%arg0: i32, %arg1: memref<8x128xf32, #tpu.memory_space<vmem>>, %arg2: memref<1x128xf32, #tpu.memory_space<vmem>>, %arg3: memref<1x128xf32, #tpu.memory_space<vmem>>, %arg4: memref<128x1536xbf16, #tpu.memory_space<vmem>>, %arg5: memref<1x1536xf32, #tpu.memory_space<vmem>>, %arg6: memref<8x512xf32, #tpu.memory_space<vmem>>, %arg7: memref<8x512xf32, #tpu.memory_space<vmem>>, %arg8: memref<8x512xf32, #tpu.memory_space<vmem>>) attributes {dimension_semantics = [#tpu.dimension_semantics<parallel>], iteration_bounds = array<i64: 2>, scalar_prefetch = 0 : i64, scratch_operands = 0 : i64, tpu.core_type = #tpu.core_type<tc>, window_params = [{transform_indices = @transform_0, window_bounds = array<i64: 8, 128>}, {pipeline_mode = #tpu.pipeline_mode<synchronous>, transform_indices = @transform_1, window_bounds = array<i64: 1, 128>}, {pipeline_mode = #tpu.pipeline_mode<synchronous>, transform_indices = @transform_2, window_bounds = array<i64: 1, 128>}, {pipeline_mode = #tpu.pipeline_mode<synchronous>, transform_indices = @transform_3, window_bounds = array<i64: 128, 1536>}, {pipeline_mode = #tpu.pipeline_mode<synchronous>, transform_indices = @transform_4, window_bounds = array<i64: 1, 1536>}, {transform_indices = @transform_5, window_bounds = array<i64: 8, 512>}, {transform_indices = @transform_6, window_bounds = array<i64: 8, 512>}, {transform_indices = @transform_7, window_bounds = array<i64: 8, 512>}]} {
    %c0 = arith.constant 0 : index
    %c0_0 = arith.constant 0 : index
    %0 = vector.load %arg1[%c0, %c0_0] : memref<8x128xf32, #tpu.memory_space<vmem>>, vector<8x128xf32>
    %c0_1 = arith.constant 0 : index
    %c0_2 = arith.constant 0 : index
    %1 = vector.load %arg2[%c0_1, %c0_2] : memref<1x128xf32, #tpu.memory_space<vmem>>, vector<1x128xf32>
    %c0_3 = arith.constant 0 : index
    %c0_4 = arith.constant 0 : index
    %2 = vector.load %arg3[%c0_3, %c0_4] : memref<1x128xf32, #tpu.memory_space<vmem>>, vector<1x128xf32>
    %cst = arith.constant dense<0.000000e+00> : vector<8xf32>
    %3 = vector.multi_reduction <add>, %0, %cst [1] : vector<8x128xf32> to vector<8xf32>
    %4 = vector.shape_cast %3 : vector<8xf32> to vector<8x1xf32>
    %5 = arith.mulf %0, %0 : vector<8x128xf32>
    %cst_5 = arith.constant dense<0.000000e+00> : vector<8xf32>
    %6 = vector.multi_reduction <add>, %5, %cst_5 [1] : vector<8x128xf32> to vector<8xf32>
    %7 = vector.shape_cast %6 : vector<8xf32> to vector<8x1xf32>
    %cst_6 = arith.constant 3.200000e+01 : f32
    %8 = vector.broadcast %cst_6 : f32 to vector<8x1xf32>
    %9 = arith.divf %4, %8 : vector<8x1xf32>
    %cst_7 = arith.constant 3.200000e+01 : f32
    %10 = vector.broadcast %cst_7 : f32 to vector<8x1xf32>
    %11 = arith.divf %7, %10 : vector<8x1xf32>
    %12 = arith.mulf %9, %9 : vector<8x1xf32>
    %13 = arith.subf %11, %12 : vector<8x1xf32>
    %cst_8 = arith.constant 0.000000e+00 : f32
    %14 = vector.broadcast %cst_8 : f32 to vector<8x1xf32>
    %15 = arith.maximumf %13, %14 : vector<8x1xf32>
    %16 = vector.broadcast %9 : vector<8x1xf32> to vector<8x128xf32>
    %17 = arith.subf %0, %16 : vector<8x128xf32>
    %cst_9 = arith.constant 9.99999974E-6 : f32
    %18 = vector.broadcast %cst_9 : f32 to vector<8x1xf32>
    %19 = arith.addf %15, %18 : vector<8x1xf32>
    %20 = math.rsqrt %19 : vector<8x1xf32>
    %21 = vector.broadcast %20 : vector<8x1xf32> to vector<8x128xf32>
    %22 = arith.mulf %17, %21 : vector<8x128xf32>
    %23 = vector.broadcast %1 : vector<1x128xf32> to vector<8x128xf32>
    %24 = arith.mulf %22, %23 : vector<8x128xf32>
    %25 = vector.broadcast %2 : vector<1x128xf32> to vector<8x128xf32>
    %26 = arith.addf %24, %25 : vector<8x128xf32>
    %27 = arith.truncf %26 : vector<8x128xf32> to vector<8x128xbf16>
    %c0_10 = arith.constant 0 : index
    %c0_11 = arith.constant 0 : index
    %28 = vector.load %arg4[%c0_10, %c0_11] : memref<128x1536xbf16, #tpu.memory_space<vmem>>, vector<128x1536xbf16>
    %cst_12 = arith.constant dense<0.000000e+00> : vector<8x1536xf32>
    %29 = tpu.matmul %27, %28, %cst_12 {dimension_numbers = #tpu.dot_dimension_numbers<[1], [0], [0], [1], [0, 0, 1, 1], [], []>} : vector<8x128xbf16>, vector<128x1536xbf16>, vector<8x1536xf32> -> vector<8x1536xf32>
    %c0_13 = arith.constant 0 : index
    %c0_14 = arith.constant 0 : index
    %30 = vector.load %arg5[%c0_13, %c0_14] : memref<1x1536xf32, #tpu.memory_space<vmem>>, vector<1x1536xf32>
    %31 = vector.broadcast %30 : vector<1x1536xf32> to vector<8x1536xf32>
    %32 = arith.addf %29, %31 : vector<8x1536xf32>
    %33 = vector.extract_strided_slice %32 {offsets = [0, 0], sizes = [8, 512], strides = [1, 1]} : vector<8x1536xf32> to vector<8x512xf32>
    %c0_15 = arith.constant 0 : index
    %c0_16 = arith.constant 0 : index
    %34 = vector.load %arg6[%c0_15, %c0_16] : memref<8x512xf32, #tpu.memory_space<vmem>>, vector<8x512xf32>
    tpu.vector_store %arg6[%c0_15, %c0_16], %33 {strides = array<i32>} : memref<8x512xf32, #tpu.memory_space<vmem>>, vector<8x512xf32>,
    %35 = vector.extract_strided_slice %32 {offsets = [0, 512], sizes = [8, 512], strides = [1, 1]} : vector<8x1536xf32> to vector<8x512xf32>
    %c0_17 = arith.constant 0 : index
    %c0_18 = arith.constant 0 : index
    %36 = vector.load %arg7[%c0_17, %c0_18] : memref<8x512xf32, #tpu.memory_space<vmem>>, vector<8x512xf32>
    tpu.vector_store %arg7[%c0_17, %c0_18], %35 {strides = array<i32>} : memref<8x512xf32, #tpu.memory_space<vmem>>, vector<8x512xf32>,
    %37 = vector.extract_strided_slice %32 {offsets = [0, 1024], sizes = [8, 512], strides = [1, 1]} : vector<8x1536xf32> to vector<8x512xf32>
    %c0_19 = arith.constant 0 : index
    %c0_20 = arith.constant 0 : index
    %38 = vector.load %arg8[%c0_19, %c0_20] : memref<8x512xf32, #tpu.memory_space<vmem>>, vector<8x512xf32>
    tpu.vector_store %arg8[%c0_19, %c0_20], %37 {strides = array<i32>} : memref<8x512xf32, #tpu.memory_space<vmem>>, vector<8x512xf32>,
    return
  }
  func.func @transform_0(%arg0: i32) -> (i32, i32) {
    %c0_i32 = arith.constant 0 : i32
    %c0_i32_0 = arith.constant 0 : i32
    return %arg0, %c0_i32 : i32, i32
  }
  func.func @transform_1(%arg0: i32) -> (i32, i32) {
    %c0_i32 = arith.constant 0 : i32
    %c0_i32_0 = arith.constant 0 : i32
    %c0_i32_1 = arith.constant 0 : i32
    return %c0_i32, %c0_i32_0 : i32, i32
  }
  func.func @transform_2(%arg0: i32) -> (i32, i32) {
    %c0_i32 = arith.constant 0 : i32
    %c0_i32_0 = arith.constant 0 : i32
    %c0_i32_1 = arith.constant 0 : i32
    return %c0_i32, %c0_i32_0 : i32, i32
  }
  func.func @transform_3(%arg0: i32) -> (i32, i32) {
    %c0_i32 = arith.constant 0 : i32
    %c0_i32_0 = arith.constant 0 : i32
    %c0_i32_1 = arith.constant 0 : i32
    return %c0_i32, %c0_i32_0 : i32, i32
  }
  func.func @transform_4(%arg0: i32) -> (i32, i32) {
    %c0_i32 = arith.constant 0 : i32
    %c0_i32_0 = arith.constant 0 : i32
    %c0_i32_1 = arith.constant 0 : i32
    return %c0_i32, %c0_i32_0 : i32, i32
  }
  func.func @transform_5(%arg0: i32) -> (i32, i32) {
    %c0_i32 = arith.constant 0 : i32
    %c0_i32_0 = arith.constant 0 : i32
    return %arg0, %c0_i32 : i32, i32
  }
  func.func @transform_6(%arg0: i32) -> (i32, i32) {
    %c0_i32 = arith.constant 0 : i32
    %c0_i32_0 = arith.constant 0 : i32
    return %arg0, %c0_i32 : i32, i32
  }
  func.func @transform_7(%arg0: i32) -> (i32, i32) {
    %c0_i32 = arith.constant 0 : i32
    %c0_i32_0 = arith.constant 0 : i32
    return %arg0, %c0_i32 : i32, i32
  }
}

module attributes {stable_mosaic.version = 11 : i64} {
  func.func @_attn_kernel(%arg0: i32, %arg1: i32, %arg2: memref<8x128xf32, #tpu.memory_space<vmem>>, %arg3: memref<8x128xf32, #tpu.memory_space<vmem>>, %arg4: memref<8x128xf32, #tpu.memory_space<vmem>>, %arg5: memref<8x128xf32, #tpu.memory_space<vmem>>) attributes {dimension_semantics = [#tpu.dimension_semantics<parallel>, #tpu.dimension_semantics<parallel>], iteration_bounds = array<i64: 2, 4>, scalar_prefetch = 0 : i64, scratch_operands = 0 : i64, tpu.core_type = #tpu.core_type<tc>, window_params = [{transform_indices = @transform_0, window_bounds = array<i64: 8, 128>}, {transform_indices = @transform_1, window_bounds = array<i64: 8, 128>}, {transform_indices = @transform_2, window_bounds = array<i64: 8, 128>}, {transform_indices = @transform_3, window_bounds = array<i64: 8, 128>}]} {
    %c0 = arith.constant 0 : index
    %c0_0 = arith.constant 0 : index
    %0 = vector.load %arg2[%c0, %c0_0] : memref<8x128xf32, #tpu.memory_space<vmem>>, vector<8x128xf32>
    %1 = arith.truncf %0 : vector<8x128xf32> to vector<8x128xbf16>
    %c0_1 = arith.constant 0 : index
    %c0_2 = arith.constant 0 : index
    %2 = vector.load %arg3[%c0_1, %c0_2] : memref<8x128xf32, #tpu.memory_space<vmem>>, vector<8x128xf32>
    %3 = arith.truncf %2 : vector<8x128xf32> to vector<8x128xbf16>
    %c0_3 = arith.constant 0 : index
    %c0_4 = arith.constant 0 : index
    %4 = vector.load %arg4[%c0_3, %c0_4] : memref<8x128xf32, #tpu.memory_space<vmem>>, vector<8x128xf32>
    %5 = arith.truncf %4 : vector<8x128xf32> to vector<8x128xbf16>
    "tpu.trace_start"() <{level = 10 : i32, message = "qd,kd->qk"}> : () -> ()
    %cst = arith.constant dense<0.000000e+00> : vector<8x8xf32>
    %6 = tpu.matmul %1, %3, %cst {dimension_numbers = #tpu.dot_dimension_numbers<[1], [1], [0], [0], [0, 0, 1, 0], [], []>} : vector<8x128xbf16>, vector<8x128xbf16>, vector<8x8xf32> -> vector<8x8xf32>
    "tpu.trace_stop"() : () -> ()
    %cst_5 = arith.constant dense<0xFF800000> : vector<8xf32>
    %7 = vector.multi_reduction <maximumf>, %6, %cst_5 [1] : vector<8x8xf32> to vector<8xf32>
    %8 = vector.shape_cast %7 : vector<8xf32> to vector<8x1xf32>
    %9 = vector.broadcast %8 : vector<8x1xf32> to vector<8x8xf32>
    %10 = arith.subf %6, %9 : vector<8x8xf32>
    %11 = math.exp %10 : vector<8x8xf32>
    %cst_6 = arith.constant dense<0.000000e+00> : vector<8xf32>
    %12 = vector.multi_reduction <add>, %11, %cst_6 [1] : vector<8x8xf32> to vector<8xf32>
    %13 = vector.shape_cast %12 : vector<8xf32> to vector<8x1xf32>
    %14 = tpu.reciprocal %13 {approx = true} : vector<8x1xf32> -> vector<8x1xf32>
    %15 = vector.broadcast %14 : vector<8x1xf32> to vector<8x8xf32>
    %16 = arith.mulf %11, %15 : vector<8x8xf32>
    %17 = arith.truncf %16 : vector<8x8xf32> to vector<8x8xbf16>
    %cst_7 = arith.constant dense<0.000000e+00> : vector<8x128xf32>
    %18 = tpu.matmul %17, %5, %cst_7 {dimension_numbers = #tpu.dot_dimension_numbers<[1], [0], [0], [1], [0, 0, 1, 1], [], []>} : vector<8x8xbf16>, vector<8x128xbf16>, vector<8x128xf32> -> vector<8x128xf32>
    %c0_8 = arith.constant 0 : index
    %c0_9 = arith.constant 0 : index
    %19 = vector.load %arg5[%c0_8, %c0_9] : memref<8x128xf32, #tpu.memory_space<vmem>>, vector<8x128xf32>
    tpu.vector_store %arg5[%c0_8, %c0_9], %18 {strides = array<i32>} : memref<8x128xf32, #tpu.memory_space<vmem>>, vector<8x128xf32>,
    return
  }
  func.func @transform_0(%arg0: i32, %arg1: i32) -> (i32, i32) {
    %c0_i32 = arith.constant 0 : i32
    return %arg0, %arg1 : i32, i32
  }
  func.func @transform_1(%arg0: i32, %arg1: i32) -> (i32, i32) {
    %c0_i32 = arith.constant 0 : i32
    return %arg0, %arg1 : i32, i32
  }
  func.func @transform_2(%arg0: i32, %arg1: i32) -> (i32, i32) {
    %c0_i32 = arith.constant 0 : i32
    return %arg0, %arg1 : i32, i32
  }
  func.func @transform_3(%arg0: i32, %arg1: i32) -> (i32, i32) {
    %c0_i32 = arith.constant 0 : i32
    return %arg0, %arg1 : i32, i32
  }
}

module attributes {stable_mosaic.version = 11 : i64} {
  func.func @_oproj_ffn_kernel(%arg0: i32, %arg1: memref<8x512xf32, #tpu.memory_space<vmem>>, %arg2: memref<8x128xf32, #tpu.memory_space<vmem>>, %arg3: memref<512x128xbf16, #tpu.memory_space<vmem>>, %arg4: memref<1x128xf32, #tpu.memory_space<vmem>>, %arg5: memref<1x128xf32, #tpu.memory_space<vmem>>, %arg6: memref<1x128xf32, #tpu.memory_space<vmem>>, %arg7: memref<128x128xbf16, #tpu.memory_space<vmem>>, %arg8: memref<1x128xf32, #tpu.memory_space<vmem>>, %arg9: memref<128x128xbf16, #tpu.memory_space<vmem>>, %arg10: memref<1x128xf32, #tpu.memory_space<vmem>>, %arg11: memref<8x128xf32, #tpu.memory_space<vmem>>) attributes {dimension_semantics = [#tpu.dimension_semantics<parallel>], iteration_bounds = array<i64: 2>, scalar_prefetch = 0 : i64, scratch_operands = 0 : i64, tpu.core_type = #tpu.core_type<tc>, window_params = [{transform_indices = @transform_0, window_bounds = array<i64: 8, 512>}, {transform_indices = @transform_1, window_bounds = array<i64: 8, 128>}, {pipeline_mode = #tpu.pipeline_mode<synchronous>, transform_indices = @transform_2, window_bounds = array<i64: 512, 128>}, {pipeline_mode = #tpu.pipeline_mode<synchronous>, transform_indices = @transform_3, window_bounds = array<i64: 1, 128>}, {pipeline_mode = #tpu.pipeline_mode<synchronous>, transform_indices = @transform_4, window_bounds = array<i64: 1, 128>}, {pipeline_mode = #tpu.pipeline_mode<synchronous>, transform_indices = @transform_5, window_bounds = array<i64: 1, 128>}, {pipeline_mode = #tpu.pipeline_mode<synchronous>, transform_indices = @transform_6, window_bounds = array<i64: 128, 128>}, {pipeline_mode = #tpu.pipeline_mode<synchronous>, transform_indices = @transform_7, window_bounds = array<i64: 1, 128>}, {pipeline_mode = #tpu.pipeline_mode<synchronous>, transform_indices = @transform_8, window_bounds = array<i64: 128, 128>}, {pipeline_mode = #tpu.pipeline_mode<synchronous>, transform_indices = @transform_9, window_bounds = array<i64: 1, 128>}, {transform_indices = @transform_10, window_bounds = array<i64: 8, 128>}]} {
    %c0 = arith.constant 0 : index
    %c0_0 = arith.constant 0 : index
    %0 = vector.load %arg2[%c0, %c0_0] : memref<8x128xf32, #tpu.memory_space<vmem>>, vector<8x128xf32>
    %c0_1 = arith.constant 0 : index
    %c0_2 = arith.constant 0 : index
    %1 = vector.load %arg1[%c0_1, %c0_2] : memref<8x512xf32, #tpu.memory_space<vmem>>, vector<8x512xf32>
    %2 = arith.truncf %1 : vector<8x512xf32> to vector<8x512xbf16>
    %c0_3 = arith.constant 0 : index
    %c0_4 = arith.constant 0 : index
    %3 = vector.load %arg3[%c0_3, %c0_4] : memref<512x128xbf16, #tpu.memory_space<vmem>>, vector<512x128xbf16>
    %cst = arith.constant dense<0.000000e+00> : vector<8x128xf32>
    %4 = tpu.matmul %2, %3, %cst {dimension_numbers = #tpu.dot_dimension_numbers<[1], [0], [0], [1], [0, 0, 1, 1], [], []>} : vector<8x512xbf16>, vector<512x128xbf16>, vector<8x128xf32> -> vector<8x128xf32>
    %5 = arith.addf %0, %4 : vector<8x128xf32>
    %c0_5 = arith.constant 0 : index
    %c0_6 = arith.constant 0 : index
    %6 = vector.load %arg4[%c0_5, %c0_6] : memref<1x128xf32, #tpu.memory_space<vmem>>, vector<1x128xf32>
    %7 = vector.broadcast %6 : vector<1x128xf32> to vector<8x128xf32>
    %8 = arith.addf %5, %7 : vector<8x128xf32>
    %c0_7 = arith.constant 0 : index
    %c0_8 = arith.constant 0 : index
    %9 = vector.load %arg5[%c0_7, %c0_8] : memref<1x128xf32, #tpu.memory_space<vmem>>, vector<1x128xf32>
    %c0_9 = arith.constant 0 : index
    %c0_10 = arith.constant 0 : index
    %10 = vector.load %arg6[%c0_9, %c0_10] : memref<1x128xf32, #tpu.memory_space<vmem>>, vector<1x128xf32>
    %cst_11 = arith.constant dense<0.000000e+00> : vector<8xf32>
    %11 = vector.multi_reduction <add>, %8, %cst_11 [1] : vector<8x128xf32> to vector<8xf32>
    %12 = vector.shape_cast %11 : vector<8xf32> to vector<8x1xf32>
    %13 = arith.mulf %8, %8 : vector<8x128xf32>
    %cst_12 = arith.constant dense<0.000000e+00> : vector<8xf32>
    %14 = vector.multi_reduction <add>, %13, %cst_12 [1] : vector<8x128xf32> to vector<8xf32>
    %15 = vector.shape_cast %14 : vector<8xf32> to vector<8x1xf32>
    %cst_13 = arith.constant 3.200000e+01 : f32
    %16 = vector.broadcast %cst_13 : f32 to vector<8x1xf32>
    %17 = arith.divf %12, %16 : vector<8x1xf32>
    %cst_14 = arith.constant 3.200000e+01 : f32
    %18 = vector.broadcast %cst_14 : f32 to vector<8x1xf32>
    %19 = arith.divf %15, %18 : vector<8x1xf32>
    %20 = arith.mulf %17, %17 : vector<8x1xf32>
    %21 = arith.subf %19, %20 : vector<8x1xf32>
    %cst_15 = arith.constant 0.000000e+00 : f32
    %22 = vector.broadcast %cst_15 : f32 to vector<8x1xf32>
    %23 = arith.maximumf %21, %22 : vector<8x1xf32>
    %24 = vector.broadcast %17 : vector<8x1xf32> to vector<8x128xf32>
    %25 = arith.subf %8, %24 : vector<8x128xf32>
    %cst_16 = arith.constant 9.99999974E-6 : f32
    %26 = vector.broadcast %cst_16 : f32 to vector<8x1xf32>
    %27 = arith.addf %23, %26 : vector<8x1xf32>
    %28 = math.rsqrt %27 : vector<8x1xf32>
    %29 = vector.broadcast %28 : vector<8x1xf32> to vector<8x128xf32>
    %30 = arith.mulf %25, %29 : vector<8x128xf32>
    %31 = vector.broadcast %9 : vector<1x128xf32> to vector<8x128xf32>
    %32 = arith.mulf %30, %31 : vector<8x128xf32>
    %33 = vector.broadcast %10 : vector<1x128xf32> to vector<8x128xf32>
    %34 = arith.addf %32, %33 : vector<8x128xf32>
    %35 = arith.truncf %34 : vector<8x128xf32> to vector<8x128xbf16>
    %c0_17 = arith.constant 0 : index
    %c0_18 = arith.constant 0 : index
    %36 = vector.load %arg7[%c0_17, %c0_18] : memref<128x128xbf16, #tpu.memory_space<vmem>>, vector<128x128xbf16>
    %cst_19 = arith.constant dense<0.000000e+00> : vector<8x128xf32>
    %37 = tpu.matmul %35, %36, %cst_19 {dimension_numbers = #tpu.dot_dimension_numbers<[1], [0], [0], [1], [0, 0, 1, 1], [], []>} : vector<8x128xbf16>, vector<128x128xbf16>, vector<8x128xf32> -> vector<8x128xf32>
    %c0_20 = arith.constant 0 : index
    %c0_21 = arith.constant 0 : index
    %38 = vector.load %arg8[%c0_20, %c0_21] : memref<1x128xf32, #tpu.memory_space<vmem>>, vector<1x128xf32>
    %39 = vector.broadcast %38 : vector<1x128xf32> to vector<8x128xf32>
    %40 = arith.addf %37, %39 : vector<8x128xf32>
    %cst_22 = arith.constant 0.000000e+00 : f32
    %41 = vector.broadcast %cst_22 : f32 to vector<8x128xf32>
    %42 = arith.maximumf %40, %41 : vector<8x128xf32>
    %43 = arith.truncf %42 : vector<8x128xf32> to vector<8x128xbf16>
    %c0_23 = arith.constant 0 : index
    %c0_24 = arith.constant 0 : index
    %44 = vector.load %arg9[%c0_23, %c0_24] : memref<128x128xbf16, #tpu.memory_space<vmem>>, vector<128x128xbf16>
    %cst_25 = arith.constant dense<0.000000e+00> : vector<8x128xf32>
    %45 = tpu.matmul %43, %44, %cst_25 {dimension_numbers = #tpu.dot_dimension_numbers<[1], [0], [0], [1], [0, 0, 1, 1], [], []>} : vector<8x128xbf16>, vector<128x128xbf16>, vector<8x128xf32> -> vector<8x128xf32>
    %46 = arith.addf %8, %45 : vector<8x128xf32>
    %c0_26 = arith.constant 0 : index
    %c0_27 = arith.constant 0 : index
    %47 = vector.load %arg10[%c0_26, %c0_27] : memref<1x128xf32, #tpu.memory_space<vmem>>, vector<1x128xf32>
    %48 = vector.broadcast %47 : vector<1x128xf32> to vector<8x128xf32>
    %49 = arith.addf %46, %48 : vector<8x128xf32>
    %c0_28 = arith.constant 0 : index
    %c0_29 = arith.constant 0 : index
    %50 = vector.load %arg11[%c0_28, %c0_29] : memref<8x128xf32, #tpu.memory_space<vmem>>, vector<8x128xf32>
    tpu.vector_store %arg11[%c0_28, %c0_29], %49 {strides = array<i32>} : memref<8x128xf32, #tpu.memory_space<vmem>>, vector<8x128xf32>,
    return
  }
  func.func @transform_0(%arg0: i32) -> (i32, i32) {
    %c0_i32 = arith.constant 0 : i32
    %c0_i32_0 = arith.constant 0 : i32
    return %arg0, %c0_i32 : i32, i32
  }
  func.func @transform_1(%arg0: i32) -> (i32, i32) {
    %c0_i32 = arith.constant 0 : i32
    %c0_i32_0 = arith.constant 0 : i32
    return %arg0, %c0_i32 : i32, i32
  }
  func.func @transform_2(%arg0: i32) -> (i32, i32) {
    %c0_i32 = arith.constant 0 : i32
    %c0_i32_0 = arith.constant 0 : i32
    %c0_i32_1 = arith.constant 0 : i32
    return %c0_i32, %c0_i32_0 : i32, i32
  }
  func.func @transform_3(%arg0: i32) -> (i32, i32) {
    %c0_i32 = arith.constant 0 : i32
    %c0_i32_0 = arith.constant 0 : i32
    %c0_i32_1 = arith.constant 0 : i32
    return %c0_i32, %c0_i32_0 : i32, i32
  }
  func.func @transform_4(%arg0: i32) -> (i32, i32) {
    %c0_i32 = arith.constant 0 : i32
    %c0_i32_0 = arith.constant 0 : i32
    %c0_i32_1 = arith.constant 0 : i32
    return %c0_i32, %c0_i32_0 : i32, i32
  }
  func.func @transform_5(%arg0: i32) -> (i32, i32) {
    %c0_i32 = arith.constant 0 : i32
    %c0_i32_0 = arith.constant 0 : i32
    %c0_i32_1 = arith.constant 0 : i32
    return %c0_i32, %c0_i32_0 : i32, i32
  }
  func.func @transform_6(%arg0: i32) -> (i32, i32) {
    %c0_i32 = arith.constant 0 : i32
    %c0_i32_0 = arith.constant 0 : i32
    %c0_i32_1 = arith.constant 0 : i32
    return %c0_i32, %c0_i32_0 : i32, i32
  }
  func.func @transform_7(%arg0: i32) -> (i32, i32) {
    %c0_i32 = arith.constant 0 : i32
    %c0_i32_0 = arith.constant 0 : i32
    %c0_i32_1 = arith.constant 0 : i32
    return %c0_i32, %c0_i32_0 : i32, i32
  }
  func.func @transform_8(%arg0: i32) -> (i32, i32) {
    %c0_i32 = arith.constant 0 : i32
    %c0_i32_0 = arith.constant 0 : i32
    %c0_i32_1 = arith.constant 0 : i32
    return %c0_i32, %c0_i32_0 : i32, i32
  }
  func.func @transform_9(%arg0: i32) -> (i32, i32) {
    %c0_i32 = arith.constant 0 : i32
    %c0_i32_0 = arith.constant 0 : i32
    %c0_i32_1 = arith.constant 0 : i32
    return %c0_i32, %c0_i32_0 : i32, i32
  }
  func.func @transform_10(%arg0: i32) -> (i32, i32) {
    %c0_i32 = arith.constant 0 : i32
    %c0_i32_0 = arith.constant 0 : i32
    return %arg0, %c0_i32 : i32, i32
  }
}

module attributes {stable_mosaic.version = 11 : i64} {
  func.func @_matmul_kernel(%arg0: i32, %arg1: memref<8x128xf32, #tpu.memory_space<vmem>>, %arg2: memref<128x128xbf16, #tpu.memory_space<vmem>>, %arg3: memref<1x128xf32, #tpu.memory_space<vmem>>, %arg4: memref<8x128xf32, #tpu.memory_space<vmem>>) attributes {dimension_semantics = [#tpu.dimension_semantics<parallel>], iteration_bounds = array<i64: 2>, scalar_prefetch = 0 : i64, scratch_operands = 0 : i64, tpu.core_type = #tpu.core_type<tc>, window_params = [{transform_indices = @transform_0, window_bounds = array<i64: 8, 128>}, {pipeline_mode = #tpu.pipeline_mode<synchronous>, transform_indices = @transform_1, window_bounds = array<i64: 128, 128>}, {pipeline_mode = #tpu.pipeline_mode<synchronous>, transform_indices = @transform_2, window_bounds = array<i64: 1, 128>}, {transform_indices = @transform_3, window_bounds = array<i64: 8, 128>}]} {
    %c0 = arith.constant 0 : index
    %c0_0 = arith.constant 0 : index
    %0 = vector.load %arg1[%c0, %c0_0] : memref<8x128xf32, #tpu.memory_space<vmem>>, vector<8x128xf32>
    %1 = arith.truncf %0 : vector<8x128xf32> to vector<8x128xbf16>
    %c0_1 = arith.constant 0 : index
    %c0_2 = arith.constant 0 : index
    %2 = vector.load %arg2[%c0_1, %c0_2] : memref<128x128xbf16, #tpu.memory_space<vmem>>, vector<128x128xbf16>
    %cst = arith.constant dense<0.000000e+00> : vector<8x128xf32>
    %3 = tpu.matmul %1, %2, %cst {dimension_numbers = #tpu.dot_dimension_numbers<[1], [0], [0], [1], [0, 0, 1, 1], [], []>} : vector<8x128xbf16>, vector<128x128xbf16>, vector<8x128xf32> -> vector<8x128xf32>
    %c0_3 = arith.constant 0 : index
    %c0_4 = arith.constant 0 : index
    %4 = vector.load %arg3[%c0_3, %c0_4] : memref<1x128xf32, #tpu.memory_space<vmem>>, vector<1x128xf32>
    %5 = vector.broadcast %4 : vector<1x128xf32> to vector<8x128xf32>
    %6 = arith.addf %3, %5 : vector<8x128xf32>
    %c0_5 = arith.constant 0 : index
    %c0_6 = arith.constant 0 : index
    %7 = vector.load %arg4[%c0_5, %c0_6] : memref<8x128xf32, #tpu.memory_space<vmem>>, vector<8x128xf32>
    tpu.vector_store %arg4[%c0_5, %c0_6], %6 {strides = array<i32>} : memref<8x128xf32, #tpu.memory_space<vmem>>, vector<8x128xf32>,
    return
  }
  func.func @transform_0(%arg0: i32) -> (i32, i32) {
    %c0_i32 = arith.constant 0 : i32
    %c0_i32_0 = arith.constant 0 : i32
    return %arg0, %c0_i32 : i32, i32
  }
  func.func @transform_1(%arg0: i32) -> (i32, i32) {
    %c0_i32 = arith.constant 0 : i32
    %c0_i32_0 = arith.constant 0 : i32
    %c0_i32_1 = arith.constant 0 : i32
    return %c0_i32, %c0_i32_0 : i32, i32
  }
  func.func @transform_2(%arg0: i32) -> (i32, i32) {
    %c0_i32 = arith.constant 0 : i32
    %c0_i32_0 = arith.constant 0 : i32
    %c0_i32_1 = arith.constant 0 : i32
    return %c0_i32, %c0_i32_0 : i32, i32
  }
  func.func @transform_3(%arg0: i32) -> (i32, i32) {
    %c0_i32 = arith.constant 0 : i32
    %c0_i32_0 = arith.constant 0 : i32
    return %arg0, %c0_i32 : i32, i32
  }
}

</mosaic_0001>

<bundles_post_ra>
// kernel: _lambda_.10
= control target key start
LH: loop header
LB: loop body
LE: loop exit
PB: predicated region body
PF: predicated region fallthrough
CT: control target
= control target key end

     0   :  { %s1635_s24 = smov 0   ;;  %s2396_s0 = inlined_call_operand.vmem [shape: f32[2,18,10,1], index: 0, kind: input, shape index: {}]   ;;  %s2397_s1 = inlined_call_operand.vmem [shape: f32[9,1,8], index: 1, kind: input, shape index: {}]   ;;  %s2398_s2 = inlined_call_operand.vmem [shape: f32[1,8], index: 2, kind: input, shape index: {}]   ;;  %s2399_s3 = inlined_call_operand.vmem [shape: f32[1,8], index: 3, kind: input, shape index: {}]   ;;  %s2400_s4 = inlined_call_operand.vmem [shape: f32[1,8], index: 4, kind: input, shape index: {}]   ;;  %s2401_s5 = inlined_call_operand.vmem [shape: bf16[8,8], index: 5, kind: input, shape index: {}]   ;;  %s2402_s6 = inlined_call_operand.vmem [shape: f32[1,8], index: 6, kind: input, shape index: {}]   ;;  %s2403_s7 = inlined_call_operand.vmem [shape: f32[2,8,8,8], index: 7, kind: output, shape index: {}]  }
   0x1 LB: > { %s1431_s25 = sadd.s32 4294967295, %s1592_s24   ;;  %p1435_p0 = scmp.ge.s32.totalorder %s1592_s24, 1  ;;  %s1592_s24 = sphi %s1635_s24, %s17_s24  }
   0x2   : > { %p237_p1 = scmp.lt.s32.totalorder %s1592_s24, 3 }
   0x4   : > { %p238_p2 = pnand %p1435_p0, %p237_p1 }
   0x6   : > { %241 = sbr.rel (%p238_p2) target bundleno = 497 (0x1f1), region = 48 }
   0xd   : > { %p269_p3 = scmp.lt.s32.totalorder %s1431_s25, 1  ;;  %v1594_v0 = vmov 0   ;;  %vm459_vm0 = vcmask 1046528   ;;  %vm610_vm1 = vcmask 1045504   ;;  %vm1139_vm2 = vcmask 1043456  }
   0xe   : > { %1521 = vset.pattern.permute.xlu1 %v1594_v0  ;;  %1520 = vset.pattern.permute.xlu0 %v1594_v0  ;;  %vm1114_vm3 = vcmask 64512  }
   0xf   : > { %s2448_s25 = smov (!%p269_p3, %s1431_s25), 1 }
  0x10   : > { %s1510_s26 = smul.u32 288, %s2448_s25  ;;  %s1478_s14 = sshll.u32 %s2448_s25, 6 }
  0x11   : > { %s2367_s25 = scalar_lea.vmem %s2403_s7, %s1478_s14 }
  0x12   : > { %s1649_s29 = scalar_lea.vmem %s2396_s0, %s1510_s26 }
  0x13   : > { %v1652_v1 = vld [vmem:[%s1649_s29 + $0x80] sm:$0xff]  ;;  %v1660_v3 = vld [vmem:[%s1649_s29 + $0x10] sm:$0xff]  ;;  %v1668_v7 = vld [vmem:[%s1649_s29 + $0x18] sm:$0x3] }
  0x14   : > { %v1655_v2 = vld [vmem:[%s1649_s29] sm:$0xff]  ;;  %367 = vperm.xlu1 %1521, %v1652_v1   ;;  %v1664_v5 = vld [vmem:[%s1649_s29 + $0x90] sm:$0xff]  ;;  %v463_v6 = vrot.slane %v1660_v3, 1  ;;  %v464_v8 = vrot.slane %v1668_v7, 1  ;;  %v1672_v9 = vld [vmem:[%s1649_s29 + $0x8] sm:$0x3] }
  0x15   : > { %327 = vperm.xlu0 %1520, %v1655_v2   ;;  %v460_v4 = vrot.slane %v1655_v2, 1  ;;  %v1675_v10 = vld [vmem:[%s1649_s29 + $0x98] sm:$0x3]  ;;  %v461_v11 = vrot.slane %v1672_v9, 1  ;;  %v1679_v12 = vld [vmem:[%s1649_s29 + $0x88] sm:$0x3] }
  0x16   : > { %v484_v13 = vrot.slane %v1652_v1, 1  ;;  %v487_v14 = vrot.slane %v1664_v5, 1  ;;  %v465_v15 = vsel %vm459_vm0, %v463_v6, %v464_v8  ;;  %v488_v17 = vrot.slane %v1675_v10, 1  ;;  %v1692_v21 = vld [vmem:[%s1649_s29 + $0x38] sm:$0x3]  ;;  %v1695_v22 = vld [vmem:[%s1649_s29 + $0x30] sm:$0xff] }
  0x17   : > { %v462_v16 = vsel %vm459_vm0, %v460_v4, %v461_v11  ;;  %v485_v18 = vrot.slane %v1679_v12, 1  ;;  %v1698_v23 = vld [vmem:[%s1649_s29 + $0x20] sm:$0xff]  ;;  %v469_v24 = vrot.slane %v1695_v22, 1  ;;  %v1703_v26 = vld [vmem:[%s1649_s29 + $0x28] sm:$0x3]  ;;  %v1706_v27 = vld [vmem:[%s1649_s29 + $0x70] sm:$0xff] }
  0x18   : > { %372 = vperm.xlu1 %1521, %v1664_v5   ;;  %v489_v19 = vsel %vm459_vm0, %v487_v14, %v488_v17  ;;  %v466_v25 = vrot.slane %v1698_v23, 1  ;;  %v1709_v28 = vld [vmem:[%s1649_s29 + $0xb0] sm:$0xff]  ;;  %v1712_v29 = vld [vmem:[%s1649_s29 + $0xa0] sm:$0xff]  ;;  %v470_v30 = vrot.slane %v1692_v21, 1  ;;  %v1716_v31 = vld [vmem:[%s1649_s29 + $0xb8] sm:$0x3] }
  0x19   : > { %332 = vperm.xlu0 %1520, %v1660_v3   ;;  %v486_v20 = vsel %vm459_vm0, %v484_v13, %v485_v18  ;;  %v1719_v32 = vld [vmem:[%s1649_s29 + $0x60] sm:$0xff]  ;;  %v1722_v33 = vld [vmem:[%s1649_s29 + $0x78] sm:$0x3]  ;;  %v1725_v34 = vld [vmem:[%s1649_s29 + $0x68] sm:$0x3]  ;;  %v481_v35 = vrot.slane %v1706_v27, 1 }
  0x1a   : > { %v1731_v36 = vld [vmem:[%s1649_s29 + $0xf0] sm:$0xff]  ;;  %v1734_v37 = vld [vmem:[%s1649_s29 + $0xf8] sm:$0x3]  ;;  %v1737_v38 = vld [vmem:[%s1649_s29 + $0xe8] sm:$0x3]  ;;  %v467_v39 = vrot.slane %v1703_v26, 1  ;;  %v471_v51 = vsel %vm459_vm0, %v469_v24, %v470_v30 }
  0x1b   : > { %v1741_v40 = vld [vmem:[%s1649_s29 + $0xa8] sm:$0x3]  ;;  %v478_v41 = vrot.slane %v1719_v32, 1  ;;  %v505_v42 = vrot.slane %v1731_v36, 1  ;;  %v1746_v43 = vld [vmem:[%s1649_s29 + $0xe0] sm:$0xff]  ;;  %v493_v44 = vrot.slane %v1709_v28, 1 }
  0x1c   : > { %513 = vperm.xlu1 %1521, %v465_v15   ;;  %v502_v45 = vrot.slane %v1746_v43, 1  ;;  %v482_v46 = vrot.slane %v1722_v33, 1  ;;  %v490_v47 = vrot.slane %v1712_v29, 1  ;;  %v479_v48 = vrot.slane %v1725_v34, 1  ;;  %v1764_v55 = vld [vmem:[%s1649_s29 + $0x100] sm:$0xff]  ;;  %v1778_v61 = vld [vmem:[%s1649_s29 + $0x110] sm:$0xff] }
  0x1d   : > { %509 = vperm.xlu0 %1520, %v462_v16   ;;  %v506_v49 = vrot.slane %v1734_v37, 1  ;;  %v503_v50 = vrot.slane %v1737_v38, 1  ;;  %v494_v52 = vrot.slane %v1716_v31, 1  ;;  %v491_v53 = vrot.slane %v1741_v40, 1  ;;  %v313_v60 = vld [vmem:[%s1649_s29 + $0x108] sm:$0x3] }
  0x1e   : > { %v1761_v54 = vsel %vm459_vm0, %v481_v35, %v482_v46  ;;  %v468_v56 = vsel %vm459_vm0, %v466_v25, %v467_v39  ;;  %v1768_v57 = vsel %vm459_vm0, %v478_v41, %v479_v48  ;;  %v611_v62 = vrot.slane %v1655_v2, 2  ;;  %v315_v4 = vld [vmem:[%s1649_s29 + $0x118] sm:$0x3] }
  0x1f   : > { %v1771_v58 = vsel %vm459_vm0, %v505_v42, %v506_v49  ;;  %v1774_v59 = vsel %vm459_vm0, %v502_v45, %v503_v50  ;;  %v614_v63 = vrot.slane %v1660_v3, 2  ;;  %v805_v0 = vrot.slane %v1764_v55, 1  ;;  %v305_v49 = vld [vmem:[%s1649_s29 + $0xc8] sm:$0x3] }
  0x20   : > { %545 = vperm.xlu1 %1521, %v489_v19   ;;  %v615_v6 = vrot.slane %v1668_v7, 2  ;;  %v806_v8 = vrot.slane %v313_v60, 1  ;;  %v939_v11 = vrot.slane %v1778_v61, 1  ;;  %v984_v13 = vrot.slane %v1778_v61, 2  ;;  %v289_v50 = vld [vmem:[%s1649_s29 + $0x48] sm:$0x3] }
  0x21   : > { %541 = vperm.xlu0 %1520, %v486_v20   ;;  %v495_v14 = vsel %vm459_vm0, %v493_v44, %v494_v52  ;;  %v492_v15 = vsel %vm459_vm0, %v490_v47, %v491_v53  ;;  %v612_v2 = vrot.slane %v1672_v9, 2  ;;  %v850_v3 = vrot.slane %v1764_v55, 2 }
  0x22   : > { %v1792_v16 = vsel %vm459_vm0, %v805_v0, %v806_v8  ;;  %v851_v17 = vrot.slane %v313_v60, 2  ;;  %v985_v18 = vrot.slane %v315_v4, 2  ;;  %v940_v19 = vrot.slane %v315_v4, 1  ;;  %v306_v60 = vld [vmem:[%s1649_s29 + $0xd0] sm:$0xff]  ;;  %v291_v0 = vld [vmem:[%s1649_s29 + $0x58] sm:$0x3] }
  0x23   : > { %v635_v7 = vrot.slane %v1652_v1, 2  ;;  %v638_v20 = vrot.slane %v1664_v5, 2  ;;  %v616_v30 = vsel %vm610_vm1, %v614_v63, %v615_v6  ;;  %v613_v35 = vsel %vm610_vm1, %v611_v62, %v612_v2  ;;  %v290_v62 = vld [vmem:[%s1649_s29 + $0x50] sm:$0xff]  ;;  %v307_v63 = vld [vmem:[%s1649_s29 + $0xd8] sm:$0x3] }
  0x24   : > { %342 = vperm.xlu1 %1521, %v1695_v22   ;;  %v1797_v24 = vsel %vm610_vm1, %v850_v3, %v851_v17  ;;  %v1800_v25 = vsel %vm610_vm1, %v984_v13, %v985_v18  ;;  %v1803_v9 = vsel %vm459_vm0, %v939_v11, %v940_v19  ;;  %v639_v39 = vrot.slane %v1675_v10, 2 }
  0x25   : > { %337 = vperm.xlu0 %1520, %v1698_v23   ;;  %v636_v1 = vrot.slane %v1679_v12, 2  ;;  %v620_v5 = vrot.slane %v1695_v22, 2  ;;  %v617_v41 = vrot.slane %v1698_v23, 2  ;;  %v621_v45 = vrot.slane %v1692_v21, 2 }
  0x26   : > { %v640_v42 = vsel %vm610_vm1, %v638_v20, %v639_v39  ;;  %v618_v46 = vrot.slane %v1703_v26, 2  ;;  %v644_v10 = vrot.slane %v1709_v28, 2  ;;  %v641_v12 = vrot.slane %v1712_v29, 2 }
  0x27   : > { %v637_v44 = vsel %vm610_vm1, %v635_v7, %v636_v1  ;;  %v622_v22 = vsel %vm610_vm1, %v620_v5, %v621_v45  ;;  %v645_v47 = vrot.slane %v1716_v31, 2  ;;  %v642_v48 = vrot.slane %v1741_v40, 2 }
  0x28   : > { %382 = vperm.xlu1 %1521, %v1709_v28   ;;  %v619_v23 = vsel %vm610_vm1, %v617_v41, %v618_v46  ;;  %v304_v28 = vld [vmem:[%s1649_s29 + $0xc0] sm:$0xff]  ;;  %v497_v52 = vrot.slane %v305_v49, 1  ;;  %v473_v40 = vrot.slane %v289_v50, 1  ;;  %v499_v4 = vrot.slane %v306_v60, 1 }
  0x29   : > { %377 = vperm.xlu0 %1520, %v1712_v29   ;;  %v646_v21 = vsel %vm610_vm1, %v644_v10, %v645_v47  ;;  %v643_v26 = vsel %vm610_vm1, %v641_v12, %v642_v48  ;;  %v288_v29 = vld [vmem:[%s1649_s29 + $0x40] sm:$0xff]  ;;  %v475_v6 = vrot.slane %v290_v62, 1  ;;  %v500_v8 = vrot.slane %v307_v63, 1 }
  0x2a   : > { %v472_v31 = vrot.slane %v288_v29, 1  ;;  %v476_v11 = vrot.slane %v291_v0, 1  ;;  %v623_v2 = vrot.slane %v288_v29, 2  ;;  %v648_v3 = vrot.slane %v305_v49, 2  ;;  %v1891_v47 = vld [vmem:[%s2397_s1 + $0x1] ss:$0 sm:$0xff] }
  0x2b   : > { %v501_v13 = vsel %vm459_vm0, %v499_v4, %v500_v8  ;;  %v624_v17 = vrot.slane %v289_v50, 2  ;;  %v650_v18 = vrot.slane %v306_v60, 2  ;;  %v626_v19 = vrot.slane %v290_v62, 2  ;;  %v1896_v48 = vld [vmem:[%s2397_s1] ss:$0 sm:$0xff] }
  0x2c   : > { %521 = vperm.xlu1 %1521, %v471_v51   ;;  %v496_v51 = vrot.slane %v304_v28, 1  ;;  %v656_v5 = vrot.slane %v1731_v36, 2  ;;  %v653_v41 = vrot.slane %v1746_v43, 2  ;;  %v1908_v50 = vld [vmem:[%s2397_s1 + $0x2] ss:$0 sm:$0xff] }
  0x2d   : > { %517 = vperm.xlu0 %1520, %v468_v56   ;;  %v474_v56 = vsel %vm459_vm0, %v472_v31, %v473_v40  ;;  %v625_v20 = vsel %vm610_vm1, %v623_v2, %v624_v17  ;;  %v1937_v2 = vld [vmem:[%s2397_s1 + $0x5] ss:$0 sm:$0xff] }
  0x2e   : > { %v498_v53 = vsel %vm459_vm0, %v496_v51, %v497_v52 }
  0x30   : > { %553 = vperm.xlu1 %1521, %v495_v14   ;;  %v477_v14 = vsel %vm459_vm0, %v475_v6, %v476_v11 }
  0x31   : > { %549 = vperm.xlu0 %1520, %v492_v15   ;;  %v647_v15 = vrot.slane %v304_v28, 2 }
  0x33   : > { %v649_v7 = vsel %vm610_vm1, %v647_v15, %v648_v3 }
  0x34   : > { %664 = vperm.xlu1 %1521, %v616_v30   ;;  %v651_v30 = vrot.slane %v307_v63, 2  ;;  %v1918_v63 = vld [vmem:[%s2397_s1 + $0x3] ss:$0 sm:$0xff] }
  0x35   : > { %660 = vperm.xlu0 %1520, %v613_v35   ;;  %v627_v35 = vrot.slane %v291_v0, 2  ;;  %2415 = vst [vmem:[#allocation2_spill] sm:$0xff] %v1918_v63  ;;  %v1923_v0 = vld [vmem:[%s2397_s1 + $0x4] ss:$0 sm:$0xff] }
  0x36   : > { %v652_v39 = vsel %vm610_vm1, %v650_v18, %v651_v30 }
  0x37   : > { %v628_v1 = vsel %vm610_vm1, %v626_v19, %v627_v35 }
  0x38   : > { %696 = vperm.xlu1 %1521, %v640_v42   ;;  %v657_v42 = vrot.slane %v1734_v37, 2 }
  0x39   : > { %692 = vperm.xlu0 %1520, %v637_v44   ;;  %v654_v44 = vrot.slane %v1737_v38, 2 }
  0x3c   : > { %672 = vperm.xlu1 %1521, %v622_v22  }
  0x3d   : > { %668 = vperm.xlu0 %1520, %v619_v23  }
  0x40   : > { %704 = vperm.xlu1 %1521, %v646_v21  }
  0x41   : > { %700 = vperm.xlu0 %1520, %v643_v26  }
  0x44   : > { %387 = vperm.xlu1 %1521, %v304_v28  }
  0x45   : > { %347 = vperm.xlu0 %1520, %v288_v29  }
  0x48   : > { %557 = vperm.xlu1 %1521, %v498_v53  }
  0x49   : > { %525 = vperm.xlu0 %1520, %v474_v56  }
  0x4c   : > { %392 = vperm.xlu1 %1521, %v306_v60  }
  0x4d   : > { %352 = vperm.xlu0 %1520, %v290_v62  }
  0x50   : > { %561 = vperm.xlu1 %1521, %v501_v13  }
  0x51   : > { %529 = vperm.xlu0 %1520, %v477_v14  }
  0x54   : > { %362 = vperm.xlu1 %1521, %v1706_v27  }
  0x55   : > { %357 = vperm.xlu0 %1520, %v1719_v32  }
  0x58   : > { %402 = vperm.xlu1 %1521, %v1731_v36   ;;  %v1106_v36 = vld [vmem:[%s2401_s5] sm:$0xf] }
  0x59   : > { %397 = vperm.xlu0 %1520, %v1746_v43   ;;  %1508 = vmatprep.subr.msk.bf16.mxu0 %vm1139_vm2, %v1106_v36  ;;  %v1141_v37 = vsel %vm1139_vm2, %v1106_v36, 0 }
  0x5a   : > { %1509 = vmatprep.subr.msk.bf16.mxu1 %vm1139_vm2, %v1106_v36  ;;  %1489 = vmatpush3.bf16.msra.mxu0 %v1141_v37 }
  0x5b   : > { %1507 = vmatpush3.bf16.msra.mxu1 %v1141_v37 }
  0x5c   : > { %537 = vperm.xlu1 %1521, %v1761_v54   ;;  %v632_v54 = vrot.slane %v1706_v27, 2 }
  0x5d   : > { %533 = vperm.xlu0 %1520, %v1768_v57   ;;  %v629_v57 = vrot.slane %v1719_v32, 2 }
  0x60   : > { %569 = vperm.xlu1 %1521, %v1771_v58   ;;  %v633_v58 = vrot.slane %v1722_v33, 2  ;;  %v658_v33 = vsel %vm610_vm1, %v656_v5, %v657_v42 }
  0x61   : > { %565 = vperm.xlu0 %1520, %v1774_v59   ;;  %v630_v59 = vrot.slane %v1725_v34, 2  ;;  %v655_v34 = vsel %vm610_vm1, %v653_v41, %v654_v44 }
  0x62   : > { %v634_v27 = vsel %vm610_vm1, %v632_v54, %v633_v58  ;;  %v1952_v58 = vld [vmem:[%s2397_s1 + $0x6] ss:$0 sm:$0xff] }
  0x63   : > { %v631_v32 = vsel %vm610_vm1, %v629_v57, %v630_v59  ;;  %2418 = vst [vmem:[#allocation5_spill] sm:$0xff] %v1952_v58 }
  0x64   : > { %708 = vperm.xlu1 %1521, %v649_v7  }
  0x65   : > { %676 = vperm.xlu0 %1520, %v625_v20  }
  0x68   : > { %712 = vperm.xlu1 %1521, %v652_v39  }
  0x69   : > { %680 = vperm.xlu0 %1520, %v628_v1  }
  0x6c   : > { %688 = vperm.xlu1 %1521, %v634_v27  }
  0x6d   : > { %684 = vperm.xlu0 %1520, %v631_v32  }
  0x70   : > { %720 = vperm.xlu1 %1521, %v658_v33  }
  0x71   : > { %716 = vperm.xlu0 %1520, %v655_v34   ;;  %v1967_v34 = vld [vmem:[%s2397_s1 + $0x7] ss:$0 sm:$0xff] }
  0x74   : > { %809 = vperm.xlu1 %1521, %v1792_v16  }
  0x75   : > { %763 = vperm.xlu0 %1520, %v1764_v55  }
  0x78   : > { %897 = vperm.xlu1 %1521, %v1778_v61  }
  0x79   : > { %854 = vperm.xlu0 %1520, %v1797_v24  }
  0x7c   : > { %988 = vperm.xlu1 %1521, %v1800_v25  }
  0x7d   : > { %943 = vperm.xlu0 %1520, %v1803_v9  }
  0x93   : > { %v1868_v38 = vpop.permute.xlu1 %367 }
  0x94   : > { %v328_v43 = vpop.permute.xlu0 %327  ;;  %v419_v14 = vmul.f32 %v1896_v48, %v1868_v38 }
  0x95   : > { %v411_v51 = vmul.f32 %v1896_v48, %v328_v43 }
  0x97   : > { %v1870_v55 = vpop.permute.xlu1 %372 }
  0x98   : > { %v333_v61 = vpop.permute.xlu0 %332  ;;  %v420_v6 = vmul.f32 %v1896_v48, %v1870_v55  ;;  %v780_v59 = vmul.f32 %v1918_v63, %v1870_v55 }
  0x99   : > { %v412_v49 = vmul.f32 %v1896_v48, %v333_v61  ;;  %v772_v8 = vmul.f32 %v1918_v63, %v333_v61 }
  0x9b   : > { %v514_v16 = vpop.permute.xlu1 %513 }
  0x9c   : > { %v510_v24 = vpop.permute.xlu0 %509  ;;  %v579_v21 = vmul.f32 %v1891_v47, %v514_v16  ;;  %v818_v18 = vmul.f32 %v1923_v0, %v514_v16 }
  0x9d   : > { %v578_v29 = vmul.f32 %v1891_v47, %v510_v24 }
  0x9e   : > { %v595_v31 = vadd.f32 %v579_v21, %v412_v49 }
  0x9f   : > { %v1872_v45 = vpop.permute.xlu1 %545  ;;  %v594_v53 = vadd.f32 %v578_v29, %v411_v51 }
  0xa0   : > { %v1874_v46 = vpop.permute.xlu0 %541  ;;  %v587_v56 = vmul.f32 %v1891_v47, %v1872_v45  ;;  %v826_v36 = vmul.f32 %v1923_v0, %v1872_v45 }
  0xa1   : > { %v586_v4 = vmul.f32 %v1891_v47, %v1874_v46 }
  0xa2   : > { %v603_v19 = vadd.f32 %v587_v56, %v420_v6 }
  0xa3   : > { %v1876_v10 = vpop.permute.xlu1 %342  ;;  %v602_v30 = vadd.f32 %v586_v4, %v419_v14  ;;  %v1989_v4 = vld [vmem:[%s2397_s1 + $0x8] ss:$0 sm:$0xff] }
  0xa4   : > { %v1878_v12 = vpop.permute.xlu0 %337  ;;  %v907_v29 = vmul.f32 %v1952_v58, %v1876_v10 }
  0xa5   : > { %v773_v15 = vmul.f32 %v1918_v63, %v1878_v12  ;;  %v906_v42 = vmul.f32 %v1952_v58, %v1878_v12 }
  0xa7   : > { %v1880_v25 = vpop.permute.xlu1 %382 }
  0xa8   : > { %v1882_v9 = vpop.permute.xlu0 %377 }
  0xa9   : > { %v781_v44 = vmul.f32 %v1918_v63, %v1882_v9 }
  0xab   : > { %v1884_v22 = vpop.permute.xlu1 %521 }
  0xac   : > { %v1886_v23 = vpop.permute.xlu0 %517 }
  0xad   : > { %v819_v5 = vmul.f32 %v1923_v0, %v1886_v23  ;;  %v952_v16 = vmul.f32 %v1967_v34, %v1886_v23 }
  0xaf   : > { %v1899_v26 = vpop.permute.xlu1 %553 }
  0xb0   : > { %v1901_v28 = vpop.permute.xlu0 %549 }
  0xb3   : > { %v665_v52 = vpop.permute.xlu1 %664 }
  0xb4   : > { %v661_v40 = vpop.permute.xlu0 %660  ;;  %v730_v60 = vmul.f32 %v1908_v50, %v665_v52  ;;  %v863_v57 = vmul.f32 %v1937_v2, %v665_v52 }
  0xb5   : > { %v729_v62 = vmul.f32 %v1908_v50, %v661_v40 }
  0xb6   : > { %v746_v11 = vadd.f32 %v730_v60, %v595_v31  ;;  %v914_v60 = vmul.f32 %v1952_v58, %v1882_v9 }
  0xb7   : > { %v745_v13 = vadd.f32 %v729_v62, %v594_v53  ;;  %v1939_v3 = vpop.permute.xlu1 %696  ;;  %v827_v53 = vmul.f32 %v1923_v0, %v1901_v28  ;;  %v953_v62 = vmul.f32 %v1967_v34, %v1884_v22 }
  0xb8   : > { %2416 = vst [vmem:[#allocation3_spill] sm:$0xff] %v1939_v3  ;;  %v1941_v17 = vpop.permute.xlu0 %692  ;;  %v738_v20 = vmul.f32 %v1908_v50, %v1939_v3  ;;  %v789_v35 = vadd.f32 %v773_v15, %v746_v11  ;;  %v871_v49 = vmul.f32 %v1937_v2, %v1939_v3  ;;  %v588_v15 = vmul.f32 %v1891_v47, %v1901_v28 }
  0xb9   : > { %2417 = vst [vmem:[#allocation4_spill] sm:$0xff] %v1941_v17  ;;  %v788_v7 = vadd.f32 %v772_v8, %v745_v13  ;;  %v737_v54 = vmul.f32 %v1908_v50, %v1941_v17 }
  0xba   : > { %v754_v1 = vadd.f32 %v738_v20, %v603_v19  ;;  %v835_v43 = vadd.f32 %v819_v5, %v789_v35  ;;  %v580_v35 = vmul.f32 %v1891_v47, %v1886_v23  ;;  %v413_v23 = vmul.f32 %v1896_v48, %v1878_v12  ;;  %v2029_v12 = vld [vmem:[%s2399_s3] ss:$0 sm:$0xff] }
  0xbb   : > { %v834_v39 = vadd.f32 %v818_v18, %v788_v7  ;;  %v753_v41 = vadd.f32 %v737_v54, %v602_v30  ;;  %v1958_v27 = vpop.permute.xlu1 %672  ;;  %v915_v30 = vmul.f32 %v1952_v58, %v1880_v25 }
  0xbc   : > { %v669_v32 = vpop.permute.xlu0 %668  ;;  %v797_v24 = vadd.f32 %v781_v44, %v754_v1  ;;  %v960_v1 = vmul.f32 %v1967_v34, %v1901_v28 }
  0xbd   : > { %v879_v33 = vadd.f32 %v863_v57, %v834_v39  ;;  %v796_v37 = vadd.f32 %v780_v59, %v753_v41  ;;  %v864_v61 = vmul.f32 %v1937_v2, %v669_v32  ;;  %v997_v11 = vmul.f32 %v1989_v4, %v669_v32  ;;  %v2013_v41 = vld [vmem:[%s2398_s2] ss:$0 sm:$0xff] }
  0xbe   : > { %v843_v13 = vadd.f32 %v827_v53, %v797_v24  ;;  %v421_v39 = vmul.f32 %v1896_v48, %v1882_v9  ;;  %v998_v59 = vmul.f32 %v1989_v4, %v1958_v27 }
  0xbf   : > { %v922_v21 = vadd.f32 %v906_v42, %v879_v33  ;;  %v842_v51 = vadd.f32 %v826_v36, %v796_v37  ;;  %v880_v31 = vadd.f32 %v864_v61, %v835_v43  ;;  %v1978_v52 = vpop.permute.xlu1 %704  ;;  %v731_v42 = vmul.f32 %v1908_v50, %v669_v32 }
  0xc0   : > { %v701_v40 = vpop.permute.xlu0 %700  ;;  %v604_v44 = vadd.f32 %v588_v15, %v421_v39  ;;  %v596_v43 = vadd.f32 %v580_v35, %v413_v23  ;;  %v422_v15 = vmul.f32 %v1896_v48, %v1880_v25  ;;  %v2090_v23 = vmul.f32 %v1923_v0, %v1874_v46 }
  0xc1   : > { %v968_v56 = vadd.f32 %v952_v16, %v922_v21  ;;  %v923_v6 = vadd.f32 %v907_v29, %v880_v31  ;;  %v887_v8 = vadd.f32 %v871_v49, %v842_v51  ;;  %v872_v14 = vmul.f32 %v1937_v2, %v701_v40 }
  0xc2   : > { %v739_v5 = vmul.f32 %v1908_v50, %v701_v40  ;;  %v961_v16 = vmul.f32 %v1967_v34, %v1899_v26  ;;  %v1005_v21 = vmul.f32 %v1989_v4, %v701_v40  ;;  %v747_v32 = vadd.f32 %v731_v42, %v596_v43 }
  0xc3   : > { %v969_v18 = vadd.f32 %v953_v62, %v923_v6  ;;  %v930_v19 = vadd.f32 %v914_v60, %v887_v8  ;;  %v1995_v7 = vpop.permute.xlu1 %387  ;;  %v1013_v54 = vadd.f32 %v997_v11, %v968_v56  ;;  %v888_v57 = vadd.f32 %v872_v14, %v843_v13  ;;  %v2058_v14 = vld [vmem:[%s2400_s4] ss:$0 sm:$0xff] }
  0xc4   : > { %v1997_v20 = vpop.permute.xlu0 %347  ;;  %v755_v24 = vadd.f32 %v739_v5, %v604_v44  ;;  %v782_v49 = vmul.f32 %v1918_v63, %v1880_v25  ;;  %v2040_v40 = vmul.f32 %v1918_v63, %v1868_v38  ;;  %v774_v60 = vmul.f32 %v1918_v63, %v1876_v10  ;;  %2421 = vst [vmem:[#allocation8_spill] sm:$0xff] %v2058_v14 }
  0xc5   : > { %v976_v9 = vadd.f32 %v960_v1, %v930_v19  ;;  %v931_v33 = vadd.f32 %v915_v30, %v888_v57  ;;  %v1014_v37 = vadd.f32 %v998_v59, %v969_v18  ;;  %v1036_v61 = vadd.f32 %v2013_v41, %v1013_v54 }
  0xc6   : > { %v2047_v6 = vmul.f32 %v1952_v58, %v1868_v38  ;;  %v2051_v8 = vmul.f32 %v1952_v58, %v1870_v55  ;;  %v1006_v11 = vmul.f32 %v1989_v4, %v1978_v52  ;;  %v798_v13 = vadd.f32 %v782_v49, %v755_v24 }
  0xc7   : > { %v2018_v36 = vpop.permute.xlu1 %557  ;;  %v1037_v29 = vadd.f32 %v2013_v41, %v1014_v37  ;;  %v977_v51 = vadd.f32 %v961_v16, %v931_v33  ;;  %v1021_v31 = vadd.f32 %v1005_v21, %v976_v9  ;;  %v1059_v62 = vmul.f32 %v2029_v12, %v1036_v61 }
  0xc8   : > { %v2020_v28 = vpop.permute.xlu0 %525  ;;  %2419 = vst [vmem:[#allocation6_spill] sm:$0xff] %v2047_v6  ;;  %2420 = vst [vmem:[#allocation7_spill] sm:$0xff] %v2051_v8  ;;  %v589_v38 = vmul.f32 %v1891_v47, %v1899_v26  ;;  %v790_v18 = vadd.f32 %v774_v60, %v747_v32  ;;  %v581_v55 = vmul.f32 %v1891_v47, %v1884_v22 }
  0xc9   : > { %v1060_v19 = vmul.f32 %v2029_v12, %v1037_v29  ;;  %v828_v30 = vmul.f32 %v1923_v0, %v1899_v26  ;;  %v1022_v57 = vadd.f32 %v1006_v11, %v977_v51  ;;  %v1044_v39 = vadd.f32 %v2013_v41, %v1021_v31 }
  0xca   : > { %v820_v25 = vmul.f32 %v1923_v0, %v1884_v22  ;;  %v740_v1 = vmul.f32 %v1908_v50, %v1978_v52  ;;  %v2079_v59 = vadd.f32 %v2058_v14, %v1059_v62  ;;  %v2086_v26 = vmul.f32 %v1967_v34, %v1872_v45 }
  0xcb   : > { %v2034_v53 = vpop.permute.xlu1 %392  ;;  %v2082_v5 = vadd.f32 %v2058_v14, %v1060_v19  ;;  %v414_v22 = vmul.f32 %v1896_v48, %v1876_v10  ;;  %v844_v42 = vadd.f32 %v828_v30, %v798_v13  ;;  %v2096_v44 = vmul.f32 %v1967_v34, %v1874_v46 }
  0xcc   : > { %v2036_v56 = vpop.permute.xlu0 %352  ;;  %2422 = vst [vmem:[#allocation9_spill] sm:$0xff] %v2079_v59  ;;  %2424 = vst [vmem:[#allocation11_spill] sm:$0xff] %v2086_v26  ;;  %v605_v9 = vadd.f32 %v589_v38, %v422_v15  ;;  %v836_v33 = vadd.f32 %v820_v25, %v790_v18  ;;  %v873_v45 = vmul.f32 %v1937_v2, %v1978_v52 }
  0xcd   : > { %2423 = vst [vmem:[#allocation10_spill] sm:$0xff] %v2082_v5  ;;  %2425 = vst [vmem:[#allocation12_spill] sm:$0xff] %v2096_v44  ;;  %v1098_v37 = vpack.c.bf16 %v2082_v5, %v2079_v59  ;;  %v597_v43 = vadd.f32 %v581_v55, %v414_v22  ;;  %v1045_v61 = vadd.f32 %v2013_v41, %v1022_v57 }
  0xce   : > { %v1067_v16 = vmul.f32 %v2029_v12, %v1044_v39  ;;  %v2106_v21 = vmul.f32 %v1937_v2, %v1941_v17  ;;  %v732_v46 = vmul.f32 %v1908_v50, %v1958_v27  ;;  %v865_v32 = vmul.f32 %v1937_v2, %v1958_v27 }
  0xcf   : > { %v2069_v35 = vpop.permute.xlu1 %561  ;;  %v756_v29 = vadd.f32 %v740_v1, %v605_v9  ;;  %1490 = vmatprep.mubr.msk.bf16.mxu0 %vm1114_vm3, %v1098_v37  ;;  %v783_v52 = vmul.f32 %v1918_v63, %v1995_v7  ;;  %v889_v49 = vadd.f32 %v873_v45, %v844_v42  ;;  %v916_v51 = vmul.f32 %v1952_v58, %v1995_v7 }
  0xd0   : > { %v2071_v54 = vpop.permute.xlu0 %529  ;;  %v1068_v31 = vmul.f32 %v2029_v12, %v1045_v61  ;;  %v881_v60 = vadd.f32 %v865_v32, %v836_v33  ;;  %v775_v62 = vmul.f32 %v1918_v63, %v1997_v20  ;;  %v908_v11 = vmul.f32 %v1952_v58, %v1997_v20 }
  0xd1   : > { %v590_v27 = vmul.f32 %v1891_v47, %v2018_v36  ;;  %v829_v13 = vmul.f32 %v1923_v0, %v2018_v36  ;;  %v582_v15 = vmul.f32 %v1891_v47, %v2020_v28  ;;  %v2129_v38 = vadd.f32 %v2058_v14, %v1067_v16 }
  0xd2   : > { %v2132_v18 = vadd.f32 %v2058_v14, %v1068_v31  ;;  %v748_v30 = vadd.f32 %v732_v46, %v597_v43  ;;  %v423_v57 = vmul.f32 %v1896_v48, %v1995_v7  ;;  %v821_v39 = vmul.f32 %v1923_v0, %v2020_v28 }
  0xd3   : > { %v363_v24 = vpop.permute.xlu1 %362  ;;  %2426 = vst [vmem:[#allocation13_spill] sm:$0xff] %v2129_v38  ;;  %v954_v25 = vmul.f32 %v1967_v34, %v2020_v28  ;;  %v799_v1 = vadd.f32 %v783_v52, %v756_v29  ;;  %v932_v22 = vadd.f32 %v916_v51, %v889_v49  ;;  %v415_v42 = vmul.f32 %v1896_v48, %v1997_v20 }
  0xd4   : > { %v358_v10 = vpop.permute.xlu0 %357  ;;  %2427 = vst [vmem:[#allocation14_spill] sm:$0xff] %v2132_v18  ;;  %v1102_v9 = vpack.c.bf16 %v2132_v18, %v2129_v38  ;;  %v791_v33 = vadd.f32 %v775_v62, %v748_v30  ;;  %v924_v37 = vadd.f32 %v908_v11, %v881_v60  ;;  %v606_v43 = vadd.f32 %v590_v27, %v423_v57 }
  0xd5   : > { %v962_v7 = vmul.f32 %v1967_v34, %v2018_v36  ;;  %v845_v45 = vadd.f32 %v829_v13, %v799_v1  ;;  %v598_v61 = vadd.f32 %v582_v15, %v415_v42  ;;  %v591_v16 = vmul.f32 %v1891_v47, %v2069_v35 }
  0xd6   : > { %v583_v28 = vmul.f32 %v1891_v47, %v2071_v54  ;;  %1498 = vmatprep.mubr.msk.bf16.mxu1 %vm1114_vm3, %v1102_v9  ;;  %v837_v32 = vadd.f32 %v821_v39, %v791_v33  ;;  %v970_v29 = vadd.f32 %v954_v25, %v924_v37  ;;  %v424_v52 = vmul.f32 %v1896_v48, %v2034_v53 }
  0xd7   : > { %v403_v19 = vpop.permute.xlu1 %402  ;;  %v784_v36 = vmul.f32 %v1918_v63, %v2034_v53  ;;  %v978_v49 = vadd.f32 %v962_v7, %v932_v22  ;;  %v917_v51 = vmul.f32 %v1952_v58, %v2034_v53  ;;  %v416_v31 = vmul.f32 %v1896_v48, %v2036_v56 }
  0xd8   : > { %v398_v55 = vpop.permute.xlu0 %397  ;;  %v776_v60 = vmul.f32 %v1918_v63, %v2036_v56  ;;  %v909_v62 = vmul.f32 %v1952_v58, %v2036_v56  ;;  %v830_v11 = vmul.f32 %v1923_v0, %v2069_v35  ;;  %v963_v27 = vmul.f32 %v1967_v34, %v2069_v35 }
  0xd9   : > { %v822_v13 = vmul.f32 %v1923_v0, %v2071_v54  ;;  %v607_v15 = vadd.f32 %v591_v16, %v424_v52  ;;  %v2169_v53 = vadd.f32 %v583_v28, %v416_v31  ;;  %v955_v30 = vmul.f32 %v1967_v34, %v2071_v54 }
  0xda   : > { %v418_v57 = vmul.f32 %v1896_v48, %v363_v24  ;;  %v2175_v56 = vmul.f32 %v1918_v63, %v363_v24  ;;  %v2178_v1 = vmul.f32 %v1952_v58, %v363_v24  ;;  %v417_v35 = vmul.f32 %v1896_v48, %v358_v10 }
  0xdb   : > { %v538_v20 = vpop.permute.xlu1 %537  ;;  %v2182_v22 = vmul.f32 %v1918_v63, %v358_v10  ;;  %v2185_v42 = vmul.f32 %v1952_v58, %v358_v10  ;;  %v426_v54 = vmul.f32 %v1896_v48, %v403_v19  ;;  %v2189_v9 = vmul.f32 %v1918_v63, %v403_v19 }
  0xdc   : > { %v534_v46 = vpop.permute.xlu0 %533  ;;  %v585_v33 = vmul.f32 %v1891_v47, %v538_v20  ;;  %v2193_v37 = vmul.f32 %v1952_v58, %v403_v19  ;;  %v425_v24 = vmul.f32 %v1896_v48, %v398_v55  ;;  %v785_v7 = vmul.f32 %v1918_v63, %v398_v55 }
  0xdd   : > { %2428 = vst [vmem:[#allocation15_spill] sm:$0xff] %v2189_v9  ;;  %v584_v16 = vmul.f32 %v1891_v47, %v534_v46  ;;  %v2199_v28 = vmul.f32 %v1952_v58, %v398_v55  ;;  %v2202_v10 = vmul.f32 %v1923_v0, %v538_v20  ;;  %v2205_v52 = vmul.f32 %v1967_v34, %v538_v20 }
  0xde   : > { %2429 = vst [vmem:[#allocation16_spill] sm:$0xff] %v2193_v37  ;;  %v2208_v31 = vmul.f32 %v1923_v0, %v534_v46  ;;  %v2211_v48 = vmul.f32 %v1967_v34, %v534_v46  ;;  %v601_v59 = vadd.f32 %v585_v33, %v418_v57 }
  0xdf   : > { %v570_v39 = vpop.permute.xlu1 %569  ;;  %2430 = vst [vmem:[#allocation17_spill] sm:$0xff] %v2205_v52  ;;  %v600_v58 = vadd.f32 %v584_v16, %v417_v35 }
  0xe0   : > { %v566_v25 = vpop.permute.xlu0 %565  ;;  %v593_v14 = vmul.f32 %v1891_v47, %v570_v39 }
  0xe1   : > { %v592_v35 = vmul.f32 %v1891_v47, %v566_v25 }
  0xe3   : > { %v709_v19 = vpop.permute.xlu1 %708 }
  0xe4   : > { %v677_v18 = vpop.permute.xlu0 %676  ;;  %v741_v38 = vmul.f32 %v1908_v50, %v709_v19  ;;  %v874_v5 = vmul.f32 %v1937_v2, %v709_v19  ;;  %v1007_v55 = vmul.f32 %v1989_v4, %v709_v19  ;;  %v2221_v19 = vmul.f32 %v1923_v0, %v570_v39 }
  0xe5   : > { %v733_v17 = vmul.f32 %v1908_v50, %v677_v18  ;;  %v866_v20 = vmul.f32 %v1937_v2, %v677_v18  ;;  %v999_v3 = vmul.f32 %v1989_v4, %v677_v18  ;;  %v2225_v18 = vmul.f32 %v1967_v34, %v570_v39 }
  0xe6   : > { %v757_v44 = vadd.f32 %v741_v38, %v606_v43  ;;  %v890_v63 = vadd.f32 %v874_v5, %v845_v45  ;;  %v1023_v46 = vadd.f32 %v1007_v55, %v978_v49  ;;  %v609_v49 = vadd.f32 %v593_v14, %v426_v54 }
  0xe7   : > { %v749_v37 = vadd.f32 %v733_v17, %v598_v61  ;;  %v882_v6 = vadd.f32 %v866_v20, %v837_v32  ;;  %v1015_v9 = vadd.f32 %v999_v3, %v970_v29  ;;  %v713_v52 = vpop.permute.xlu1 %712  ;;  %v831_v17 = vmul.f32 %v1923_v0, %v566_v25 }
  0xe8   : > { %v681_v26 = vpop.permute.xlu0 %680  ;;  %v800_v57 = vadd.f32 %v784_v36, %v757_v44  ;;  %v933_v33 = vadd.f32 %v917_v51, %v890_v63  ;;  %v742_v8 = vmul.f32 %v1908_v50, %v713_v52  ;;  %v964_v3 = vmul.f32 %v1967_v34, %v566_v25 }
  0xe9   : > { %v792_v38 = vadd.f32 %v776_v60, %v749_v37  ;;  %v925_v5 = vadd.f32 %v909_v62, %v882_v6  ;;  %v1046_v43 = vadd.f32 %v2013_v41, %v1023_v46  ;;  %v1038_v61 = vadd.f32 %v2013_v41, %v1015_v9 }
  0xea   : > { %v846_v45 = vadd.f32 %v830_v11, %v800_v57  ;;  %v979_v44 = vadd.f32 %v963_v27, %v933_v33  ;;  %v875_v63 = vmul.f32 %v1937_v2, %v713_v52  ;;  %v758_v51 = vadd.f32 %v742_v8, %v607_v15 }
  0xeb   : > { %v838_v32 = vadd.f32 %v822_v13, %v792_v38  ;;  %v689_v29 = vpop.permute.xlu1 %688  ;;  %v971_v47 = vadd.f32 %v955_v30, %v925_v5  ;;  %v734_v6 = vmul.f32 %v1908_v50, %v681_v26  ;;  %v1008_v62 = vmul.f32 %v1989_v4, %v713_v52 }
  0xec   : > { %v685_v36 = vpop.permute.xlu0 %684  ;;  %v891_v60 = vadd.f32 %v875_v63, %v846_v45  ;;  %v867_v39 = vmul.f32 %v1937_v2, %v681_v26  ;;  %v736_v11 = vmul.f32 %v1908_v50, %v689_v29  ;;  %v608_v25 = vadd.f32 %v592_v35, %v425_v24 }
  0xed   : > { %v2238_v27 = vmul.f32 %v2029_v12, %v1046_v43  ;;  %v750_v13 = vadd.f32 %v734_v6, %v2169_v53  ;;  %v1000_v9 = vmul.f32 %v1989_v4, %v681_v26  ;;  %v1061_v8 = vmul.f32 %v2029_v12, %v1038_v61 }
  0xee   : > { %v1024_v14 = vadd.f32 %v1008_v62, %v979_v44  ;;  %v883_v15 = vadd.f32 %v867_v39, %v838_v32  ;;  %v752_v30 = vadd.f32 %v736_v11, %v601_v59  ;;  %v801_v37 = vadd.f32 %v785_v7, %v758_v51  ;;  %v2434_v11 = vld [vmem:[#allocation15_spill] sm:$0xff] }
  0xef   : > { %v793_v16 = vadd.f32 %v2182_v22, %v750_v13  ;;  %v1016_v52 = vadd.f32 %v1000_v9, %v971_v47  ;;  %v735_v55 = vmul.f32 %v1908_v50, %v685_v36  ;;  %v721_v24 = vpop.permute.xlu1 %720  ;;  %v934_v20 = vadd.f32 %v2199_v28, %v891_v60  ;;  %v2435_v9 = vld [vmem:[#allocation6_spill] sm:$0xff] }
  0xf0   : > { %v717_v54 = vpop.permute.xlu0 %716  ;;  %v926_v46 = vadd.f32 %v2185_v42, %v883_v15  ;;  %v795_v53 = vadd.f32 %v2040_v40, %v752_v30  ;;  %v869_v26 = vmul.f32 %v1937_v2, %v689_v29  ;;  %v1002_v57 = vmul.f32 %v1989_v4, %v689_v29  ;;  %v2436_v30 = vld [vmem:[#allocation16_spill] sm:$0xff] }
  0xf1   : > { %v839_v59 = vadd.f32 %v2208_v31, %v793_v16  ;;  %v751_v33 = vadd.f32 %v735_v55, %v600_v58  ;;  %v868_v7 = vmul.f32 %v1937_v2, %v685_v36  ;;  %v1047_v22 = vadd.f32 %v2013_v41, %v1024_v14 }
  0xf2   : > { %v841_v35 = vadd.f32 %v2090_v23, %v795_v53  ;;  %v972_v38 = vadd.f32 %v2211_v48, %v926_v46  ;;  %v1001_v28 = vmul.f32 %v1989_v4, %v685_v36  ;;  %v1039_v42 = vadd.f32 %v2013_v41, %v1016_v52  ;;  %v2431_v36 = vld [vmem:[#allocation7_spill] sm:$0xff]  ;;  %v2438_v53 = vld [vmem:[#allocation12_spill] sm:$0xff] }
  0xf3   : > { %v794_v40 = vadd.f32 %v2175_v56, %v751_v33  ;;  %v884_v5 = vadd.f32 %v868_v7, %v839_v59  ;;  %v744_v43 = vmul.f32 %v1908_v50, %v721_v24  ;;  %v847_v31 = vadd.f32 %v831_v17, %v801_v37  ;;  %v810_v29 = vpop.permute.xlu1 %809  ;;  %v2439_v59 = vld [vmem:[#allocation8_spill] sm:$0xff] }
  0xf4   : > { %v764_v45 = vpop.permute.xlu0 %763  ;;  %v886_v58 = vadd.f32 %v2106_v21, %v841_v35  ;;  %v980_v61 = vadd.f32 %v964_v3, %v934_v20  ;;  %v743_v44 = vmul.f32 %v1908_v50, %v717_v54  ;;  %v876_v63 = vmul.f32 %v1937_v2, %v717_v54  ;;  %v2437_v20 = vld [vmem:[#allocation2_spill] sm:$0xff] }
  0xf5   : > { %v840_v23 = vadd.f32 %v2202_v10, %v794_v40  ;;  %v927_v48 = vadd.f32 %v2178_v1, %v884_v5  ;;  %v1009_v32 = vmul.f32 %v1989_v4, %v717_v54  ;;  %v1070_v56 = vmul.f32 %v2029_v12, %v1047_v22  ;;  %v2432_v10 = vld [vmem:[#allocation11_spill] sm:$0xff]  ;;  %v2433_v1 = vld [vmem:[#allocation17_spill] sm:$0xff] }
  0xf6   : > { %v929_v51 = vadd.f32 %v2431_v36, %v886_v58  ;;  %v1017_v47 = vadd.f32 %v1001_v28, %v972_v38  ;;  %v759_v6 = vadd.f32 %v743_v44, %v608_v25  ;;  %v1062_v21 = vmul.f32 %v2029_v12, %v1039_v42  ;;  %v2440_v28 = vld [vmem:[#allocation5_spill] sm:$0xff]  ;;  %v2442_v44 = vld [vmem:[#allocation4_spill] sm:$0xff] }
  0xf7   : > { %v885_v17 = vadd.f32 %v869_v26, %v840_v23  ;;  %v877_v50 = vmul.f32 %v1937_v2, %v721_v24  ;;  %v892_v3 = vadd.f32 %v876_v63, %v847_v31  ;;  %v973_v62 = vadd.f32 %v2433_v1, %v927_v48  ;;  %v898_v7 = vpop.permute.xlu1 %897 }
  0xf8   : > { %v975_v60 = vadd.f32 %v2432_v10, %v929_v51  ;;  %v1010_v39 = vmul.f32 %v1989_v4, %v721_v24  ;;  %v802_v13 = vadd.f32 %v2434_v11, %v759_v6  ;;  %v760_v15 = vadd.f32 %v744_v43, %v609_v49  ;;  %v855_v37 = vpop.permute.xlu0 %854  ;;  %v2441_v43 = vld [vmem:[#allocation3_spill] sm:$0xff] }
  0xf9   : > { %v928_v14 = vadd.f32 %v2435_v9, %v885_v17  ;;  %v935_v54 = vadd.f32 %v2436_v30, %v892_v3  ;;  %v1025_v25 = vadd.f32 %v1009_v32, %v980_v61  ;;  %v1040_v16 = vadd.f32 %v2013_v41, %v1017_v47 }
  0xfa   : > { %v833_v52 = vmul.f32 %v1923_v0, %v810_v29  ;;  %v848_v55 = vadd.f32 %v2221_v19, %v802_v13  ;;  %v787_v46 = vmul.f32 %v2437_v20, %v764_v45  ;;  %v2282_v33 = vadd.f32 %v2439_v59, %v1061_v8 }
  0xfb   : > { %v974_v26 = vadd.f32 %v2438_v53, %v928_v14  ;;  %v981_v24 = vadd.f32 %v2225_v18, %v935_v54  ;;  %v2285_v49 = vadd.f32 %v2439_v59, %v1062_v21  ;;  %v1018_v22 = vadd.f32 %v1002_v57, %v973_v62  ;;  %v989_v36 = vpop.permute.xlu1 %988 }
  0xfc   : > { %v893_v35 = vadd.f32 %v877_v50, %v848_v55  ;;  %v803_v38 = vadd.f32 %v787_v46, %v760_v15  ;;  %v920_v0 = vmul.f32 %v2440_v28, %v764_v45  ;;  %v1048_v19 = vadd.f32 %v2013_v41, %v1025_v25  ;;  %v944_v61 = vpop.permute.xlu0 %943 }
  0xfd   : > { %v1099_v42 = vpack.c.bf16 %v2285_v49, %v2282_v33  ;;  %v2293_v18 = vadd.f32 %v2439_v59, %v2238_v27  ;;  %v2296_v8 = vadd.f32 %v2439_v59, %v1070_v56  ;;  %v1026_v40 = vadd.f32 %v1010_v39, %v981_v24 }
  0xfe   : > { %v966_v5 = vmul.f32 %v1967_v34, %v810_v29  ;;  %v936_v57 = vadd.f32 %v920_v0, %v893_v35  ;;  %v1004_v58 = vmul.f32 %v1989_v4, %v2441_v43  ;;  %v849_v31 = vadd.f32 %v833_v52, %v803_v38  ;;  %v2444_v38 = vld [vmem:[#allocation10_spill] sm:$0xff] }
  0xff   : > { %1491 = vmatmul.mubr.msk.bf16.vlgmr.msra.gmra.mrb[0].mxu0 %vm1114_vm3, %v1099_v42  ;;  %v1103_v45 = vpack.c.bf16 %v2296_v8, %v2293_v18  ;;  %v1003_v27 = vmul.f32 %v1989_v4, %v2442_v44  ;;  %v878_v48 = vmul.f32 %v1937_v2, %v855_v37  ;;  %v1011_v63 = vmul.f32 %v1989_v4, %v855_v37 }
 0x100   : > { %v982_v23 = vadd.f32 %v966_v5, %v936_v57  ;;  %v1063_v32 = vmul.f32 %v2029_v12, %v1040_v16  ;;  %v1071_v29 = vmul.f32 %v2029_v12, %v1048_v19  ;;  %v921_v56 = vmul.f32 %v2440_v28, %v898_v7  ;;  %v2445_v28 = vld [vmem:[#allocation13_spill] sm:$0xff]  ;;  %v2446_v19 = vld [vmem:[#allocation14_spill] sm:$0xff] }
 0x101   : > { %1499 = vmatmul.mubr.msk.bf16.vlgmr.msra.gmra.mrb[0].mxu1 %vm1114_vm3, %v1103_v45  ;;  %v1041_v51 = vadd.f32 %v2013_v41, %v1018_v22  ;;  %v894_v47 = vadd.f32 %v878_v48, %v849_v31  ;;  %v967_v21 = vmul.f32 %v1967_v34, %v944_v61  ;;  %v1049_v17 = vadd.f32 %v2013_v41, %v1026_v40  ;;  %v2443_v22 = vld [vmem:[#allocation9_spill] sm:$0xff] }
 0x102   : > { %v1027_v6 = vadd.f32 %v1011_v63, %v982_v23  ;;  %v1019_v50 = vadd.f32 %v1003_v27, %v974_v26  ;;  %v1020_v3 = vadd.f32 %v1004_v58, %v975_v60  ;;  %v1012_v10 = vmul.f32 %v1989_v4, %v989_v36 }
 0x103   : > { %v1064_v2 = vmul.f32 %v2029_v12, %v1041_v51  ;;  %v937_v1 = vadd.f32 %v921_v56, %v894_v47  ;;  %v1072_v62 = vmul.f32 %v2029_v12, %v1049_v17  ;;  %v1086_v39 = vadd.f32 %v2439_v59, %v1063_v32 }
 0x104   : > { %v1042_v13 = vadd.f32 %v2013_v41, %v1019_v50  ;;  %v1043_v9 = vadd.f32 %v2013_v41, %v1020_v3  ;;  %v1050_v34 = vadd.f32 %v2013_v41, %v1027_v6  ;;  %v1094_v15 = vadd.f32 %v2439_v59, %v1071_v29 }
 0x105   : > { %v1087_v11 = vadd.f32 %v2439_v59, %v1064_v2  ;;  %v983_v14 = vadd.f32 %v967_v21, %v937_v1  ;;  %v2325_v60 = vadd.f32 %v2439_v59, %v1072_v62  ;;  %v1460_v35 = vmul.f32 -1.442695, %v2443_v22 }
 0x106   : > { %v1065_v30 = vmul.f32 %v2029_v12, %v1042_v13  ;;  %v1066_v37 = vmul.f32 %v2029_v12, %v1043_v9  ;;  %v1073_v52 = vmul.f32 %v2029_v12, %v1050_v34  ;;  %v1468_v0 = vmul.f32 -1.442695, %v2445_v28 }
 0x107   : > { %v1100_v4 = vpack.c.bf16 %v1087_v11, %v1086_v39  ;;  %v1028_v54 = vadd.f32 %v1012_v10, %v983_v14  ;;  %v1104_v25 = vpack.c.bf16 %v2325_v60, %v1094_v15  ;;  %v1469_v42 = vmul.f32 -1.442695, %v2446_v19 }
 0x108   : > { %v1088_v16 = vadd.f32 %v2439_v59, %v1065_v30  ;;  %v1089_v20 = vadd.f32 %v2439_v59, %v1066_v37  ;;  %v1096_v26 = vadd.f32 %v2439_v59, %v1073_v52  ;;  %1522 = vpow2.f32 %v1460_v35 }
 0x109   : > { %1494 = vmatprep.mubr.msk.bf16.mxu0 %vm1114_vm3, %v1100_v4  ;;  %v1051_v55 = vadd.f32 %v2013_v41, %v1028_v54  ;;  %1502 = vmatprep.mubr.msk.bf16.mxu1 %vm1114_vm3, %v1104_v25  ;;  %v1461_v41 = vmul.f32 -1.442695, %v2444_v38  ;;  %v1463_v40 = vmul.f32 -1.442695, %v2285_v49  ;;  %v1471_v5 = vmul.f32 -1.442695, %v2296_v8 }
 0x10a   : > { %v1101_v53 = vpack.c.bf16 %v1089_v20, %v1088_v16  ;;  %v1472_v49 = vmul.f32 -1.442695, %v1094_v15  ;;  %v1466_v63 = vmul.f32 -1.442695, %v1088_v16  ;;  %v1467_v36 = vmul.f32 -1.442695, %v1089_v20 }
 0x10b   : > { %v1074_v46 = vmul.f32 %v2029_v12, %v1051_v55  ;;  %1524 = vpow2.f32 %v1461_v41  ;;  %v1462_v12 = vmul.f32 -1.442695, %v2282_v33  ;;  %v1464_v33 = vmul.f32 -1.442695, %v1086_v39 }
 0x10c   : > { %1495 = vmatmul.mubr.msk.bf16.gmra.mrb[4].mxu0 %vm1114_vm3, %v1101_v53  ;;  %1526 = vpow2.f32 %v1468_v0  ;;  %v1474_v51 = vmul.f32 -1.442695, %v1096_v26  ;;  %v1473_v50 = vmul.f32 -1.442695, %v2325_v60 }
 0x10d   : > { %v1097_v24 = vadd.f32 %v2439_v59, %v1074_v46  ;;  %1528 = vpow2.f32 %v1469_v42  ;;  %v1470_v59 = vmul.f32 -1.442695, %v2293_v18  ;;  %v1465_v18 = vmul.f32 -1.442695, %v1087_v11  ;;  %v2353_v11 = vld [vmem:[%s2402_s6] ss:$0 sm:$0xff] }
 0x10e   : > { %1530 = vpow2.f32 %v1462_v12 }
 0x10f   : > { %v1105_v7 = vpack.c.bf16 %v1097_v24, %v1096_v26  ;;  %1532 = vpow2.f32 %v1463_v40  ;;  %v1475_v17 = vmul.f32 -1.442695, %v1097_v24 }
 0x110   : > { %1534 = vpow2.f32 %v1470_v59 }
 0x111   : > { %1503 = vmatmul.mubr.msk.bf16.gmra.mrb[4].mxu1 %vm1114_vm3, %v1105_v7  ;;  %1536 = vpow2.f32 %v1471_v5 }
 0x112   : > { %v1523_v57 = vpop.eup %1522 }
 0x113   : > { %v1288_v31 = vadd.f32 1.0, %v1523_v57 }
 0x115   : > { %v1525_v43 = vpop.eup %1524  ;;  %1538 = vrcp.f32 %v1288_v31 }
 0x116   : > { %v1527_v58 = vpop.eup %1526  ;;  %v1289_v61 = vadd.f32 1.0, %v1525_v43 }
 0x117   : > { %v1529_v45 = vpop.eup %1528  ;;  %v1296_v44 = vadd.f32 1.0, %v1527_v58 }
 0x118   : > { %v1297_v27 = vadd.f32 1.0, %v1529_v45  ;;  %v1531_v23 = vpop.eup %1530  ;;  %1540 = vrcp.f32 %v1289_v61 }
 0x119   : > { %v1533_v48 = vpop.eup %1532  ;;  %1542 = vrcp.f32 %v1296_v44  ;;  %v1290_v8 = vadd.f32 1.0, %v1531_v23 }
 0x11a   : > { %1544 = vrcp.f32 %v1297_v27  ;;  %v1535_v32 = vpop.eup %1534  ;;  %v1291_v29 = vadd.f32 1.0, %v1533_v48 }
 0x11b   : > { %1546 = vpow2.f32 %v1464_v33  ;;  %v1537_v56 = vpop.eup %1536  ;;  %v1298_v47 = vadd.f32 1.0, %v1535_v32 }
 0x11c   : > { %1548 = vpow2.f32 %v1472_v49  ;;  %v1299_v6 = vadd.f32 1.0, %v1537_v56 }
 0x11d   : > { %1550 = vpow2.f32 %v1465_v18 }
 0x11e   : > { %1552 = vrcp.f32 %v1290_v8 }
 0x11f   : > { %1554 = vpow2.f32 %v1466_v63  ;;  %v1539_v21 = vpop.eup %1538 }
 0x120   : > { %1556 = vrcp.f32 %v1291_v29 }
 0x121   : > { %1558 = vpow2.f32 %v1467_v36 }
 0x122   : > { %v1541_v2 = vpop.eup %1540  ;;  %1560 = vpow2.f32 %v1474_v51 }
 0x123   : > { %v1543_v3 = vpop.eup %1542  ;;  %1562 = vrcp.f32 %v1298_v47 }
 0x124   : > { %v1545_v10 = vpop.eup %1544  ;;  %1564 = vrcp.f32 %v1299_v6 }
 0x125   : > { %v1547_v1 = vpop.eup %1546  ;;  %1566 = vpow2.f32 %v1475_v17 }
 0x126   : > { %v1549_v62 = vpop.eup %1548  ;;  %1568 = vpow2.f32 %v1473_v50  ;;  %v1292_v38 = vadd.f32 1.0, %v1547_v1 }
 0x127   : > { %v1551_v39 = vpop.eup %1550  ;;  %v1300_v23 = vadd.f32 1.0, %v1549_v62 }
 0x128   : > { %v1553_v13 = vpop.eup %1552  ;;  %v1293_v43 = vadd.f32 1.0, %v1551_v39 }
 0x129   : > { %v1555_v9 = vpop.eup %1554 }
 0x12a   : > { %v1557_v14 = vpop.eup %1556  ;;  %v1294_v53 = vadd.f32 1.0, %v1555_v9 }
 0x12b   : > { %v1559_v4 = vpop.eup %1558 }
 0x12c   : > { %v1561_v37 = vpop.eup %1560  ;;  %v1295_v12 = vadd.f32 1.0, %v1559_v4  ;;  %1570 = vrcp.f32 %v1294_v53 }
 0x12d   : > { %v1563_v26 = vpop.eup %1562  ;;  %v1302_v61 = vadd.f32 1.0, %v1561_v37  ;;  %1572 = vrcp.f32 %v1292_v38 }
 0x12e   : > { %v1565_v41 = vpop.eup %1564  ;;  %1574 = vrcp.f32 %v1295_v12 }
 0x12f   : > { %v1567_v40 = vpop.eup %1566  ;;  %1576 = vrcp.f32 %v1293_v43 }
 0x130   : > { %v1569_v58 = vpop.eup %1568  ;;  %v1303_v48 = vadd.f32 1.0, %v1567_v40  ;;  %1578 = vrcp.f32 %v1302_v61 }
 0x131   : > { %v1301_v63 = vadd.f32 1.0, %v1569_v58  ;;  %1580 = vrcp.f32 %v1300_v23 }
 0x132   : > { %1582 = vrcp.f32 %v1303_v48 }
 0x133   : > { %1584 = vrcp.f32 %v1301_v63 }
 0x136   : > { %v1571_v47 = vpop.eup %1570 }
 0x137   : > { %v1573_v17 = vpop.eup %1572 }
 0x1d2   : > { %v1492_v34 = vpop.f32.mrb[0].mxu0 }
 0x1d3   : > { %v1186_v15 = vadd.f32 %v1492_v34, %v2353_v11  ;;  %v1177_v60 = vpop.f32.mrb[1].mxu0 }
 0x1d4   : > { %v1500_v30 = vpop.f32.mrb[0].mxu1  ;;  %v1178_v54 = vadd.f32 %v2353_v11, %v1177_v60  ;;  %v1493_v25 = vpop.f32.mrb[2].mxu0 }
 0x1d5   : > { %v1338_v16 = vmul.f32 %v1553_v13, %v1186_v15  ;;  %v1218_v52 = vadd.f32 %v1500_v30, %v2353_v11  ;;  %v1209_v55 = vpop.f32.mrb[1].mxu1  ;;  %v1189_v20 = vadd.f32 %v1493_v25, %v2353_v11  ;;  %v1180_v46 = vpop.f32.mrb[3].mxu0 }
 0x1d6   : > { %v1336_v24 = vmul.f32 %v1539_v21, %v1178_v54  ;;  %v1210_v7 = vadd.f32 %v2353_v11, %v1209_v55  ;;  %v1501_v22 = vpop.f32.mrb[2].mxu1  ;;  %v1181_v35 = vadd.f32 %v2353_v11, %v1180_v46 }
 0x1d7   : > { %v1346_v28 = vmul.f32 %v1563_v26, %v1218_v52  ;;  %v1339_v0 = vmul.f32 %v1557_v14, %v1189_v20  ;;  %v1221_v19 = vadd.f32 %v1501_v22, %v2353_v11  ;;  %v1212_v42 = vpop.f32.mrb[3].mxu1 }
 0x1d8   : > { %v1344_v59 = vmul.f32 %v1543_v3, %v1210_v7  ;;  %v1337_v5 = vmul.f32 %v1541_v2, %v1181_v35  ;;  %v1213_v57 = vadd.f32 %v2353_v11, %v1212_v42 }
 0x1d9   : > { %v1353_v45 = vadd.f32 %v1339_v0, %v1338_v16  ;;  %v1347_v31 = vmul.f32 %v1565_v41, %v1221_v19 }
 0x1da   : > { %v1352_v44 = vadd.f32 %v1337_v5, %v1336_v24  ;;  %v1345_v27 = vmul.f32 %v1545_v10, %v1213_v57  ;;  %v1575_v10 = vpop.eup %1574 }
 0x1db   : > { %v1361_v33 = vmul.f32 0.5, %v1353_v45  ;;  %v1357_v49 = vadd.f32 %v1347_v31, %v1346_v28  ;;  %v1577_v13 = vpop.eup %1576 }
 0x1dc   : > { %v1360_v18 = vmul.f32 0.5, %v1352_v44  ;;  %v1356_v8 = vadd.f32 %v1345_v27, %v1344_v59  ;;  %v1579_v15 = vpop.eup %1578 }
 0x1dd   : > { %1369 = vst.msk [vmem:[%s2367_s25 + $0x8] sm:$0xff] %vm1114_vm3, %v1361_v33  ;;  %v1365_v32 = vmul.f32 0.5, %v1357_v49  ;;  %v1581_v54 = vpop.eup %1580 }
 0x1de   : > { %1368 = vst.msk [vmem:[%s2367_s25] sm:$0xff] %vm1114_vm3, %v1360_v18  ;;  %v1364_v29 = vmul.f32 0.5, %v1356_v8  ;;  %v1583_v55 = vpop.eup %1582 }
 0x1df   : > { %1373 = vst.msk [vmem:[%s2367_s25 + $0x28] sm:$0xff] %vm1114_vm3, %v1365_v32  ;;  %v1496_v56 = vpop.f32.mrb[4].mxu0  ;;  %v1585_v26 = vpop.eup %1584 }
 0x1e0   : > { %1372 = vst.msk [vmem:[%s2367_s25 + $0x20] sm:$0xff] %vm1114_vm3, %v1364_v29  ;;  %v1202_v36 = vadd.f32 %v1496_v56, %v2353_v11  ;;  %v1193_v51 = vpop.f32.mrb[5].mxu0 }
 0x1e1   : > { %v1194_v6 = vadd.f32 %v2353_v11, %v1193_v51  ;;  %v1497_v21 = vpop.f32.mrb[6].mxu0 }
 0x1e2   : > { %v1342_v2 = vmul.f32 %v1571_v47, %v1202_v36  ;;  %v1205_v50 = vadd.f32 %v1497_v21, %v2353_v11  ;;  %v1196_v3 = vpop.f32.mrb[7].mxu0 }
 0x1e3   : > { %v1340_v1 = vmul.f32 %v1573_v17, %v1194_v6  ;;  %v1197_v62 = vadd.f32 %v2353_v11, %v1196_v3 }
 0x1e4   : > { %v1504_v39 = vpop.f32.mrb[4].mxu1  ;;  %v1343_v9 = vmul.f32 %v1575_v10, %v1205_v50 }
 0x1e5   : > { %v1234_v34 = vadd.f32 %v1504_v39, %v2353_v11  ;;  %v1225_v14 = vpop.f32.mrb[5].mxu1  ;;  %v1341_v60 = vmul.f32 %v1577_v13, %v1197_v62 }
 0x1e6   : > { %v1226_v4 = vadd.f32 %v2353_v11, %v1225_v14  ;;  %v1505_v30 = vpop.f32.mrb[6].mxu1  ;;  %v1355_v25 = vadd.f32 %v1343_v9, %v1342_v2 }
 0x1e7   : > { %v1350_v37 = vmul.f32 %v1579_v15, %v1234_v34  ;;  %v1237_v16 = vadd.f32 %v1505_v30, %v2353_v11  ;;  %v1228_v52 = vpop.f32.mrb[7].mxu1  ;;  %v1354_v20 = vadd.f32 %v1341_v60, %v1340_v1 }
 0x1e8   : > { %v1348_v46 = vmul.f32 %v1581_v54, %v1226_v4  ;;  %v1229_v53 = vadd.f32 %v2353_v11, %v1228_v52  ;;  %v1363_v24 = vmul.f32 0.5, %v1355_v25 }
 0x1e9   : > { %v1351_v7 = vmul.f32 %v1583_v55, %v1237_v16  ;;  %v1362_v22 = vmul.f32 0.5, %v1354_v20 }
 0x1ea   : > { %v1349_v35 = vmul.f32 %v1585_v26, %v1229_v53  ;;  %1371 = vst.msk [vmem:[%s2367_s25 + $0x18] sm:$0xff] %vm1114_vm3, %v1363_v24 }
 0x1eb   : > { %v1359_v38 = vadd.f32 %v1351_v7, %v1350_v37  ;;  %1370 = vst.msk [vmem:[%s2367_s25 + $0x10] sm:$0xff] %vm1114_vm3, %v1362_v22 }
 0x1ec   : > { %v1358_v41 = vadd.f32 %v1349_v35, %v1348_v46 }
 0x1ed   : > { %v1367_v28 = vmul.f32 0.5, %v1359_v38 }
 0x1ee   : > { %v1366_v0 = vmul.f32 0.5, %v1358_v41 }
 0x1ef   : > { %1375 = vst.msk [vmem:[%s2367_s25 + $0x38] sm:$0xff] %vm1114_vm3, %v1367_v28 }
 0x1f0   : > { %1374 = vst.msk [vmem:[%s2367_s25 + $0x30] sm:$0xff] %vm1114_vm3, %v1366_v0 }
 0x1f1 PF: > { %s17_s24 = sadd.s32 1, %s1592_s24  }
 0x1f2   : > { %p14_p4 = scmp.ge.s32.totalorder %s17_s24, 4  }
 0x1f4   :  { %16 = sbr.rel (!%p14_p4) target bundleno = 1 (0x1), region = 78 }

// kernel: _lambda_.11
= control target key start
LH: loop header
LB: loop body
LE: loop exit
PB: predicated region body
PF: predicated region fallthrough
CT: control target
= control target key end

     0   :  { %s1840_s24 = smov 0   ;;  %s2116_s0 = inlined_call_operand.vmem [shape: f32[2,10,10,8], index: 0, kind: input, shape index: {}]   ;;  %s2117_s1 = inlined_call_operand.vmem [shape: f32[9,8,16], index: 1, kind: input, shape index: {}]   ;;  %s2118_s2 = inlined_call_operand.vmem [shape: f32[1,16], index: 2, kind: input, shape index: {}]   ;;  %s2119_s3 = inlined_call_operand.vmem [shape: f32[1,16], index: 3, kind: input, shape index: {}]   ;;  %s2120_s4 = inlined_call_operand.vmem [shape: f32[1,16], index: 4, kind: input, shape index: {}]   ;;  %s2121_s5 = inlined_call_operand.vmem [shape: bf16[16,16], index: 5, kind: input, shape index: {}]   ;;  %s2122_s6 = inlined_call_operand.vmem [shape: f32[1,16], index: 6, kind: input, shape index: {}]   ;;  %s2123_s7 = inlined_call_operand.vmem [shape: f32[2,4,8,16], index: 7, kind: output, shape index: {}]  }
   0x1 LB: > { %s1463_s25 = sadd.s32 4294967295, %s1798_s24   ;;  %p1467_p0 = scmp.ge.s32.totalorder %s1798_s24, 1  ;;  %s1798_s24 = sphi %s1840_s24, %s17_s24  }
   0x2   : > { %p237_p1 = scmp.lt.s32.totalorder %s1798_s24, 3 }
   0x4   : > { %p238_p2 = pnand %p1467_p0, %p237_p1 }
   0x5   : > { %v304_v0 = vld [vmem:[%s2117_s1 + $0x20] sm:$0xff] (!%p238_p2)  ;;  %vm381_vm0 = vcmask (!%p238_p2), 1043456   ;;  %v301_v1 = vld [vmem:[%s2117_s1 + $0x8] sm:$0xff] (!%p238_p2)  ;;  %p269_p3 = scmp.lt.s32.totalorder (!%p238_p2), %s1463_s25, 1  ;;  %vm330_vm1 = vcmask (!%p238_p2), 1046528   ;;  %vm368_vm2 = vcmask (!%p238_p2), 64512  }
   0x6   : > { %241 = sbr.rel (%p238_p2) target bundleno = 548 (0x224), region = 48  ;;  %v759_v2 = vpack.c.bf16 (!%p238_p2), %v304_v0, %v304_v0  ;;  %v367_v3 = vpack.c.bf16 (!%p238_p2), %v301_v1, %v301_v1  ;;  %v305_v4 = vld [vmem:[%s2117_s1 + $0x28] sm:$0xff] (!%p238_p2)  ;;  %v300_v5 = vld [vmem:[%s2117_s1] sm:$0xff] (!%p238_p2)  ;;  %vm530_vm3 = vcmask (!%p238_p2), 1045504   ;;  %v306_v17 = vld [vmem:[%s2117_s1 + $0x30] sm:$0xff] (!%p238_p2)  ;;  %vm1262_vm4 = vcmask (!%p238_p2), 130048  }
   0x7   : > { %v856_v6 = vpack.c.bf16 (!%p238_p2), %v305_v4, %v305_v4  ;;  %v313_v7 = vpack.c.bf16 (!%p238_p2), %v300_v5, %v300_v5  ;;  %v302_v22 = vld [vmem:[%s2117_s1 + $0x10] sm:$0xff] (!%p238_p2)  ;;  %v1943_v46 = vpack.c.bf16 (!%p238_p2), %v306_v17, %v306_v17 }
   0x8   : > { %1745 = vmatprep.subr.msk.bf16.mxu0 (!%p238_p2), %vm381_vm0, %v759_v2  ;;  %1741 = vmatprep.subr.msk.bf16.mxu1 (!%p238_p2), %vm381_vm0, %v367_v3  ;;  %v773_v8 = vsel (!%p238_p2), %vm381_vm0, %v759_v2, 0  ;;  %v383_v9 = vsel (!%p238_p2), %vm381_vm0, %v367_v3, 0  ;;  %v1945_v47 = vpack.c.bf16 (!%p238_p2), %v302_v22, %v302_v22 }
   0x9   : > { %1618 = vmatpush3.bf16.msra.mxu0 (!%p238_p2), %v773_v8  ;;  %1578 = vmatpush3.bf16.msra.mxu1 (!%p238_p2), %v383_v9  ;;  %v870_v21 = vsel (!%p238_p2), %vm381_vm0, %v856_v6, 0  ;;  %v463_v33 = vsel (!%p238_p2), %vm381_vm0, %v313_v7, 0 }
   0xa   : > { %1746 = vmatprep.subr.msk.bf16.mxu0 (!%p238_p2), %vm381_vm0, %v856_v6  ;;  %1742 = vmatprep.subr.msk.bf16.mxu1 (!%p238_p2), %vm381_vm0, %v313_v7 }
   0xd   : > { %s2125_s25 = smov (!%p269_p3, %s1463_s25), 1 }
   0xe   : > { %s1750_s11 = smul.u32 160, %s2125_s25 }
  0x10   : > { %s1872_s14 = scalar_lea.vmem %s2116_s0, %s1750_s11 }
  0x11   : > { %v1875_v10 = vld [vmem:[%s1872_s14] sm:$0xff]  ;;  %v1878_v11 = vld [vmem:[%s1872_s14 + $0x8] sm:$0x3]  ;;  %v1881_v12 = vld [vmem:[%s1872_s14 + $0x10] sm:$0xff] }
  0x12   : > { %v1884_v13 = vld [vmem:[%s1872_s14 + $0x18] sm:$0x3]  ;;  %v331_v14 = vrot.slane %v1875_v10, 1  ;;  %v332_v15 = vrot.slane %v1878_v11, 1  ;;  %v334_v16 = vrot.slane %v1881_v12, 1  ;;  %v1894_v19 = vld [vmem:[%s1872_s14 + $0x20] sm:$0xff] }
  0x13   : > { %v335_v18 = vrot.slane %v1884_v13, 1  ;;  %v1897_v20 = vld [vmem:[%s1872_s14 + $0x28] sm:$0x3]  ;;  %v1905_v24 = vld [vmem:[%s1872_s14 + $0x30] sm:$0xff]  ;;  %v1908_v25 = vld [vmem:[%s1872_s14 + $0x38] sm:$0x3] }
  0x14   : > { %v333_v23 = vsel %vm330_vm1, %v331_v14, %v332_v15  ;;  %v1911_v26 = vld [vmem:[%s1872_s14 + $0x40] sm:$0xff]  ;;  %v337_v27 = vrot.slane %v1894_v19, 1  ;;  %v338_v28 = vrot.slane %v1897_v20, 1  ;;  %v1917_v30 = vld [vmem:[%s1872_s14 + $0x48] sm:$0x3]  ;;  %v340_v31 = vrot.slane %v1905_v24, 1 }
  0x15   : > { %v336_v29 = vsel %vm330_vm1, %v334_v16, %v335_v18  ;;  %v341_v32 = vrot.slane %v1908_v25, 1  ;;  %v343_v36 = vrot.slane %v1911_v26, 1  ;;  %v344_v37 = vrot.slane %v1917_v30, 1  ;;  %v1926_v38 = vld [vmem:[%s1872_s14 + $0x50] sm:$0xff]  ;;  %v1929_v39 = vld [vmem:[%s1872_s14 + $0x58] sm:$0x3] }
  0x16   : > { %v363_v34 = vpack.c.bf16 %v336_v29, %v333_v23  ;;  %v339_v35 = vsel %vm330_vm1, %v337_v27, %v338_v28  ;;  %v1932_v40 = vld [vmem:[%s1872_s14 + $0x60] sm:$0xff]  ;;  %v535_v41 = vrot.slane %v1884_v13, 2  ;;  %v293_v43 = vld [vmem:[%s1872_s14 + $0x68] sm:$0x3]  ;;  %v1938_v44 = vld [vmem:[%s1872_s14 + $0x70] sm:$0xff]  ;;  %v538_v50 = vrot.slane %v1897_v20, 2 }
  0x17   : > { %v342_v42 = vsel %vm330_vm1, %v340_v31, %v341_v32  ;;  %v1941_v45 = vld [vmem:[%s1872_s14 + $0x78] sm:$0x3]  ;;  %v345_v48 = vsel %vm330_vm1, %v343_v36, %v344_v37  ;;  %v755_v51 = vpack.c.bf16 %v339_v35, %v336_v29  ;;  %v1953_v52 = vld [vmem:[%s1872_s14 + $0x80] sm:$0xff]  ;;  %v1956_v53 = vld [vmem:[%s1872_s14 + $0x88] sm:$0x3]  ;;  %v346_v55 = vrot.slane %v1926_v38, 1 }
  0x18   : > { %1579 = vmatprep.mubr.msk.bf16.mxu1 %vm368_vm2, %v363_v34  ;;  %v1949_v49 = vpack.c.bf16 %v342_v42, %v339_v35  ;;  %v756_v54 = vpack.c.bf16 %v345_v48, %v342_v42  ;;  %v347_v56 = vrot.slane %v1929_v39, 1  ;;  %v349_v57 = vrot.slane %v1932_v40, 1 }
  0x19   : > { %1619 = vmatprep.mubr.msk.bf16.mxu0 %vm368_vm2, %v755_v51  ;;  %v350_v58 = vrot.slane %v293_v43, 1  ;;  %v352_v59 = vrot.slane %v1938_v44, 1  ;;  %v353_v60 = vrot.slane %v1941_v45, 1  ;;  %v751_v61 = vrot.slane %v1953_v52, 1 }
  0x1a   : > { %1580 = vmatmul.mubr.msk.bf16.vlgmr.msra.gmra.mrb[0].mxu1 %vm368_vm2, %v1949_v49  ;;  %1620 = vmatmul.mubr.msk.bf16.vlgmr.msra.gmra.mrb[0].mxu0 %vm368_vm2, %v756_v54  ;;  %v348_v62 = vsel %vm330_vm1, %v346_v55, %v347_v56  ;;  %v752_v63 = vrot.slane %v1956_v53, 1  ;;  %v534_v0 = vrot.slane %v1881_v12, 2  ;;  %v537_v1 = vrot.slane %v1894_v19, 2 }
  0x1b   : > { %1588 = vmatpush3.bf16.msra.mxu1 %v463_v33  ;;  %1628 = vmatpush3.bf16.msra.mxu0 %v870_v21  ;;  %v1972_v2 = vpack.c.bf16 %v348_v62, %v345_v48  ;;  %v351_v3 = vsel %vm330_vm1, %v349_v57, %v350_v58  ;;  %v354_v4 = vsel %vm330_vm1, %v352_v59, %v353_v60  ;;  %v541_v13 = vrot.slane %v1908_v25, 2  ;;  %v307_v33 = vld [vmem:[%s2117_s1 + $0x38] sm:$0xff]  ;;  %v308_v57 = vld [vmem:[%s2117_s1 + $0x40] sm:$0xff] }
  0x1c   : > { %1743 = vmatprep.subr.msk.bf16.mxu1 %vm381_vm0, %v1945_v47  ;;  %v757_v5 = vpack.c.bf16 %v351_v3, %v348_v62  ;;  %v1979_v6 = vsel %vm330_vm1, %v751_v61, %v752_v63  ;;  %v536_v7 = vsel %vm530_vm3, %v534_v0, %v535_v41  ;;  %1747 = vmatprep.subr.msk.bf16.mxu0 %vm381_vm0, %v1943_v46  ;;  %v544_v16 = vrot.slane %v1917_v30, 2  ;;  %v298_v62 = vld [vmem:[%s1872_s14 + $0x90] sm:$0xff] }
  0x1d   : > { %1583 = vmatprep.mubr.msk.bf16.mxu1 %vm368_vm2, %v1972_v2  ;;  %v1986_v8 = vpack.c.bf16 %v354_v4, %v351_v3  ;;  %v539_v9 = vsel %vm530_vm3, %v537_v1, %v538_v50  ;;  %v758_v14 = vpack.c.bf16 %v1979_v6, %v354_v4  ;;  %v309_v15 = vpack.c.bf16 %v1881_v12, %v1875_v10  ;;  %v299_v3 = vld [vmem:[%s1872_s14 + $0x98] sm:$0x3]  ;;  %s1526_s14 = sshll.u32 %s2125_s25, 5 }
  0x1e   : > { %1623 = vmatprep.mubr.msk.bf16.mxu0 %vm368_vm2, %v757_v5  ;;  %v540_v17 = vrot.slane %v1905_v24, 2  ;;  %v543_v18 = vrot.slane %v1911_v26, 2  ;;  %v852_v20 = vpack.c.bf16 %v539_v9, %v536_v7  ;;  %v546_v21 = vrot.slane %v1926_v38, 2  ;;  %s278_s17 = scalar_lea.vmem %s2123_s7, %s1526_s14 }
  0x1f   : > { %v547_v22 = vrot.slane %v1929_v39, 2  ;;  %v549_v23 = vrot.slane %v1932_v40, 2  ;;  %v550_v25 = vrot.slane %v293_v43, 2  ;;  %v531_v31 = vrot.slane %v1875_v10, 2  ;;  %v303_v39 = vld [vmem:[%s2117_s1 + $0x18] sm:$0xff] }
  0x20   : > { %v542_v27 = vsel %vm530_vm3, %v540_v17, %v541_v13  ;;  %v545_v28 = vsel %vm530_vm3, %v543_v18, %v544_v16  ;;  %v310_v32 = vpack.c.bf16 %v1905_v24, %v1894_v19  ;;  %v532_v34 = vrot.slane %v1878_v11, 2 }
  0x21   : > { %v548_v29 = vsel %vm530_vm3, %v546_v21, %v547_v22  ;;  %v551_v30 = vsel %vm530_vm3, %v549_v23, %v550_v25  ;;  %v853_v35 = vpack.c.bf16 %v545_v28, %v542_v27  ;;  %v311_v36 = vpack.c.bf16 %v1926_v38, %v1911_v26  ;;  %v1508_v23 = vld [vmem:[%s2119_s3] ss:$0 sm:$0xff] }
  0x22   : > { %1584 = vmatmul.mubr.msk.bf16.gmra.mrb[4].mxu1 %vm368_vm2, %v1986_v8  ;;  %1624 = vmatmul.mubr.msk.bf16.gmra.mrb[4].mxu0 %vm368_vm2, %v758_v14  ;;  %v552_v37 = vrot.slane %v1938_v44, 2  ;;  %v854_v10 = vpack.c.bf16 %v551_v30, %v548_v29  ;;  %v553_v41 = vrot.slane %v1941_v45, 2  ;;  %v848_v42 = vrot.slane %v1953_v52, 2 }
  0x23   : > { %1589 = vmatprep.mubr.msk.bf16.mxu1 %vm368_vm2, %v309_v15  ;;  %1629 = vmatprep.mubr.msk.bf16.mxu0 %vm368_vm2, %v852_v20  ;;  %v849_v43 = vrot.slane %v1956_v53, 2  ;;  %v951_v11 = vsel %vm381_vm0, %v1943_v46, 0  ;;  %v1033_v48 = vpack.c.bf16 %v307_v33, %v307_v33  ;;  %v581_v50 = vsel %vm381_vm0, %v1945_v47, 0  ;;  %v1507_v20 = vld [vmem:[%s2118_s2] ss:$0 sm:$0xff] }
  0x24   : > { %v660_v51 = vpack.c.bf16 %v303_v39, %v303_v39  ;;  %v554_v45 = vsel %vm530_vm3, %v552_v37, %v553_v41  ;;  %v533_v46 = vsel %vm530_vm3, %v531_v31, %v532_v34  ;;  %v312_v47 = vpack.c.bf16 %v1938_v44, %v1932_v40 }
  0x25   : > { %v850_v53 = vsel %vm530_vm3, %v848_v42, %v849_v43  ;;  %v563_v55 = vpack.c.bf16 %v536_v7, %v533_v46  ;;  %v564_v56 = vpack.c.bf16 %v542_v27, %v539_v9  ;;  %v565_v58 = vpack.c.bf16 %v548_v29, %v545_v28 }
  0x26   : > { %v855_v54 = vpack.c.bf16 %v850_v53, %v554_v45  ;;  %v1038_v59 = vsel %vm381_vm0, %v1033_v48, 0  ;;  %v1118_v60 = vpack.c.bf16 %v308_v57, %v308_v57  ;;  %v674_v61 = vsel %vm381_vm0, %v660_v51, 0 }
  0x27   : > { %v566_v63 = vpack.c.bf16 %v554_v45, %v551_v30  ;;  %v945_v0 = vpack.c.bf16 %v298_v62, %v1953_v52  ;;  %v656_v1 = vpack.c.bf16 %v1894_v19, %v1881_v12  ;;  %v657_v4 = vpack.c.bf16 %v1911_v26, %v1905_v24 }
  0x28   : > { %v658_v5 = vpack.c.bf16 %v1932_v40, %v1926_v38  ;;  %v1028_v7 = vrot.slane %v298_v62, 1  ;;  %v1029_v9 = vrot.slane %v299_v3, 1  ;;  %v1123_v12 = vsel %vm381_vm0, %v1118_v60, 0 }
  0x29   : > { %v659_v24 = vpack.c.bf16 %v1953_v52, %v1938_v44  ;;  %v1113_v38 = vrot.slane %v298_v62, 2  ;;  %v1114_v40 = vrot.slane %v299_v3, 2  ;;  %v1759_v44 = vld [vmem:[%s2121_s5] sm:$0xff]  }
  0x2a   : > { %1590 = vmatmul.mubr.msk.bf16.vlgmr.msra.gmra.mrb[0].mxu1 %vm368_vm2, %v310_v32  ;;  %1630 = vmatmul.mubr.msk.bf16.vlgmr.msra.gmra.mrb[0].mxu0 %vm368_vm2, %v853_v35  ;;  %v1030_v19 = vsel %vm330_vm1, %v1028_v7, %v1029_v9  ;;  %v1509_v35 = vld [vmem:[%s2120_s4] ss:$0 sm:$0xff] }
  0x2b   : > { %1593 = vmatprep.mubr.msk.bf16.mxu1 %vm368_vm2, %v311_v36  ;;  %1638 = vmatpush3.bf16.msra.mxu0 %v951_v11  ;;  %v1032_v26 = vpack.c.bf16 %v1030_v19, %v1979_v6 }
  0x2c   : > { %1633 = vmatprep.mubr.msk.bf16.mxu0 %vm368_vm2, %v854_v10  ;;  %1598 = vmatpush3.bf16.msra.mxu1 %v581_v50 }
  0x2d   : > { %1748 = vmatprep.subr.msk.bf16.mxu0 %vm381_vm0, %v1033_v48  ;;  %1744 = vmatprep.subr.msk.bf16.mxu1 %vm381_vm0, %v660_v51 }
  0x32   : > { %1594 = vmatmul.mubr.msk.bf16.gmra.mrb[4].mxu1 %vm368_vm2, %v312_v47  ;;  %1634 = vmatmul.mubr.msk.bf16.gmra.mrb[4].mxu0 %vm368_vm2, %v855_v54 }
  0x33   : > { %1599 = vmatprep.mubr.msk.bf16.mxu1 %vm368_vm2, %v563_v55  ;;  %1639 = vmatprep.mubr.msk.bf16.mxu0 %vm368_vm2, %v310_v32 }
  0x3a   : > { %1600 = vmatmul.mubr.msk.bf16.vlgmr.msra.gmra.mrb[0].mxu1 %vm368_vm2, %v564_v56  ;;  %1640 = vmatmul.mubr.msk.bf16.vlgmr.msra.gmra.mrb[0].mxu0 %vm368_vm2, %v311_v36 }
  0x3b   : > { %1603 = vmatprep.mubr.msk.bf16.mxu1 %vm368_vm2, %v565_v58  ;;  %1648 = vmatpush3.bf16.msra.mxu0 %v1038_v59 }
  0x3c   : > { %1643 = vmatprep.mubr.msk.bf16.mxu0 %vm368_vm2, %v312_v47  ;;  %1608 = vmatpush3.bf16.msra.mxu1 %v674_v61 }
  0x3d   : > { %1749 = vmatprep.subr.msk.bf16.mxu0 %vm381_vm0, %v1118_v60  ;;  %1667 = vmatprep.subr.bf16.mxu1 %v1759_v44 }
  0x42   : > { %1604 = vmatmul.mubr.msk.bf16.gmra.mrb[4].mxu1 %vm368_vm2, %v566_v63  ;;  %1644 = vmatmul.mubr.msk.bf16.gmra.mrb[4].mxu0 %vm368_vm2, %v945_v0 }
  0x43   : > { %1609 = vmatprep.mubr.msk.bf16.mxu1 %vm368_vm2, %v656_v1  ;;  %1649 = vmatprep.mubr.msk.bf16.mxu0 %vm368_vm2, %v1949_v49  ;;  %v1115_v49 = vsel %vm530_vm3, %v1113_v38, %v1114_v40 }
  0x4a   : > { %1610 = vmatmul.mubr.msk.bf16.vlgmr.msra.gmra.mrb[0].mxu1 %vm368_vm2, %v657_v4  ;;  %1650 = vmatmul.mubr.msk.bf16.vlgmr.msra.gmra.mrb[0].mxu0 %vm368_vm2, %v1972_v2  ;;  %v1117_v2 = vpack.c.bf16 %v1115_v49, %v850_v53 }
  0x4b   : > { %1613 = vmatprep.mubr.msk.bf16.mxu1 %vm368_vm2, %v658_v5  ;;  %1658 = vmatpush3.bf16.msra.mxu0 %v1123_v12 }
  0x4c   : > { %1653 = vmatprep.mubr.msk.bf16.mxu0 %vm368_vm2, %v1986_v8  ;;  %1668 = vmatpush3.bf16.msra.mxu1 %v1759_v44 }
  0x52   : > { %1614 = vmatmul.mubr.msk.bf16.gmra.mrb[4].mxu1 %vm368_vm2, %v659_v24  ;;  %1654 = vmatmul.mubr.msk.bf16.gmra.mrb[4].mxu0 %vm368_vm2, %v1032_v26 }
  0x53   : > { %1659 = vmatprep.mubr.msk.bf16.mxu0 %vm368_vm2, %v564_v56 }
  0x5a   : > { %1660 = vmatmul.mubr.msk.bf16.vlgmr.msra.gmra.mrb[0].mxu0 %vm368_vm2, %v565_v58 }
  0x5b   : > { %1663 = vmatprep.mubr.msk.bf16.mxu0 %vm368_vm2, %v566_v63 }
  0x62   : > { %1664 = vmatmul.mubr.msk.bf16.gmra.mrb[4].mxu0 %vm368_vm2, %v1117_v2 }
 0x11d   : > { %v1611_v52 = vpop.f32.mrb[0].mxu1 }
 0x11e   : > { %v710_v6 = vpop.f32.mrb[1].mxu1 }
 0x11f   : > { %v1612_v8 = vpop.f32.mrb[2].mxu1 }
 0x120   : > { %v713_v13 = vpop.f32.mrb[3].mxu1 }
 0x125   : > { %v1615_v14 = vpop.f32.mrb[4].mxu1 }
 0x126   : > { %v726_v15 = vpop.f32.mrb[5].mxu1 }
 0x127   : > { %v1616_v16 = vpop.f32.mrb[6].mxu1 }
 0x128   : > { %v729_v17 = vpop.f32.mrb[7].mxu1 }
 0x12d   : > { %v1661_v18 = vpop.f32.mrb[0].mxu0 }
 0x12e   : > { %v1677_v21 = vadd.f32 %v1661_v18, %v1611_v52  ;;  %v1159_v22 = vpop.f32.mrb[1].mxu0 }
 0x12f   : > { %v1678_v25 = vadd.f32 %v1159_v22, %v710_v6  ;;  %v1662_v27 = vpop.f32.mrb[2].mxu0 }
 0x130   : > { %v1207_v28 = vadd.f32 %v1677_v21, %v1507_v20  ;;  %v1679_v29 = vadd.f32 %v1662_v27, %v1612_v8  ;;  %v1162_v30 = vpop.f32.mrb[3].mxu0  ;;  %v1510_v27 = vld [vmem:[%s2122_s6] ss:$0 sm:$0xff] }
 0x131   : > { %v1205_v31 = vadd.f32 %v1678_v25, %v1507_v20  ;;  %v1680_v32 = vadd.f32 %v1162_v30, %v713_v13 }
 0x132   : > { %v1222_v33 = vmul.f32 %v1508_v23, %v1207_v28  ;;  %v1208_v34 = vadd.f32 %v1679_v29, %v1507_v20 }
 0x133   : > { %v1206_v36 = vadd.f32 %v1680_v32, %v1507_v20  ;;  %v1220_v37 = vmul.f32 %v1508_v23, %v1205_v31 }
 0x134   : > { %v1223_v39 = vmul.f32 %v1508_v23, %v1208_v34  ;;  %v1237_v42 = vadd.f32 %v1509_v35, %v1222_v33 }
 0x135   : > { %v1221_v10 = vmul.f32 %v1508_v23, %v1206_v36  ;;  %v1665_v41 = vpop.f32.mrb[4].mxu0  ;;  %v1235_v53 = vadd.f32 %v1509_v35, %v1220_v37 }
 0x136   : > { %v1238_v43 = vadd.f32 %v1509_v35, %v1223_v39  ;;  %v1681_v11 = vadd.f32 %v1665_v41, %v1615_v14  ;;  %v1175_v48 = vpop.f32.mrb[5].mxu0  ;;  %v1518_v12 = vmul.f32 -1.442695, %v1237_v42 }
 0x137   : > { %v1236_v50 = vadd.f32 %v1509_v35, %v1221_v10  ;;  %v1682_v51 = vadd.f32 %v1175_v48, %v726_v15  ;;  %v1666_v45 = vpop.f32.mrb[6].mxu0  ;;  %v1516_v19 = vmul.f32 -1.442695, %v1235_v53 }
 0x138   : > { %v1244_v46 = vpack.c.bf16 %v1238_v43, %v1237_v42  ;;  %v1211_v47 = vadd.f32 %v1681_v11, %v1507_v20  ;;  %v1178_v54 = vpop.f32.mrb[7].mxu0  ;;  %v1683_v56 = vadd.f32 %v1666_v45, %v1616_v16  ;;  %v1519_v24 = vmul.f32 -1.442695, %v1238_v43 }
 0x139   : > { %v1209_v55 = vadd.f32 %v1682_v51, %v1507_v20  ;;  %v1684_v57 = vadd.f32 %v1178_v54, %v729_v17  ;;  %v1243_v58 = vpack.c.bf16 %v1236_v50, %v1235_v53  ;;  %v1517_v26 = vmul.f32 -1.442695, %v1236_v50 }
 0x13a   : > { %v1226_v59 = vmul.f32 %v1508_v23, %v1211_v47  ;;  %v1212_v60 = vadd.f32 %v1683_v56, %v1507_v20  ;;  %1760 = vpow2.f32 %v1518_v12 }
 0x13b   : > { %v1224_v61 = vmul.f32 %v1508_v23, %v1209_v55  ;;  %v1210_v62 = vadd.f32 %v1684_v57, %v1507_v20  ;;  %1669 = vmatprep.mubr.msk.bf16.mxu1 %vm1262_vm4, %v1243_v58  ;;  %1762 = vpow2.f32 %v1516_v19 }
 0x13c   : > { %v1227_v63 = vmul.f32 %v1508_v23, %v1212_v60  ;;  %1670 = vmatmul.mubr.msk.bf16.vlgmr.msra.gmra.mrb[8].mxu1 %vm1262_vm4, %v1244_v46  ;;  %v1241_v1 = vadd.f32 %v1509_v35, %v1226_v59  ;;  %1764 = vpow2.f32 %v1519_v24 }
 0x13d   : > { %v1225_v0 = vmul.f32 %v1508_v23, %v1210_v62  ;;  %v1239_v4 = vadd.f32 %v1509_v35, %v1224_v61  ;;  %1766 = vpow2.f32 %v1517_v26 }
 0x13e   : > { %v1242_v3 = vadd.f32 %v1509_v35, %v1227_v63  ;;  %v1522_v38 = vmul.f32 -1.442695, %v1241_v1 }
 0x13f   : > { %v1240_v5 = vadd.f32 %v1509_v35, %v1225_v0  ;;  %v1520_v40 = vmul.f32 -1.442695, %v1239_v4 }
 0x140   : > { %v1246_v7 = vpack.c.bf16 %v1242_v3, %v1241_v1  ;;  %v1523_v49 = vmul.f32 -1.442695, %v1242_v3  ;;  %1768 = vpow2.f32 %v1522_v38 }
 0x141   : > { %v1245_v9 = vpack.c.bf16 %v1240_v5, %v1239_v4  ;;  %v1521_v2 = vmul.f32 -1.442695, %v1240_v5  ;;  %1770 = vpow2.f32 %v1520_v40 }
 0x142   : > { %1772 = vpow2.f32 %v1523_v49 }
 0x143   : > { %1673 = vmatprep.mubr.msk.bf16.mxu1 %vm1262_vm4, %v1245_v9  ;;  %1774 = vpow2.f32 %v1521_v2 }
 0x144   : > { %1674 = vmatmul.mubr.msk.bf16.gmra.mrb[12].mxu1 %vm1262_vm4, %v1246_v7  ;;  %v1761_v44 = vpop.eup %1760 }
 0x145   : > { %v1763_v52 = vpop.eup %1762  ;;  %v1366_v13 = vadd.f32 1.0, %v1761_v44 }
 0x146   : > { %v1765_v6 = vpop.eup %1764  ;;  %v1364_v14 = vadd.f32 1.0, %v1763_v52 }
 0x147   : > { %v1767_v8 = vpop.eup %1766  ;;  %v1367_v15 = vadd.f32 1.0, %v1765_v6  ;;  %1776 = vrcp.f32 %v1366_v13 }
 0x148   : > { %v1365_v16 = vadd.f32 1.0, %v1767_v8  ;;  %1778 = vrcp.f32 %v1364_v14 }
 0x149   : > { %1780 = vrcp.f32 %v1367_v15 }
 0x14a   : > { %v1769_v17 = vpop.eup %1768  ;;  %1782 = vrcp.f32 %v1365_v16 }
 0x14b   : > { %v1771_v18 = vpop.eup %1770  ;;  %v1370_v22 = vadd.f32 1.0, %v1769_v17 }
 0x14c   : > { %v1773_v20 = vpop.eup %1772  ;;  %v1368_v23 = vadd.f32 1.0, %v1771_v18 }
 0x14d   : > { %v1775_v21 = vpop.eup %1774  ;;  %v1371_v25 = vadd.f32 1.0, %v1773_v20  ;;  %1784 = vrcp.f32 %v1370_v22 }
 0x14e   : > { %v1369_v28 = vadd.f32 1.0, %v1775_v21  ;;  %1786 = vrcp.f32 %v1368_v23 }
 0x14f   : > { %1788 = vrcp.f32 %v1371_v25 }
 0x150   : > { %1790 = vrcp.f32 %v1369_v28 }
 0x151   : > { %v1777_v32 = vpop.eup %1776 }
 0x152   : > { %v1779_v35 = vpop.eup %1778 }
 0x153   : > { %v1781_v10 = vpop.eup %1780 }
 0x154   : > { %v1783_v43 = vpop.eup %1782 }
 0x157   : > { %v1785_v54 = vpop.eup %1784 }
 0x158   : > { %v1787_v58 = vpop.eup %1786 }
 0x159   : > { %v1789_v62 = vpop.eup %1788 }
 0x15a   : > { %v1791_v1 = vpop.eup %1790 }
 0x20f   : > { %v1671_v29 = vpop.f32.mrb[8].mxu1 }
 0x210   : > { %v1318_v30 = vadd.f32 %v1671_v29, %v1510_v27  ;;  %v1309_v31 = vpop.f32.mrb[9].mxu1 }
 0x211   : > { %v1310_v33 = vadd.f32 %v1510_v27, %v1309_v31  ;;  %v1672_v34 = vpop.f32.mrb[10].mxu1 }
 0x212   : > { %v1390_v36 = vmul.f32 %v1777_v32, %v1318_v30  ;;  %v1321_v37 = vadd.f32 %v1672_v34, %v1510_v27  ;;  %v1312_v39 = vpop.f32.mrb[11].mxu1 }
 0x213   : > { %v1388_v41 = vmul.f32 %v1779_v35, %v1310_v33  ;;  %v1313_v42 = vadd.f32 %v1510_v27, %v1312_v39 }
 0x214   : > { %v1391_v11 = vmul.f32 %v1781_v10, %v1321_v37 }
 0x215   : > { %v1389_v48 = vmul.f32 %v1783_v43, %v1313_v42 }
 0x216   : > { %v1397_v50 = vadd.f32 %v1391_v11, %v1390_v36 }
 0x217   : > { %v1396_v51 = vadd.f32 %v1389_v48, %v1388_v41  ;;  %v1675_v45 = vpop.f32.mrb[12].mxu1 }
 0x218   : > { %v1401_v53 = vmul.f32 0.5, %v1397_v50  ;;  %v1334_v46 = vadd.f32 %v1675_v45, %v1510_v27  ;;  %v1325_v47 = vpop.f32.mrb[13].mxu1 }
 0x219   : > { %v1400_v55 = vmul.f32 0.5, %v1396_v51  ;;  %v1326_v56 = vadd.f32 %v1510_v27, %v1325_v47  ;;  %v1676_v57 = vpop.f32.mrb[14].mxu1 }
 0x21a   : > { %1405 = vst.msk [vmem:[%s278_s17 + $0x8] sm:$0xff] %vm1262_vm4, %v1401_v53  ;;  %v1394_v59 = vmul.f32 %v1785_v54, %v1334_v46  ;;  %v1337_v60 = vadd.f32 %v1676_v57, %v1510_v27  ;;  %v1328_v61 = vpop.f32.mrb[15].mxu1 }
 0x21b   : > { %1404 = vst.msk [vmem:[%s278_s17] sm:$0xff] %vm1262_vm4, %v1400_v55  ;;  %v1392_v63 = vmul.f32 %v1787_v58, %v1326_v56  ;;  %v1329_v0 = vadd.f32 %v1510_v27, %v1328_v61 }
 0x21c   : > { %v1395_v3 = vmul.f32 %v1789_v62, %v1337_v60 }
 0x21d   : > { %v1393_v4 = vmul.f32 %v1791_v1, %v1329_v0 }
 0x21e   : > { %v1399_v5 = vadd.f32 %v1395_v3, %v1394_v59 }
 0x21f   : > { %v1398_v7 = vadd.f32 %v1393_v4, %v1392_v63 }
 0x220   : > { %v1403_v9 = vmul.f32 0.5, %v1399_v5 }
 0x221   : > { %v1402_v12 = vmul.f32 0.5, %v1398_v7 }
 0x222   : > { %1407 = vst.msk [vmem:[%s278_s17 + $0x18] sm:$0xff] %vm1262_vm4, %v1403_v9 }
 0x223   : > { %1406 = vst.msk [vmem:[%s278_s17 + $0x10] sm:$0xff] %vm1262_vm4, %v1402_v12 }
 0x224 PF: > { %s17_s24 = sadd.s32 1, %s1798_s24  }
 0x225   : > { %p14_p4 = scmp.ge.s32.totalorder %s17_s24, 4  }
 0x227   :  { %16 = sbr.rel (!%p14_p4) target bundleno = 1 (0x1), region = 78 }

// kernel: _lambda_.12
= control target key start
LH: loop header
LB: loop body
LE: loop exit
PB: predicated region body
PF: predicated region fallthrough
CT: control target
= control target key end

     0   :  { %s476_s21 = smov 0   ;;  %s515_s0 = inlined_call_operand.vmem [shape: f32[2,8,16], index: 0, kind: input, shape index: {}]   ;;  %s516_s1 = inlined_call_operand.vmem [shape: bf16[16,128], index: 1, kind: input, shape index: {}]   ;;  %s517_s2 = inlined_call_operand.vmem [shape: f32[1,128], index: 2, kind: input, shape index: {}]   ;;  %s518_s3 = inlined_call_operand.vmem [shape: f32[1,128], index: 3, kind: input, shape index: {}]   ;;  %s519_s4 = inlined_call_operand.vmem [shape: f32[1,128], index: 4, kind: input, shape index: {}]   ;;  %s520_s5 = inlined_call_operand.vmem [shape: f32[8,128], index: 5, kind: input, shape index: {}]   ;;  %s521_s6 = inlined_call_operand.vmem [shape: f32[2,8,128], index: 6, kind: output, shape index: {}]  }
   0x1 LB: > { %s396_s22 = sadd.s32 4294967295, %s437_s21   ;;  %p400_p0 = scmp.ge.s32.totalorder %s437_s21, 1  ;;  %s437_s21 = sphi %s476_s21, %s16_s21  }
   0x2   : > { %p211_p1 = scmp.lt.s32.totalorder %s437_s21, 3 }
   0x4   : > { %p212_p2 = pnand %p400_p0, %p211_p1 }
   0x5   : > { %v428_v0 = vld [vmem:[%s516_s1] sm:$0xff] (!%p212_p2)   ;;  %v439_v1 = vmov (!%p212_p2), 0.0   ;;  %p239_p3 = scmp.lt.s32.totalorder (!%p212_p2), %s396_s22, 1  ;;  %vm440_vm0 = vmmov (!%p212_p2), 0   ;;  %vm265_vm1 = vcmask (!%p212_p2), 130048  }
   0x6   : > { %215 = sbr.rel (%p212_p2) target bundleno = 407 (0x197), region = 44  ;;  %412 = vmatprep.subr.bf16.mxu0 (!%p212_p2), %v439_v1  ;;  %414 = vmatprep.mubr.msk.bf16.mxu0 (!%p212_p2), %vm440_vm0, %v439_v1  ;;  %v403_v4 = vld [vmem:[%s517_s2] ss:$0 sm:$0xff] (!%p212_p2) }
   0x7   : > { %413 = vmatpush3.bf16.msra.mxu0 (!%p212_p2), %v428_v0  ;;  %v406_v21 = vld [vmem:[%s518_s3] ss:$0 sm:$0xff] (!%p212_p2) }
   0x8   : > { %v407_v23 = vld [vmem:[%s519_s4] ss:$0 sm:$0xff] (!%p212_p2) }
   0x9   : > { %v340_v25 = vld [vmem:[%s520_s5] sm:$0xff] (!%p212_p2) }
   0xd   : > { %s523_s22 = smov (!%p239_p3, %s396_s22), 1 }
   0xe   : > { %s401_s25 = sshll.u32 %s523_s22, 3 }
   0xf   : > { %s242_s28 = scalar_lea.vmem %s515_s0, %s401_s25  ;;  %s246_s15 = scalar_lea.vmem %s521_s6, %s401_s25 }
  0x10   : > { %v248_v2 = vld [vmem:[%s242_s28] sm:$0xff] }
  0x11   : > { %v249_v3 = vpack.c.bf16 %v248_v2, %v248_v2 }
  0x13   : > { %415 = vmatmul.mubr.msk.bf16.vlgmr.msra.gmra.mrb[0].mxu0 %vm265_vm1, %v249_v3 }
  0xe6   : > { %v303_v5 = vpop.f32.mrb[0].mxu0 }
  0xe7   : > { %v304_v6 = vadd.f32 %v403_v4, %v303_v5  ;;  %v416_v7 = vpop.f32.mrb[1].mxu0 }
  0xe8   : > { %v306_v8 = vpop.f32.mrb[2].mxu0 }
  0xe9   : > { %311 = vadd.xlane.f32.xlu0 %v304_v6  ;;  %v417_v9 = vpop.f32.mrb[3].mxu0  ;;  %v313_v10 = vmul.f32 %v304_v6, %v304_v6 }
  0xed   : > { %314 = vadd.xlane.f32.xlu0 %v313_v10 }
 0x176   : > { %v312_v11 = vpop.xlane.xlu0 %311 }
 0x177   : > { %v317_v12 = vmul.f32 0.03125, %v312_v11 }
 0x179   : > { %v319_v14 = vmul.f32 %v317_v12, %v317_v12  ;;  %v322_v19 = vsub.f32 %v304_v6, %v317_v12 }
 0x17a   : > { %v315_v13 = vpop.xlane.xlu0 %314 }
 0x17b   : > { %v318_v15 = vmul.f32 0.03125, %v315_v13 }
 0x17d   : > { %v320_v16 = vsub.f32 %v318_v15, %v319_v14 }
 0x17f   : > { %v321_v17 = vmax.f32 %v320_v16, 0.0 }
 0x181   : > { %v323_v18 = vadd.f32 1e-05, %v321_v17 }
 0x183   : > { %429 = vrsqrt.f32 %v323_v18 }
 0x18d   : > { %v430_v20 = vpop.eup %429 }
 0x18e   : > { %v325_v22 = vmul.f32 %v430_v20, %v322_v19 }
 0x190   : > { %v332_v24 = vmul.f32 %v406_v21, %v325_v22 }
 0x192   : > { %v339_v26 = vadd.f32 %v407_v23, %v332_v24 }
 0x194   : > { %v341_v27 = vadd.f32 %v340_v25, %v339_v26 }
 0x196   : > { %342 = vst [vmem:[%s246_s15] sm:$0xff] %v341_v27 }
 0x197 PF: > { %s16_s21 = sadd.s32 1, %s437_s21  }
 0x198   : > { %p13_p4 = scmp.ge.s32.totalorder %s16_s21, 4  }
 0x19a   :  { %15 = sbr.rel (!%p13_p4) target bundleno = 1 (0x1), region = 74 }

// kernel: _lambda_.14
= control target key start
LH: loop header
LB: loop body
LE: loop exit
PB: predicated region body
PF: predicated region fallthrough
CT: control target
= control target key end

     0   :  { %s634_s12 = smov 0   ;;  %s636_s13 = smov 0   ;;  %s700_s0 = inlined_call_operand.vmem [shape: f32[16,512], index: 0, kind: input, shape index: {}]   ;;  %s701_s1 = inlined_call_operand.vmem [shape: f32[16,512], index: 1, kind: input, shape index: {}]   ;;  %s702_s2 = inlined_call_operand.vmem [shape: f32[16,512], index: 2, kind: input, shape index: {}]   ;;  %s703_s3 = inlined_call_operand.vmem [shape: f32[16,512], index: 3, kind: output, shape index: {}]  }
   0x1   :  { %s638_s14 = smov 0   ;;  %s640_s15 = smov 0  }
   0x2   :  { %s642_s16 = smov 0  }
   0x3 LB: > { %s22_s17 = sadd.s32 1, %s602_s14  ;;  %s25_s18 = sadd.s32 1, %s606_s15  ;;  %s610_s16 = sphi %s642_s16, %s13_s16   ;;  %s606_s15 = sphi %s640_s15, %s707_s15   ;;  %s602_s14 = sphi %s638_s14, %s706_s14   ;;  %s598_s13 = sphi %s636_s13, %s705_s13   ;;  %s594_s12 = sphi %s634_s12, %s704_s12  }
   0x4   : > { %p23_p0 = scmp.ge.s32.totalorder %s22_s17, 4  ;;  %p498_p1 = scmp.ge.s32.totalorder %s610_s16, 1 }
   0x5   : > { %p186_p2 = scmp.lt.s32.totalorder %s610_s16, 9 }
   0x6   : > { %s709_s17 = smov (%p23_p0, %s22_s17), 0  ;;  %s711_s18 = smov (!%p23_p0, %s25_s18), %s606_s15 }
   0x7   : > { %p187_p3 = pnand %p498_p1, %p186_p2  ;;  %p27_p4 = scmp.ge.s32.totalorder %s711_s18, 2 }
   0x8   : > { %p232_p5 = scmp.lt.s32.totalorder (!%p187_p3), %s598_s13, 1  ;;  %p234_p6 = scmp.lt.s32.totalorder (!%p187_p3), %s594_s12, 3  ;;  %v612_v0 = vmov (!%p187_p3), 0.0   ;;  %vm613_vm0 = vmmov (!%p187_p3), 0   ;;  %vm311_vm1 = vcmask (!%p187_p3), 64512   ;;  %vm327_vm2 = vcmask (!%p187_p3), 1043456  }
   0x9   : > { %s713_s18 = smov (%p27_p4, %s711_s18), 0  ;;  %190 = sbr.rel (%p187_p3) target bundleno = 774 (0x306), region = 32 }
   0xa   : > { %514 = vmatprep.subr.bf16.mxu0 (!%p187_p3), %v612_v0  ;;  %516 = vmatprep.mubr.msk.bf16.mxu0 (!%p187_p3), %vm613_vm0, %v612_v0 }
   0xb   : > { %520 = vmatprep.subr.bf16.mxu1 (!%p187_p3), %v612_v0  ;;  %522 = vmatprep.mubr.msk.bf16.mxu1 (!%p187_p3), %vm613_vm0, %v612_v0 }
  0x10   : > { %s715_s13 = smov (!%p232_p5, %s598_s13), 1  ;;  %s717_s12 = smov (!%p234_p6, %s594_s12), 3 }
  0x11   : > { %s499_s19 = sshll.u32 %s715_s13, 2 }
  0x12   : > { %s237_s20 = sadd.s32 %s499_s19, %s717_s12 }
  0x13   : > { %s664_s21 = sshll.u32 %s237_s20, 3 }
  0x14   : > { %s247_s24 = scalar_lea.vmem %s701_s1, %s664_s21  ;;  %s239_s27 = scalar_lea.vmem %s700_s0, %s664_s21 }
  0x15   : > { %v267_v1 = vld [vmem:[%s247_s24] sm:$0xff]  ;;  %s255_s30 = scalar_lea.vmem %s702_s2, %s664_s21  ;;  %s263_s6 = scalar_lea.vmem %s703_s3, %s664_s21 }
  0x16   : > { %v268_v2 = vpack.c.bf16 %v267_v1, %v267_v1  ;;  %v265_v3 = vld [vmem:[%s239_s27] sm:$0xff] }
  0x17   : > { %v266_v4 = vpack.c.bf16 %v265_v3, %v265_v3  ;;  %v269_v15 = vld [vmem:[%s255_s30] sm:$0xff] }
  0x18   : > { %515 = vmatpush3.bf16.xpose.msra.mxu0 %v268_v2  ;;  %v270_v16 = vpack.c.bf16 %v269_v15, %v269_v15 }
  0x1a   : > { %v329_v17 = vsel %vm327_vm2, %v270_v16, 0 }
  0x1b   : > { %521 = vmatpush3.bf16.msra.mxu1 %v329_v17 }
  0x1f   : > { %517 = vmatmul.mubr.bf16.vlgmr.msra.gmra.mrb[0].mxu0 %v266_v4 }
  0xf2   : > { %v305_v5 = vpop.f32.mrb[0].mxu0 }
  0xf3   : > { %v518_v6 = vpop.f32.mrb[1].mxu0  ;;  %v312_v7 = vsel %vm311_vm1, %v305_v5, -inf }
  0xf4   : > { %313 = vmax.xlane.f32.xlu0 %v312_v7  ;;  %v308_v8 = vpop.f32.mrb[2].mxu0 }
  0xf5   : > { %v519_v9 = vpop.f32.mrb[3].mxu0 }
 0x181   : > { %v314_v10 = vpop.xlane.xlu0 %313 }
 0x182   : > { %v315_v11 = vsub.f32 %v305_v5, %v314_v10 }
 0x184   : > { %v316_v12 = vmul.f32 1.442695, %v315_v11 }
 0x186   : > { %568 = vpow2.f32 %v316_v12 }
 0x190   : > { %v569_v13 = vpop.eup %568 }
 0x191   : > { %v318_v14 = vsel %vm311_vm1, %v569_v13, 0.0 }
 0x192   : > { %319 = vadd.xlane.f32.xlu0 %v318_v14 }
 0x21f   : > { %v320_v18 = vpop.xlane.xlu0 %319 }
 0x220   : > { %570 = vrcp.f32 %v320_v18 }
 0x22a   : > { %v571_v19 = vpop.eup %570 }
 0x22b   : > { %v322_v20 = vmul.f32 %v571_v19, %v569_v13 }
 0x22d   : > { %v323_v21 = vpack.c.bf16 %v322_v20, %v322_v20 }
 0x22f   : > { %523 = vmatmul.mubr.msk.bf16.vlgmr.msra.gmra.mrb[0].mxu1 %vm311_vm1, %v323_v21 }
 0x302   : > { %v365_v22 = vpop.f32.mrb[0].mxu1 }
 0x303   : > { %371 = vst [vmem:[%s263_s6] sm:$0xff] %v365_v22  ;;  %v524_v23 = vpop.f32.mrb[1].mxu1 }
 0x304   : > { %v368_v24 = vpop.f32.mrb[2].mxu1 }
 0x305   : > { %v525_v25 = vpop.f32.mrb[3].mxu1 }
 0x306 PF: > { %s13_s16 = sadd.s32 1, %s610_s16   ;;  %s704_s12 = smov %s602_s14 }
 0x307   : > { %p10_p7 = scmp.ge.s32.totalorder %s13_s16, 10   ;;  %s705_s13 = smov %s606_s15 }
 0x308   : > { %s706_s14 = smov %s709_s17  ;;  %s707_s15 = smov %s713_s18 }
 0x309   :  { %12 = sbr.rel (!%p10_p7) target bundleno = 3 (0x3), region = 68 }

// kernel: _lambda_.13
= control target key start
LH: loop header
LB: loop body
LE: loop exit
PB: predicated region body
PF: predicated region fallthrough
CT: control target
= control target key end

     0   :  { %s1673_s24 = smov 0   ;;  %s2025_s0 = inlined_call_operand.vmem [shape: f32[16,128], index: 0, kind: input, shape index: {}]   ;;  %s2026_s1 = inlined_call_operand.vmem [shape: f32[1,128], index: 1, kind: input, shape index: {}]   ;;  %s2027_s2 = inlined_call_operand.vmem [shape: f32[1,128], index: 2, kind: input, shape index: {}]   ;;  %s2028_s3 = inlined_call_operand.vmem [shape: bf16[128,1536], index: 3, kind: input, shape index: {}]   ;;  %s2029_s4 = inlined_call_operand.vmem [shape: f32[1,1536], index: 4, kind: input, shape index: {}]   ;;  %s2030_s5 = inlined_call_operand.vmem [shape: f32[16,512], index: 5, kind: output, shape index: {0}]   ;;  %s2031_s6 = inlined_call_operand.vmem [shape: f32[16,512], index: 6, kind: output, shape index: {1}]   ;;  %s2032_s7 = inlined_call_operand.vmem [shape: f32[16,512], index: 7, kind: output, shape index: {2}]  }
   0x1 LB: > { %s1354_s25 = sadd.s32 4294967295, %s1630_s24   ;;  %p1358_p0 = scmp.ge.s32.totalorder %s1630_s24, 1  ;;  %s1630_s24 = sphi %s1673_s24, %s18_s24  }
   0x2   : > { %p241_p1 = scmp.lt.s32.totalorder %s1630_s24, 3 }
   0x4   : > { %p242_p2 = pnand %p1358_p0, %p241_p1 }
   0x5   : > { %p282_p3 = scmp.lt.s32.totalorder (!%p242_p2), %s1354_s25, 1  ;;  %v1478_v0 = vld [vmem:[%s2028_s3 + $0x4] ss:$48 sps:$4 sm:$0xff] (!%p242_p2)   ;;  %v1480_v1 = vld [vmem:[%s2028_s3 + $0xc] ss:$48 sps:$4 sm:$0xff] (!%p242_p2)   ;;  %v1632_v36 = vmov (!%p242_p2), 0  }
   0x6   : > { %245 = sbr.rel (%p242_p2) target bundleno = 470 (0x1d6), region = 40  ;;  %975 = vmatprep.subr.bf16.mxu0 (!%p242_p2), %v1478_v0  ;;  %v1482_v2 = vld [vmem:[%s2028_s3] ss:$48 sps:$4 sm:$0xff] (!%p242_p2)   ;;  %v1483_v3 = vld [vmem:[%s2028_s3 + $0x8] ss:$48 sps:$4 sm:$0xff] (!%p242_p2)   ;;  %1016 = vmatprep.subr.bf16.mxu1 (!%p242_p2), %v1480_v1 }
   0x7   : > { %976 = vmatpush1.bf16.msra.mxu0 (!%p242_p2), %v1482_v2  ;;  %1017 = vmatpush1.bf16.msra.mxu1 (!%p242_p2), %v1483_v3  ;;  %v1484_v6 = vld [vmem:[%s2028_s3 + $0x64] ss:$48 sps:$4 sm:$0xff] (!%p242_p2)   ;;  %v1486_v7 = vld [vmem:[%s2028_s3 + $0x6c] ss:$48 sps:$4 sm:$0xff] (!%p242_p2)   ;;  %v1488_v8 = vld [vmem:[%s2028_s3 + $0x60] ss:$48 sps:$4 sm:$0xff] (!%p242_p2)  }
   0x8   : > { %v1489_v9 = vld [vmem:[%s2028_s3 + $0x68] ss:$48 sps:$4 sm:$0xff] (!%p242_p2)   ;;  %977 = vmatprep.subr.bf16.mxu0 (!%p242_p2), %v1484_v6  ;;  %1018 = vmatprep.subr.bf16.mxu1 (!%p242_p2), %v1486_v7  ;;  %v1490_v10 = vld [vmem:[%s2028_s3 + $0xc4] ss:$48 sps:$4 sm:$0xff] (!%p242_p2)   ;;  %v1492_v11 = vld [vmem:[%s2028_s3 + $0xcc] ss:$48 sps:$4 sm:$0xff] (!%p242_p2)  }
   0x9   : > { %v1494_v12 = vld [vmem:[%s2028_s3 + $0xc0] ss:$48 sps:$4 sm:$0xff] (!%p242_p2)   ;;  %v1495_v13 = vld [vmem:[%s2028_s3 + $0xc8] ss:$48 sps:$4 sm:$0xff] (!%p242_p2)   ;;  %v1496_v14 = vld [vmem:[%s2028_s3 + $0x124] ss:$48 sps:$4 sm:$0xff] (!%p242_p2)   ;;  %1007 = vmatprep.mubr.bf16.mxu0 (!%p242_p2), %v1632_v36  ;;  %1048 = vmatprep.mubr.bf16.mxu1 (!%p242_p2), %v1632_v36 }
   0xa   : > { %v1498_v15 = vld [vmem:[%s2028_s3 + $0x12c] ss:$48 sps:$4 sm:$0xff] (!%p242_p2)   ;;  %v1500_v16 = vld [vmem:[%s2028_s3 + $0x120] ss:$48 sps:$4 sm:$0xff] (!%p242_p2)   ;;  %v1501_v17 = vld [vmem:[%s2028_s3 + $0x128] ss:$48 sps:$4 sm:$0xff] (!%p242_p2)  }
   0xb   : > { %978 = vmatpush1.bf16.msra.mxu0 (!%p242_p2), %v1488_v8  ;;  %1019 = vmatpush1.bf16.msra.mxu1 (!%p242_p2), %v1489_v9  ;;  %v1502_v18 = vld [vmem:[%s2028_s3 + $0x184] ss:$48 sps:$4 sm:$0xff] (!%p242_p2)   ;;  %v1504_v19 = vld [vmem:[%s2028_s3 + $0x18c] ss:$48 sps:$4 sm:$0xff] (!%p242_p2)   ;;  %v1506_v20 = vld [vmem:[%s2028_s3 + $0x180] ss:$48 sps:$4 sm:$0xff] (!%p242_p2)  }
   0xc   : > { %979 = vmatprep.subr.bf16.mxu0 (!%p242_p2), %v1490_v10  ;;  %1020 = vmatprep.subr.bf16.mxu1 (!%p242_p2), %v1492_v11  ;;  %v1507_v21 = vld [vmem:[%s2028_s3 + $0x188] ss:$48 sps:$4 sm:$0xff] (!%p242_p2)   ;;  %v1508_v22 = vld [vmem:[%s2028_s3 + $0x1e4] ss:$48 sps:$4 sm:$0xff] (!%p242_p2)   ;;  %v1510_v23 = vld [vmem:[%s2028_s3 + $0x1ec] ss:$48 sps:$4 sm:$0xff] (!%p242_p2)  }
   0xd   : > { %s2034_s25 = smov (!%p282_p3, %s1354_s25), 1  ;;  %v1512_v24 = vld [vmem:[%s2028_s3 + $0x1e0] ss:$48 sps:$4 sm:$0xff]   ;;  %v1513_v25 = vld [vmem:[%s2028_s3 + $0x1e8] ss:$48 sps:$4 sm:$0xff]  }
   0xe   : > { %s1359_s11 = sshll.u32 %s2034_s25, 3  ;;  %v1514_v26 = vld [vmem:[%s2028_s3 + $0x244] ss:$48 sps:$4 sm:$0xff]   ;;  %v1516_v27 = vld [vmem:[%s2028_s3 + $0x24c] ss:$48 sps:$4 sm:$0xff]   ;;  %s2005_s16 = sshll.u32 %s2034_s25, 5 }
   0xf   : > { %s285_s14 = scalar_lea.vmem %s2025_s0, %s1359_s11  ;;  %980 = vmatpush1.bf16.msra.mxu0 %v1494_v12  ;;  %1021 = vmatpush1.bf16.msra.mxu1 %v1495_v13  ;;  %v1518_v28 = vld [vmem:[%s2028_s3 + $0x240] ss:$48 sps:$4 sm:$0xff]   ;;  %v1519_v29 = vld [vmem:[%s2028_s3 + $0x248] ss:$48 sps:$4 sm:$0xff]   ;;  %v1520_v30 = vld [vmem:[%s2028_s3 + $0x2a4] ss:$48 sps:$4 sm:$0xff]   ;;  %s290_s19 = scalar_lea.vmem %s2030_s5, %s2005_s16 }
  0x10   : > { %v1699_v4 = vld [vmem:[%s285_s14] sm:$0xff]  ;;  %981 = vmatprep.subr.bf16.mxu0 %v1496_v14  ;;  %1022 = vmatprep.subr.bf16.mxu1 %v1498_v15  ;;  %v1522_v31 = vld [vmem:[%s2028_s3 + $0x2ac] ss:$48 sps:$4 sm:$0xff]   ;;  %v1525_v33 = vld [vmem:[%s2028_s3 + $0x2a8] ss:$48 sps:$4 sm:$0xff]   ;;  %s295_s21 = scalar_lea.vmem %s2031_s6, %s2005_s16  ;;  %s300_s28 = scalar_lea.vmem %s2032_s7, %s2005_s16 }
  0x11   : > { %305 = vadd.xlane.f32.xlu0 %v1699_v4  ;;  %v307_v5 = vmul.f32 %v1699_v4, %v1699_v4  ;;  %v1524_v32 = vld [vmem:[%s2028_s3 + $0x2a0] ss:$48 sps:$4 sm:$0xff]   ;;  %v1528_v34 = vld [vmem:[%s2028_s3 + $0x14] ss:$48 sps:$4 sm:$0xff]   ;;  %v1531_v35 = vld [vmem:[%s2028_s3 + $0x1c] ss:$48 sps:$4 sm:$0xff]  }
  0x12   : > { %v1366_v47 = vld [vmem:[%s2026_s1] ss:$0 sm:$0xff]  ;;  %v1529_v53 = vld [vmem:[%s2028_s3 + $0x18] ss:$48 sps:$4 sm:$0xff]   ;;  %v1534_v55 = vld [vmem:[%s2028_s3 + $0x74] ss:$48 sps:$4 sm:$0xff]  }
  0x13   : > { %982 = vmatpush1.bf16.msra.mxu0 %v1500_v16  ;;  %1023 = vmatpush1.bf16.msra.mxu1 %v1501_v17  ;;  %v1367_v49 = vld [vmem:[%s2027_s2] ss:$0 sm:$0xff]  ;;  %v1537_v56 = vld [vmem:[%s2028_s3 + $0x7c] ss:$48 sps:$4 sm:$0xff]   ;;  %v1535_v58 = vld [vmem:[%s2028_s3 + $0x78] ss:$48 sps:$4 sm:$0xff]  }
  0x14   : > { %983 = vmatprep.subr.bf16.mxu0 %v1502_v18  ;;  %1024 = vmatprep.subr.bf16.mxu1 %v1504_v19  ;;  %v1526_v52 = vld [vmem:[%s2028_s3 + $0x10] ss:$48 sps:$4 sm:$0xff]   ;;  %v1540_v59 = vld [vmem:[%s2028_s3 + $0xd4] ss:$48 sps:$4 sm:$0xff]   ;;  %v1543_v60 = vld [vmem:[%s2028_s3 + $0xdc] ss:$48 sps:$4 sm:$0xff]  }
  0x15   : > { %308 = vadd.xlane.f32.xlu0 %v307_v5  ;;  %v1532_v57 = vld [vmem:[%s2028_s3 + $0x70] ss:$48 sps:$4 sm:$0xff]   ;;  %v1541_v62 = vld [vmem:[%s2028_s3 + $0xd8] ss:$48 sps:$4 sm:$0xff]   ;;  %v1546_v63 = vld [vmem:[%s2028_s3 + $0x134] ss:$48 sps:$4 sm:$0xff]  }
  0x16   : > { %v1538_v61 = vld [vmem:[%s2028_s3 + $0xd0] ss:$48 sps:$4 sm:$0xff]   ;;  %v1549_v0 = vld [vmem:[%s2028_s3 + $0x13c] ss:$48 sps:$4 sm:$0xff]   ;;  %v1547_v2 = vld [vmem:[%s2028_s3 + $0x138] ss:$48 sps:$4 sm:$0xff]  }
  0x17   : > { %984 = vmatpush1.bf16.msra.mxu0 %v1506_v20  ;;  %1025 = vmatpush1.bf16.msra.mxu1 %v1507_v21  ;;  %v1544_v1 = vld [vmem:[%s2028_s3 + $0x130] ss:$48 sps:$4 sm:$0xff]   ;;  %v1552_v3 = vld [vmem:[%s2028_s3 + $0x194] ss:$48 sps:$4 sm:$0xff]   ;;  %v1553_v6 = vld [vmem:[%s2028_s3 + $0x198] ss:$48 sps:$4 sm:$0xff]  }
  0x18   : > { %985 = vmatprep.subr.bf16.mxu0 %v1508_v22  ;;  %1026 = vmatprep.subr.bf16.mxu1 %v1510_v23  ;;  %v1550_v5 = vld [vmem:[%s2028_s3 + $0x190] ss:$48 sps:$4 sm:$0xff]   ;;  %v1558_v7 = vld [vmem:[%s2028_s3 + $0x1f4] ss:$48 sps:$4 sm:$0xff]   ;;  %v1561_v8 = vld [vmem:[%s2028_s3 + $0x1fc] ss:$48 sps:$4 sm:$0xff]  }
  0x19   : > { %v1556_v9 = vld [vmem:[%s2028_s3 + $0x1f0] ss:$48 sps:$4 sm:$0xff]   ;;  %v1559_v10 = vld [vmem:[%s2028_s3 + $0x1f8] ss:$48 sps:$4 sm:$0xff]   ;;  %v1564_v11 = vld [vmem:[%s2028_s3 + $0x254] ss:$48 sps:$4 sm:$0xff]  }
  0x1a   : > { %v1567_v12 = vld [vmem:[%s2028_s3 + $0x25c] ss:$48 sps:$4 sm:$0xff]   ;;  %v1562_v13 = vld [vmem:[%s2028_s3 + $0x250] ss:$48 sps:$4 sm:$0xff]   ;;  %v1565_v14 = vld [vmem:[%s2028_s3 + $0x258] ss:$48 sps:$4 sm:$0xff]  }
  0x1b   : > { %986 = vmatpush1.bf16.msra.mxu0 %v1512_v24  ;;  %1027 = vmatpush1.bf16.msra.mxu1 %v1513_v25  ;;  %v1570_v15 = vld [vmem:[%s2028_s3 + $0x2b4] ss:$48 sps:$4 sm:$0xff]   ;;  %v1573_v16 = vld [vmem:[%s2028_s3 + $0x2bc] ss:$48 sps:$4 sm:$0xff]   ;;  %v1568_v17 = vld [vmem:[%s2028_s3 + $0x2b0] ss:$48 sps:$4 sm:$0xff]  }
  0x1c   : > { %987 = vmatprep.subr.bf16.mxu0 %v1514_v26  ;;  %1028 = vmatprep.subr.bf16.mxu1 %v1516_v27  ;;  %v1571_v18 = vld [vmem:[%s2028_s3 + $0x2b8] ss:$48 sps:$4 sm:$0xff]   ;;  %v1576_v19 = vld [vmem:[%s2028_s3 + $0x24] ss:$48 sps:$4 sm:$0xff]   ;;  %v1579_v20 = vld [vmem:[%s2028_s3 + $0x2c] ss:$48 sps:$4 sm:$0xff]  }
  0x1d   : > { %v1574_v21 = vld [vmem:[%s2028_s3 + $0x20] ss:$48 sps:$4 sm:$0xff]   ;;  %v1577_v22 = vld [vmem:[%s2028_s3 + $0x28] ss:$48 sps:$4 sm:$0xff]   ;;  %v1582_v23 = vld [vmem:[%s2028_s3 + $0x84] ss:$48 sps:$4 sm:$0xff]  }
  0x1e   : > { %v1585_v24 = vld [vmem:[%s2028_s3 + $0x8c] ss:$48 sps:$4 sm:$0xff]   ;;  %v1580_v25 = vld [vmem:[%s2028_s3 + $0x80] ss:$48 sps:$4 sm:$0xff]   ;;  %v1583_v26 = vld [vmem:[%s2028_s3 + $0x88] ss:$48 sps:$4 sm:$0xff]  }
  0x1f   : > { %988 = vmatpush1.bf16.msra.mxu0 %v1518_v28  ;;  %1029 = vmatpush1.bf16.msra.mxu1 %v1519_v29  ;;  %v1588_v27 = vld [vmem:[%s2028_s3 + $0xe4] ss:$48 sps:$4 sm:$0xff]   ;;  %v1591_v28 = vld [vmem:[%s2028_s3 + $0xec] ss:$48 sps:$4 sm:$0xff]   ;;  %v1586_v29 = vld [vmem:[%s2028_s3 + $0xe0] ss:$48 sps:$4 sm:$0xff]  }
  0x20   : > { %989 = vmatprep.subr.bf16.mxu0 %v1520_v30  ;;  %1030 = vmatprep.subr.bf16.mxu1 %v1522_v31  ;;  %v1589_v30 = vld [vmem:[%s2028_s3 + $0xe8] ss:$48 sps:$4 sm:$0xff]   ;;  %v1594_v31 = vld [vmem:[%s2028_s3 + $0x144] ss:$48 sps:$4 sm:$0xff]  }
  0x23   : > { %990 = vmatpush1.bf16.msra.mxu0 %v1524_v32  ;;  %1031 = vmatpush1.bf16.msra.mxu1 %v1525_v33  ;;  %v1597_v32 = vld [vmem:[%s2028_s3 + $0x14c] ss:$48 sps:$4 sm:$0xff]   ;;  %v1592_v33 = vld [vmem:[%s2028_s3 + $0x140] ss:$48 sps:$4 sm:$0xff]  }
  0x24   : > { %1057 = vmatprep.subr.bf16.mxu0 %v1528_v34  ;;  %1098 = vmatprep.subr.bf16.mxu1 %v1531_v35  ;;  %v1595_v34 = vld [vmem:[%s2028_s3 + $0x148] ss:$48 sps:$4 sm:$0xff]   ;;  %v1600_v35 = vld [vmem:[%s2028_s3 + $0x1a4] ss:$48 sps:$4 sm:$0xff]  }
  0x9e   : > { %v306_v37 = vpop.xlane.xlu0 %305 }
  0x9f   : > { %v311_v38 = vmul.f32 0.03125, %v306_v37  ;;  %v1598_v37 = vld [vmem:[%s2028_s3 + $0x1a0] ss:$48 sps:$4 sm:$0xff]  }
  0xa1   : > { %v313_v40 = vmul.f32 %v311_v38, %v311_v38  ;;  %v316_v45 = vsub.f32 %v1699_v4, %v311_v38  ;;  %v1555_v4 = vld [vmem:[%s2028_s3 + $0x19c] ss:$48 sps:$4 sm:$0xff]   ;;  %v1601_v38 = vld [vmem:[%s2028_s3 + $0x1a8] ss:$48 sps:$4 sm:$0xff]  }
  0xa2   : > { %v309_v39 = vpop.xlane.xlu0 %308 }
  0xa3   : > { %v312_v41 = vmul.f32 0.03125, %v309_v39  ;;  %v1606_v39 = vld [vmem:[%s2028_s3 + $0x204] ss:$48 sps:$4 sm:$0xff]  }
  0xa5   : > { %v314_v42 = vsub.f32 %v312_v41, %v313_v40  ;;  %v1609_v40 = vld [vmem:[%s2028_s3 + $0x20c] ss:$48 sps:$4 sm:$0xff]   ;;  %v1604_v41 = vld [vmem:[%s2028_s3 + $0x200] ss:$48 sps:$4 sm:$0xff]  }
  0xa7   : > { %v315_v43 = vmax.f32 %v314_v42, 0.0  ;;  %v1607_v42 = vld [vmem:[%s2028_s3 + $0x208] ss:$48 sps:$4 sm:$0xff]  }
  0xa9   : > { %v317_v44 = vadd.f32 1e-05, %v315_v43  ;;  %v1612_v43 = vld [vmem:[%s2028_s3 + $0x264] ss:$48 sps:$4 sm:$0xff]  }
  0xab   : > { %1622 = vrsqrt.f32 %v317_v44  ;;  %v1615_v44 = vld [vmem:[%s2028_s3 + $0x26c] ss:$48 sps:$4 sm:$0xff]  }
  0xb5   : > { %v1623_v46 = vpop.eup %1622 }
  0xb6   : > { %v319_v48 = vmul.f32 %v1623_v46, %v316_v45  ;;  %v1610_v45 = vld [vmem:[%s2028_s3 + $0x260] ss:$48 sps:$4 sm:$0xff]   ;;  %v1613_v46 = vld [vmem:[%s2028_s3 + $0x268] ss:$48 sps:$4 sm:$0xff]  }
  0xb8   : > { %v326_v50 = vmul.f32 %v1366_v47, %v319_v48  ;;  %v1618_v47 = vld [vmem:[%s2028_s3 + $0x2c4] ss:$48 sps:$4 sm:$0xff]   ;;  %v1621_v48 = vld [vmem:[%s2028_s3 + $0x2cc] ss:$48 sps:$4 sm:$0xff]  }
  0xba   : > { %v333_v51 = vadd.f32 %v1367_v49, %v326_v50  ;;  %v1616_v49 = vld [vmem:[%s2028_s3 + $0x2c0] ss:$48 sps:$4 sm:$0xff]   ;;  %v1619_v50 = vld [vmem:[%s2028_s3 + $0x2c8] ss:$48 sps:$4 sm:$0xff]  }
  0xbc   : > { %v1809_v54 = vpack.c.bf16 %v333_v51, %v333_v51  ;;  %v435_v51 = vlaneseq }
  0xbe   : > { %1008 = vmatmul.mubr.bf16.vlgmr.msra.gmra.mrb[0].mxu0 %v1809_v54  ;;  %1049 = vmatmul.mubr.bf16.vlgmr.msra.gmra.mrb[0].mxu1 %v1809_v54 }
  0xbf   : > { %1058 = vmatpush1.bf16.msra.mxu0 %v1526_v52  ;;  %1099 = vmatpush1.bf16.msra.mxu1 %v1529_v53  ;;  %v436_v52 = vshrl.u32 %v435_v51, 7 }
  0xc0   : > { %1059 = vmatprep.subr.bf16.mxu0 %v1534_v55  ;;  %1100 = vmatprep.subr.bf16.mxu1 %v1537_v56  ;;  %v431_v56 = vld [vmem:[%s2029_s4] sm:$0xff] }
  0xc1   : > { %1089 = vmatprep.mubr.bf16.mxu0 %v1632_v36  ;;  %1130 = vmatprep.mubr.bf16.mxu1 %v1632_v36  ;;  %v437_v53 = vsub.s32 0, %v436_v52  ;;  %v445_v55 = vsub.s32 2, %v436_v52 }
  0xc3   : > { %1060 = vmatpush1.bf16.msra.mxu0 %v1532_v57  ;;  %1101 = vmatpush1.bf16.msra.mxu1 %v1535_v58  ;;  %v441_v57 = vsub.s32 1, %v436_v52  ;;  %v449_v58 = vsub.s32 3, %v436_v52 }
  0xc4   : > { %1061 = vmatprep.subr.bf16.mxu0 %v1540_v59  ;;  %1102 = vmatprep.subr.bf16.mxu1 %v1543_v60  ;;  %v438_v59 = vrot.slane %v431_v56, %v437_v53  ;;  %v446_v60 = vrot.slane %v431_v56, %v445_v55 }
  0xc7   : > { %1062 = vmatpush1.bf16.msra.mxu0 %v1538_v61  ;;  %1103 = vmatpush1.bf16.msra.mxu1 %v1541_v62  ;;  %v442_v61 = vrot.slane %v431_v56, %v441_v57  ;;  %v450_v62 = vrot.slane %v431_v56, %v449_v58 }
  0xc8   : > { %1063 = vmatprep.subr.bf16.mxu0 %v1546_v63  ;;  %1104 = vmatprep.subr.bf16.mxu1 %v1549_v0 }
  0xcb   : > { %1064 = vmatpush1.bf16.msra.mxu0 %v1544_v1  ;;  %1105 = vmatpush1.bf16.msra.mxu1 %v1547_v2 }
  0xcc   : > { %1065 = vmatprep.subr.bf16.mxu0 %v1552_v3  ;;  %1106 = vmatprep.subr.bf16.mxu1 %v1555_v4 }
  0xcf   : > { %1066 = vmatpush1.bf16.msra.mxu0 %v1550_v5  ;;  %1107 = vmatpush1.bf16.msra.mxu1 %v1553_v6 }
  0xd0   : > { %1067 = vmatprep.subr.bf16.mxu0 %v1558_v7  ;;  %1108 = vmatprep.subr.bf16.mxu1 %v1561_v8 }
  0xd3   : > { %1068 = vmatpush1.bf16.msra.mxu0 %v1556_v9  ;;  %1109 = vmatpush1.bf16.msra.mxu1 %v1559_v10  ;;  %v453_v10 = vsub.s32 4, %v436_v52 }
  0xd4   : > { %1069 = vmatprep.subr.bf16.mxu0 %v1564_v11  ;;  %1110 = vmatprep.subr.bf16.mxu1 %v1567_v12  ;;  %v461_v11 = vsub.s32 6, %v436_v52  ;;  %v457_v12 = vsub.s32 5, %v436_v52 }
  0xd7   : > { %1070 = vmatpush1.bf16.msra.mxu0 %v1562_v13  ;;  %1111 = vmatpush1.bf16.msra.mxu1 %v1565_v14  ;;  %v465_v13 = vsub.s32 7, %v436_v52  ;;  %v454_v14 = vrot.slane %v431_v56, %v453_v10 }
  0xd8   : > { %1071 = vmatprep.subr.bf16.mxu0 %v1570_v15  ;;  %1112 = vmatprep.subr.bf16.mxu1 %v1573_v16  ;;  %v462_v15 = vrot.slane %v431_v56, %v461_v11  ;;  %v458_v16 = vrot.slane %v431_v56, %v457_v12 }
  0xdb   : > { %1072 = vmatpush1.bf16.msra.mxu0 %v1568_v17  ;;  %1113 = vmatpush1.bf16.msra.mxu1 %v1571_v18  ;;  %v466_v17 = vrot.slane %v431_v56, %v465_v13 }
  0xdc   : > { %1139 = vmatprep.subr.bf16.mxu0 %v1576_v19  ;;  %1180 = vmatprep.subr.bf16.mxu1 %v1579_v20 }
  0xde   : > { %1090 = vmatmul.mubr.bf16.vlgmr.msra.gmra.mrb[4].mxu0 %v1809_v54  ;;  %1131 = vmatmul.mubr.bf16.vlgmr.msra.gmra.mrb[4].mxu1 %v1809_v54 }
  0xdf   : > { %1140 = vmatpush1.bf16.msra.mxu0 %v1574_v21  ;;  %1181 = vmatpush1.bf16.msra.mxu1 %v1577_v22 }
  0xe0   : > { %1141 = vmatprep.subr.bf16.mxu0 %v1582_v23  ;;  %1182 = vmatprep.subr.bf16.mxu1 %v1585_v24 }
  0xe1   : > { %1171 = vmatprep.mubr.bf16.mxu0 %v1632_v36  ;;  %1212 = vmatprep.mubr.bf16.mxu1 %v1632_v36  ;;  %v1603_v36 = vld [vmem:[%s2028_s3 + $0x1ac] ss:$48 sps:$4 sm:$0xff]  }
  0xe3   : > { %1142 = vmatpush1.bf16.msra.mxu0 %v1580_v25  ;;  %1183 = vmatpush1.bf16.msra.mxu1 %v1583_v26 }
  0xe4   : > { %1143 = vmatprep.subr.bf16.mxu0 %v1588_v27  ;;  %1184 = vmatprep.subr.bf16.mxu1 %v1591_v28 }
  0xe7   : > { %1144 = vmatpush1.bf16.msra.mxu0 %v1586_v29  ;;  %1185 = vmatpush1.bf16.msra.mxu1 %v1589_v30  ;;  %v432_v30 = vld [vmem:[%s2029_s4 + $0x8] sm:$0xf] }
  0xe8   : > { %1145 = vmatprep.subr.bf16.mxu0 %v1594_v31  ;;  %1186 = vmatprep.subr.bf16.mxu1 %v1597_v32  ;;  %v470_v31 = vrot.slane %v432_v30, %v437_v53  ;;  %v478_v32 = vrot.slane %v432_v30, %v445_v55 }
  0xeb   : > { %1146 = vmatpush1.bf16.msra.mxu0 %v1592_v33  ;;  %1187 = vmatpush1.bf16.msra.mxu1 %v1595_v34  ;;  %v474_v33 = vrot.slane %v432_v30, %v441_v57  ;;  %v482_v34 = vrot.slane %v432_v30, %v449_v58 }
  0xec   : > { %1147 = vmatprep.subr.bf16.mxu0 %v1600_v35  ;;  %1188 = vmatprep.subr.bf16.mxu1 %v1603_v36 }
  0xef   : > { %1148 = vmatpush1.bf16.msra.mxu0 %v1598_v37  ;;  %1189 = vmatpush1.bf16.msra.mxu1 %v1601_v38 }
  0xf0   : > { %1149 = vmatprep.subr.bf16.mxu0 %v1606_v39  ;;  %1190 = vmatprep.subr.bf16.mxu1 %v1609_v40 }
  0xf3   : > { %1150 = vmatpush1.bf16.msra.mxu0 %v1604_v41  ;;  %1191 = vmatpush1.bf16.msra.mxu1 %v1607_v42 }
  0xf4   : > { %1151 = vmatprep.subr.bf16.mxu0 %v1612_v43  ;;  %1192 = vmatprep.subr.bf16.mxu1 %v1615_v44 }
  0xf7   : > { %1152 = vmatpush1.bf16.msra.mxu0 %v1610_v45  ;;  %1193 = vmatpush1.bf16.msra.mxu1 %v1613_v46 }
  0xf8   : > { %1153 = vmatprep.subr.bf16.mxu0 %v1618_v47  ;;  %1194 = vmatprep.subr.bf16.mxu1 %v1621_v48 }
  0xfb   : > { %1154 = vmatpush1.bf16.msra.mxu0 %v1616_v49  ;;  %1195 = vmatpush1.bf16.msra.mxu1 %v1619_v50 }
  0xfe   : > { %1172 = vmatmul.mubr.bf16.vlgmr.msra.gmra.mrb[8].mxu0 %v1809_v54  ;;  %1213 = vmatmul.mubr.bf16.vlgmr.msra.gmra.mrb[8].mxu1 %v1809_v54 }
 0x191   : > { %v1009_v54 = vpop.f32.mrb[0].mxu0  ;;  %v1050_v63 = vpop.f32.mrb[0].mxu1 }
 0x192   : > { %v1010_v0 = vadd.f32 %v1009_v54, %v438_v59  ;;  %v1051_v1 = vadd.f32 %v1050_v63, %v446_v60  ;;  %v1011_v2 = vpop.f32.mrb[1].mxu0  ;;  %v1052_v3 = vpop.f32.mrb[1].mxu1 }
 0x193   : > { %v1012_v4 = vadd.f32 %v1011_v2, %v442_v61  ;;  %v1053_v5 = vadd.f32 %v1052_v3, %v450_v62  ;;  %v1013_v6 = vpop.f32.mrb[2].mxu0  ;;  %v1054_v7 = vpop.f32.mrb[2].mxu1 }
 0x194   : > { %1221 = vst [vmem:[%s290_s19] sm:$0xff] %v1010_v0  ;;  %1223 = vst [vmem:[%s290_s19 + $0x10] sm:$0xff] %v1051_v1  ;;  %v1014_v8 = vpop.f32.mrb[3].mxu0  ;;  %v1055_v9 = vpop.f32.mrb[3].mxu1 }
 0x195   : > { %1222 = vst [vmem:[%s290_s19 + $0x8] sm:$0xff] %v1012_v4  ;;  %1224 = vst [vmem:[%s290_s19 + $0x18] sm:$0xff] %v1053_v5 }
 0x1b1   : > { %v1091_v18 = vpop.f32.mrb[4].mxu0  ;;  %v1132_v19 = vpop.f32.mrb[4].mxu1 }
 0x1b2   : > { %v1092_v20 = vadd.f32 %v1091_v18, %v454_v14  ;;  %v1133_v21 = vadd.f32 %v1132_v19, %v462_v15  ;;  %v1093_v22 = vpop.f32.mrb[5].mxu0  ;;  %v1134_v23 = vpop.f32.mrb[5].mxu1 }
 0x1b3   : > { %v1094_v24 = vadd.f32 %v1093_v22, %v458_v16  ;;  %v1135_v25 = vadd.f32 %v1134_v23, %v466_v17  ;;  %v1095_v26 = vpop.f32.mrb[6].mxu0  ;;  %v1136_v27 = vpop.f32.mrb[6].mxu1 }
 0x1b4   : > { %1225 = vst [vmem:[%s295_s21] sm:$0xff] %v1092_v20  ;;  %1227 = vst [vmem:[%s295_s21 + $0x10] sm:$0xff] %v1133_v21  ;;  %v1096_v28 = vpop.f32.mrb[7].mxu0  ;;  %v1137_v29 = vpop.f32.mrb[7].mxu1 }
 0x1b5   : > { %1226 = vst [vmem:[%s295_s21 + $0x8] sm:$0xff] %v1094_v24  ;;  %1228 = vst [vmem:[%s295_s21 + $0x18] sm:$0xff] %v1135_v25 }
 0x1d1   : > { %v1173_v35 = vpop.f32.mrb[8].mxu0  ;;  %v1214_v36 = vpop.f32.mrb[8].mxu1 }
 0x1d2   : > { %v1174_v37 = vadd.f32 %v1173_v35, %v470_v31  ;;  %v1215_v38 = vadd.f32 %v1214_v36, %v478_v32  ;;  %v1175_v39 = vpop.f32.mrb[9].mxu0  ;;  %v1216_v40 = vpop.f32.mrb[9].mxu1 }
 0x1d3   : > { %v1176_v41 = vadd.f32 %v1175_v39, %v474_v33  ;;  %v1217_v42 = vadd.f32 %v1216_v40, %v482_v34  ;;  %v1177_v43 = vpop.f32.mrb[10].mxu0  ;;  %v1218_v44 = vpop.f32.mrb[10].mxu1 }
 0x1d4   : > { %1229 = vst [vmem:[%s300_s28] sm:$0xff] %v1174_v37  ;;  %1231 = vst [vmem:[%s300_s28 + $0x10] sm:$0xff] %v1215_v38  ;;  %v1178_v45 = vpop.f32.mrb[11].mxu0  ;;  %v1219_v46 = vpop.f32.mrb[11].mxu1 }
 0x1d5   : > { %1230 = vst [vmem:[%s300_s28 + $0x8] sm:$0xff] %v1176_v41  ;;  %1232 = vst [vmem:[%s300_s28 + $0x18] sm:$0xff] %v1217_v42 }
 0x1d6 PF: > { %s18_s24 = sadd.s32 1, %s1630_s24  }
 0x1d7   : > { %p15_p4 = scmp.ge.s32.totalorder %s18_s24, 4  }
 0x1d9   :  { %17 = sbr.rel (!%p15_p4) target bundleno = 1 (0x1), region = 94 }

// kernel: _lambda_.19
= control target key start
LH: loop header
LB: loop body
LE: loop exit
PB: predicated region body
PF: predicated region fallthrough
CT: control target
= control target key end

     0   :  { %s429_s12 = smov 0   ;;  %s473_s0 = inlined_call_operand.vmem [shape: f32[16,128], index: 0, kind: input, shape index: {}]   ;;  %s474_s1 = inlined_call_operand.vmem [shape: bf16[128,128], index: 1, kind: input, shape index: {}]   ;;  %s475_s2 = inlined_call_operand.vmem [shape: f32[1,128], index: 2, kind: input, shape index: {}]   ;;  %s476_s3 = inlined_call_operand.vmem [shape: f32[16,128], index: 3, kind: output, shape index: {}]  }
   0x1 LB: > { %s334_s13 = sadd.s32 4294967295, %s405_s12   ;;  %p338_p0 = scmp.ge.s32.totalorder %s405_s12, 1  ;;  %s405_s12 = sphi %s429_s12, %s13_s12  }
   0x2   : > { %p136_p1 = scmp.lt.s32.totalorder %s405_s12, 3 }
   0x4   : > { %p137_p2 = pnand %p338_p0, %p136_p1 }
   0x5   : > { %v391_v0 = vld [vmem:[%s474_s1] sm:$0xff] (!%p137_p2)   ;;  %v407_v1 = vmov (!%p137_p2), 0.0   ;;  %v392_v2 = vld [vmem:[%s474_s1 + $0x8] sm:$0xff] (!%p137_p2)   ;;  %vm408_vm0 = vmmov (!%p137_p2), 0   ;;  %v393_v3 = vld [vmem:[%s474_s1 + $0x10] sm:$0xff] (!%p137_p2)   ;;  %p158_p3 = scmp.lt.s32.totalorder (!%p137_p2), %s334_s13, 1 }
   0x6   : > { %140 = sbr.rel (%p137_p2) target bundleno = 253 (0xfd), region = 32  ;;  %361 = vmatprep.subr.bf16.mxu0 (!%p137_p2), %v407_v1  ;;  %377 = vmatprep.mubr.msk.bf16.mxu0 (!%p137_p2), %vm408_vm0, %v407_v1  ;;  %v394_v4 = vld [vmem:[%s474_s1 + $0x18] sm:$0xff] (!%p137_p2)   ;;  %v395_v5 = vld [vmem:[%s474_s1 + $0x20] sm:$0xff] (!%p137_p2)   ;;  %v396_v6 = vld [vmem:[%s474_s1 + $0x28] sm:$0xff] (!%p137_p2)  }
   0x7   : > { %362 = vmatpush3.bf16.msra.mxu0 (!%p137_p2), %v391_v0  ;;  %v397_v7 = vld [vmem:[%s474_s1 + $0x30] sm:$0xff] (!%p137_p2)   ;;  %v398_v8 = vld [vmem:[%s474_s1 + $0x38] sm:$0xff] (!%p137_p2)   ;;  %v341_v11 = vld [vmem:[%s475_s2] ss:$0 sm:$0xff] (!%p137_p2) }
   0x8   : > { %363 = vmatprep.subr.bf16.mxu0 (!%p137_p2), %v407_v1 }
   0xb   : > { %364 = vmatpush3.bf16.msra.mxu0 (!%p137_p2), %v392_v2 }
   0xc   : > { %365 = vmatprep.subr.bf16.mxu0 (!%p137_p2), %v407_v1 }
   0xd   : > { %s478_s13 = smov (!%p158_p3, %s334_s13), 1 }
   0xe   : > { %s339_s26 = sshll.u32 %s478_s13, 3 }
   0xf   : > { %366 = vmatpush3.bf16.msra.mxu0 %v393_v3  ;;  %s161_s4 = scalar_lea.vmem %s473_s0, %s339_s26  ;;  %s165_s11 = scalar_lea.vmem %s476_s3, %s339_s26 }
  0x10   : > { %367 = vmatprep.subr.bf16.mxu0 %v407_v1  ;;  %v167_v9 = vld [vmem:[%s161_s4] sm:$0xff] }
  0x11   : > { %v168_v10 = vpack.c.bf16 %v167_v9, %v167_v9 }
  0x13   : > { %368 = vmatpush3.bf16.msra.mxu0 %v394_v4 }
  0x14   : > { %369 = vmatprep.subr.bf16.mxu0 %v407_v1 }
  0x17   : > { %370 = vmatpush3.bf16.msra.mxu0 %v395_v5 }
  0x18   : > { %371 = vmatprep.subr.bf16.mxu0 %v407_v1 }
  0x1b   : > { %372 = vmatpush3.bf16.msra.mxu0 %v396_v6 }
  0x1c   : > { %373 = vmatprep.subr.bf16.mxu0 %v407_v1 }
  0x1f   : > { %374 = vmatpush3.bf16.msra.mxu0 %v397_v7 }
  0x20   : > { %375 = vmatprep.subr.bf16.mxu0 %v407_v1 }
  0x23   : > { %376 = vmatpush3.bf16.msra.mxu0 %v398_v8 }
  0x26   : > { %378 = vmatmul.mubr.bf16.vlgmr.msra.gmra.mrb[0].mxu0 %v168_v10 }
  0xf9   : > { %v274_v12 = vpop.f32.mrb[0].mxu0 }
  0xfa   : > { %v275_v13 = vadd.f32 %v341_v11, %v274_v12  ;;  %v379_v14 = vpop.f32.mrb[1].mxu0 }
  0xfb   : > { %v277_v15 = vpop.f32.mrb[2].mxu0 }
  0xfc   : > { %280 = vst [vmem:[%s165_s11] sm:$0xff] %v275_v13  ;;  %v380_v16 = vpop.f32.mrb[3].mxu0 }
  0xfd PF: > { %s13_s12 = sadd.s32 1, %s405_s12  }
  0xfe   : > { %p10_p4 = scmp.ge.s32.totalorder %s13_s12, 4  }
 0x100   :  { %12 = sbr.rel (!%p10_p4) target bundleno = 1 (0x1), region = 62 }

// kernel: _lambda_.15
= control target key start
LH: loop header
LB: loop body
LE: loop exit
PB: predicated region body
PF: predicated region fallthrough
CT: control target
= control target key end

     0   :  { %s1346_s13 = smov 0   ;;  %s1562_s0 = inlined_call_operand.vmem [shape: f32[16,512], index: 0, kind: input, shape index: {}]   ;;  %s1563_s1 = inlined_call_operand.vmem [shape: f32[16,128], index: 1, kind: input, shape index: {}]   ;;  %s1564_s2 = inlined_call_operand.vmem [shape: bf16[512,128], index: 2, kind: input, shape index: {}]   ;;  %s1565_s3 = inlined_call_operand.vmem [shape: f32[1,128], index: 3, kind: input, shape index: {}]   ;;  %s1566_s4 = inlined_call_operand.vmem [shape: f32[1,128], index: 4, kind: input, shape index: {}]   ;;  %s1567_s5 = inlined_call_operand.vmem [shape: f32[1,128], index: 5, kind: input, shape index: {}]   ;;  %s1568_s6 = inlined_call_operand.vmem [shape: bf16[128,128], index: 6, kind: input, shape index: {}]   ;;  %s1569_s7 = inlined_call_operand.vmem [shape: f32[1,128], index: 7, kind: input, shape index: {}]   ;;  %s1570_s8 = inlined_call_operand.vmem [shape: bf16[128,128], index: 8, kind: input, shape index: {}]   ;;  %s1571_s9 = inlined_call_operand.vmem [shape: f32[1,128], index: 9, kind: input, shape index: {}]   ;;  %s1572_s10 = inlined_call_operand.vmem [shape: f32[16,128], index: 10, kind: output, shape index: {}]  }
   0x1 LB: > { %s1054_s14 = sadd.s32 4294967295, %s1287_s13   ;;  %p1058_p0 = scmp.ge.s32.totalorder %s1287_s13, 1  ;;  %s1287_s13 = sphi %s1346_s13, %s20_s13  }
   0x2   : > { %p321_p1 = scmp.lt.s32.totalorder %s1287_s13, 3 }
   0x4   : > { %p322_p2 = pnand %p1058_p0, %p321_p1 }
   0x5   : > { %v1231_v0 = vld [vmem:[%s1564_s2 + $0x40] sm:$0xff] (!%p322_p2)   ;;  %v1235_v4 = vld [vmem:[%s1564_s2 + $0x48] sm:$0xff] (!%p322_p2)   ;;  %v1239_v8 = vld [vmem:[%s1564_s2 + $0x50] sm:$0xff] (!%p322_p2)   ;;  %p362_p3 = scmp.lt.s32.totalorder (!%p322_p2), %s1054_s14, 1  ;;  %v1289_v40 = vmov (!%p322_p2), 0.0   ;;  %vm1290_vm0 = vmmov (!%p322_p2), 0  }
   0x6   : > { %325 = sbr.rel (%p322_p2) target bundleno = 869 (0x365), region = 60  ;;  %v1232_v1 = vld [vmem:[%s1564_s2 + $0xc0] sm:$0xff] (!%p322_p2)   ;;  %1119 = vmatprep.subr.bf16.mxu0 (!%p322_p2), %v1231_v0  ;;  %v1236_v5 = vld [vmem:[%s1564_s2 + $0xc8] sm:$0xff] (!%p322_p2)   ;;  %v1240_v9 = vld [vmem:[%s1564_s2 + $0xd0] sm:$0xff] (!%p322_p2)  }
   0x7   : > { %v1233_v2 = vld [vmem:[%s1564_s2] sm:$0xff] (!%p322_p2)   ;;  %1141 = vmatprep.subr.bf16.mxu1 (!%p322_p2), %v1232_v1  ;;  %v1237_v6 = vld [vmem:[%s1564_s2 + $0x8] sm:$0xff] (!%p322_p2)   ;;  %v1241_v10 = vld [vmem:[%s1564_s2 + $0x10] sm:$0xff] (!%p322_p2)  }
   0x8   : > { %v1234_v3 = vld [vmem:[%s1564_s2 + $0x80] sm:$0xff] (!%p322_p2)   ;;  %1120 = vmatpush3.bf16.msra.mxu0 (!%p322_p2), %v1233_v2  ;;  %v1238_v7 = vld [vmem:[%s1564_s2 + $0x88] sm:$0xff] (!%p322_p2)   ;;  %v1242_v11 = vld [vmem:[%s1564_s2 + $0x90] sm:$0xff] (!%p322_p2)  }
   0x9   : > { %1142 = vmatpush3.bf16.msra.mxu1 (!%p322_p2), %v1234_v3  ;;  %1121 = vmatprep.subr.bf16.mxu0 (!%p322_p2), %v1235_v4  ;;  %v1243_v12 = vld [vmem:[%s1564_s2 + $0x58] sm:$0xff] (!%p322_p2)   ;;  %v1247_v16 = vld [vmem:[%s1564_s2 + $0x60] sm:$0xff] (!%p322_p2)   ;;  %v1251_v20 = vld [vmem:[%s1564_s2 + $0x68] sm:$0xff] (!%p322_p2)  }
   0xa   : > { %1143 = vmatprep.subr.bf16.mxu1 (!%p322_p2), %v1236_v5  ;;  %v1244_v13 = vld [vmem:[%s1564_s2 + $0xd8] sm:$0xff] (!%p322_p2)   ;;  %v1248_v17 = vld [vmem:[%s1564_s2 + $0xe0] sm:$0xff] (!%p322_p2)   ;;  %v1252_v21 = vld [vmem:[%s1564_s2 + $0xe8] sm:$0xff] (!%p322_p2)  }
   0xb   : > { %v1245_v14 = vld [vmem:[%s1564_s2 + $0x18] sm:$0xff] (!%p322_p2)   ;;  %v1249_v18 = vld [vmem:[%s1564_s2 + $0x20] sm:$0xff] (!%p322_p2)   ;;  %v1253_v22 = vld [vmem:[%s1564_s2 + $0x28] sm:$0xff] (!%p322_p2)  }
   0xc   : > { %1122 = vmatpush3.bf16.msra.mxu0 (!%p322_p2), %v1237_v6  ;;  %v1246_v15 = vld [vmem:[%s1564_s2 + $0x98] sm:$0xff] (!%p322_p2)   ;;  %v1250_v19 = vld [vmem:[%s1564_s2 + $0xa0] sm:$0xff] (!%p322_p2)   ;;  %v1254_v23 = vld [vmem:[%s1564_s2 + $0xa8] sm:$0xff] (!%p322_p2)  }
   0xd   : > { %1144 = vmatpush3.bf16.msra.mxu1 %v1238_v7  ;;  %1123 = vmatprep.subr.bf16.mxu0 %v1239_v8  ;;  %s1574_s14 = smov (!%p362_p3, %s1054_s14), 1  ;;  %v1255_v24 = vld [vmem:[%s1564_s2 + $0x70] sm:$0xff]   ;;  %v1259_v28 = vld [vmem:[%s1564_s2 + $0x78] sm:$0xff]   ;;  %v1095_v53 = vld [vmem:[%s1565_s3] ss:$0 sm:$0xff] }
   0xe   : > { %1145 = vmatprep.subr.bf16.mxu1 %v1240_v9  ;;  %v1256_v25 = vld [vmem:[%s1564_s2 + $0xf0] sm:$0xff]   ;;  %s1118_s15 = sshll.u32 %s1574_s14, 5  ;;  %v1260_v29 = vld [vmem:[%s1564_s2 + $0xf8] sm:$0xff]   ;;  %s1061_s29 = sshll.u32 %s1574_s14, 3  ;;  %v1263_v57 = vld [vmem:[%s1568_s6] sm:$0xff]  }
   0xf   : > { %v1257_v26 = vld [vmem:[%s1564_s2 + $0x30] sm:$0xff]   ;;  %s366_s24 = scalar_lea.vmem %s1562_s0, %s1118_s15  ;;  %v1261_v30 = vld [vmem:[%s1564_s2 + $0x38] sm:$0xff]   ;;  %s370_s12 = scalar_lea.vmem %s1563_s1, %s1061_s29  ;;  %v1264_v58 = vld [vmem:[%s1568_s6 + $0x8] sm:$0xff]  }
  0x10   : > { %1124 = vmatpush3.bf16.msra.mxu0 %v1241_v10  ;;  %v1258_v27 = vld [vmem:[%s1564_s2 + $0xb0] sm:$0xff]   ;;  %v1262_v31 = vld [vmem:[%s1564_s2 + $0xb8] sm:$0xff]   ;;  %v378_v32 = vld [vmem:[%s366_s24 + $0x8] sm:$0xff]  ;;  %s374_s25 = scalar_lea.vmem %s1572_s10, %s1061_s29 }
  0x11   : > { %1146 = vmatpush3.bf16.msra.mxu1 %v1242_v11  ;;  %1125 = vmatprep.subr.bf16.mxu0 %v1243_v12  ;;  %v380_v33 = vld [vmem:[%s366_s24 + $0x18] sm:$0xff]  ;;  %v377_v34 = vld [vmem:[%s366_s24] sm:$0xff]  ;;  %v382_v35 = vpack.c.bf16 %v378_v32, %v378_v32  ;;  %v379_v38 = vld [vmem:[%s366_s24 + $0x10] sm:$0xff] }
  0x12   : > { %1147 = vmatprep.subr.bf16.mxu1 %v1244_v13  ;;  %v384_v36 = vpack.c.bf16 %v380_v33, %v380_v33  ;;  %v381_v37 = vpack.c.bf16 %v377_v34, %v377_v34  ;;  %v383_v39 = vpack.c.bf16 %v379_v38, %v379_v38  ;;  %v376_v49 = vld [vmem:[%s370_s12] sm:$0xff]  ;;  %v1265_v59 = vld [vmem:[%s1568_s6 + $0x10] sm:$0xff]   ;;  %v1266_v60 = vld [vmem:[%s1568_s6 + $0x18] sm:$0xff]  }
  0x13   : > { %673 = vmatprep.mubr.bf16.mxu0 %v382_v35  ;;  %v1267_v61 = vld [vmem:[%s1568_s6 + $0x20] sm:$0xff]   ;;  %v1268_v62 = vld [vmem:[%s1568_s6 + $0x28] sm:$0xff]   ;;  %v1269_v63 = vld [vmem:[%s1568_s6 + $0x30] sm:$0xff]  }
  0x14   : > { %1126 = vmatpush3.bf16.msra.mxu0 %v1245_v14  ;;  %713 = vmatprep.mubr.bf16.mxu1 %v384_v36  ;;  %v1270_v0 = vld [vmem:[%s1568_s6 + $0x38] sm:$0xff]   ;;  %v1271_v1 = vld [vmem:[%s1570_s8] sm:$0xff]   ;;  %v1272_v2 = vld [vmem:[%s1570_s8 + $0x8] sm:$0xff]  }
  0x15   : > { %1148 = vmatpush3.bf16.msra.mxu1 %v1246_v15  ;;  %1127 = vmatprep.subr.bf16.mxu0 %v1247_v16  ;;  %v1273_v3 = vld [vmem:[%s1570_s8 + $0x10] sm:$0xff]   ;;  %v1274_v4 = vld [vmem:[%s1570_s8 + $0x18] sm:$0xff]   ;;  %v1275_v5 = vld [vmem:[%s1570_s8 + $0x20] sm:$0xff]  }
  0x16   : > { %1149 = vmatprep.subr.bf16.mxu1 %v1248_v17  ;;  %v1276_v6 = vld [vmem:[%s1570_s8 + $0x28] sm:$0xff]   ;;  %v1096_v17 = vld [vmem:[%s1566_s4] ss:$0 sm:$0xff] }
  0x17   : > { %v1115_v34 = vld [vmem:[%s1571_s9] ss:$0 sm:$0xff] }
  0x18   : > { %1128 = vmatpush3.bf16.msra.mxu0 %v1249_v18 }
  0x19   : > { %1150 = vmatpush3.bf16.msra.mxu1 %v1250_v19  ;;  %1129 = vmatprep.subr.bf16.mxu0 %v1251_v20  ;;  %v1097_v19 = vld [vmem:[%s1567_s5] ss:$0 sm:$0xff] }
  0x1a   : > { %1151 = vmatprep.subr.bf16.mxu1 %v1252_v21 }
  0x1c   : > { %1130 = vmatpush3.bf16.msra.mxu0 %v1253_v22 }
  0x1d   : > { %1152 = vmatpush3.bf16.msra.mxu1 %v1254_v23  ;;  %1131 = vmatprep.subr.bf16.mxu0 %v1255_v24  ;;  %v1277_v23 = vld [vmem:[%s1570_s8 + $0x30] sm:$0xff]   ;;  %v1278_v24 = vld [vmem:[%s1570_s8 + $0x38] sm:$0xff]  }
  0x1e   : > { %1153 = vmatprep.subr.bf16.mxu1 %v1256_v25  ;;  %v1098_v25 = vld [vmem:[%s1569_s7] ss:$0 sm:$0xff] }
  0x20   : > { %1132 = vmatpush3.bf16.msra.mxu0 %v1257_v26 }
  0x21   : > { %1154 = vmatpush3.bf16.msra.mxu1 %v1258_v27  ;;  %1133 = vmatprep.subr.bf16.mxu0 %v1259_v28 }
  0x22   : > { %1155 = vmatprep.subr.bf16.mxu1 %v1260_v29 }
  0x24   : > { %1134 = vmatpush3.bf16.msra.mxu0 %v1261_v30 }
  0x25   : > { %1156 = vmatpush3.bf16.msra.mxu1 %v1262_v31  ;;  %1181 = vmatprep.subr.bf16.mxu0 %v1289_v40 }
  0x26   : > { %1201 = vmatprep.subr.bf16.mxu1 %v1289_v40 }
  0x27   : > { %674 = vmatmul.mubr.bf16.vlgmr.msra.gmra.mrb[0].mxu0 %v381_v37 }
  0x28   : > { %714 = vmatmul.mubr.bf16.vlgmr.msra.gmra.mrb[0].mxu1 %v383_v39  ;;  %1182 = vmatpush3.bf16.msra.mxu0 %v1263_v57 }
  0x29   : > { %1183 = vmatprep.subr.bf16.mxu0 %v1289_v40  ;;  %1197 = vmatprep.mubr.msk.bf16.mxu0 %vm1290_vm0, %v1289_v40 }
  0x2a   : > { %1217 = vmatprep.mubr.msk.bf16.mxu1 %vm1290_vm0, %v1289_v40  ;;  %1202 = vmatpush3.bf16.msra.mxu1 %v1271_v1 }
  0x2b   : > { %1203 = vmatprep.subr.bf16.mxu1 %v1289_v40 }
  0x2c   : > { %1184 = vmatpush3.bf16.msra.mxu0 %v1264_v58 }
  0x2d   : > { %1185 = vmatprep.subr.bf16.mxu0 %v1289_v40 }
  0x2e   : > { %1204 = vmatpush3.bf16.msra.mxu1 %v1272_v2 }
  0x2f   : > { %1205 = vmatprep.subr.bf16.mxu1 %v1289_v40 }
  0x30   : > { %1186 = vmatpush3.bf16.msra.mxu0 %v1265_v59 }
  0x31   : > { %1187 = vmatprep.subr.bf16.mxu0 %v1289_v40 }
  0x32   : > { %1206 = vmatpush3.bf16.msra.mxu1 %v1273_v3 }
  0x33   : > { %1207 = vmatprep.subr.bf16.mxu1 %v1289_v40 }
  0x34   : > { %1188 = vmatpush3.bf16.msra.mxu0 %v1266_v60 }
  0x35   : > { %1189 = vmatprep.subr.bf16.mxu0 %v1289_v40 }
  0x36   : > { %1208 = vmatpush3.bf16.msra.mxu1 %v1274_v4 }
  0x37   : > { %1209 = vmatprep.subr.bf16.mxu1 %v1289_v40 }
  0x38   : > { %1190 = vmatpush3.bf16.msra.mxu0 %v1267_v61 }
  0x39   : > { %1191 = vmatprep.subr.bf16.mxu0 %v1289_v40 }
  0x3a   : > { %1210 = vmatpush3.bf16.msra.mxu1 %v1275_v5 }
  0x3b   : > { %1211 = vmatprep.subr.bf16.mxu1 %v1289_v40 }
  0x3c   : > { %1192 = vmatpush3.bf16.msra.mxu0 %v1268_v62 }
  0x3d   : > { %1193 = vmatprep.subr.bf16.mxu0 %v1289_v40 }
  0x3e   : > { %1212 = vmatpush3.bf16.msra.mxu1 %v1276_v6 }
  0x3f   : > { %1213 = vmatprep.subr.bf16.mxu1 %v1289_v40 }
  0x40   : > { %1194 = vmatpush3.bf16.msra.mxu0 %v1269_v63 }
  0x41   : > { %1195 = vmatprep.subr.bf16.mxu0 %v1289_v40 }
  0x42   : > { %1214 = vmatpush3.bf16.msra.mxu1 %v1277_v23 }
  0x43   : > { %1215 = vmatprep.subr.bf16.mxu1 %v1289_v40 }
  0x44   : > { %1196 = vmatpush3.bf16.msra.mxu0 %v1270_v0 }
  0x46   : > { %1216 = vmatpush3.bf16.msra.mxu1 %v1278_v24 }
  0xfa   : > { %v1135_v41 = vpop.f32.mrb[0].mxu0 }
  0xfb   : > { %v1157_v42 = vpop.f32.mrb[0].mxu1  ;;  %v1136_v43 = vpop.f32.mrb[1].mxu0 }
  0xfc   : > { %v1158_v44 = vpop.f32.mrb[1].mxu1  ;;  %v1137_v45 = vadd.f32 %v1136_v43, %v1135_v41  ;;  %v1138_v47 = vpop.f32.mrb[2].mxu0 }
  0xfd   : > { %v1159_v46 = vadd.f32 %v1158_v44, %v1157_v42  ;;  %v1160_v48 = vpop.f32.mrb[2].mxu1  ;;  %v1139_v50 = vpop.f32.mrb[3].mxu0 }
  0xfe   : > { %v1161_v51 = vpop.f32.mrb[3].mxu1 }
  0xff   : > { %v716_v52 = vadd.f32 %v1159_v46, %v1137_v45 }
 0x101   : > { %v721_v54 = vadd.f32 %v716_v52, %v376_v49 }
 0x103   : > { %v1471_v55 = vadd.f32 %v1095_v53, %v721_v54 }
 0x105   : > { %732 = vadd.xlane.f32.xlu0 %v1471_v55  ;;  %v734_v56 = vmul.f32 %v1471_v55, %v1471_v55 }
 0x109   : > { %735 = vadd.xlane.f32.xlu0 %v734_v56 }
 0x192   : > { %v733_v7 = vpop.xlane.xlu0 %732 }
 0x193   : > { %v738_v8 = vmul.f32 0.03125, %v733_v7 }
 0x195   : > { %v740_v10 = vmul.f32 %v738_v8, %v738_v8  ;;  %v743_v15 = vsub.f32 %v1471_v55, %v738_v8 }
 0x196   : > { %v736_v9 = vpop.xlane.xlu0 %735 }
 0x197   : > { %v739_v11 = vmul.f32 0.03125, %v736_v9 }
 0x199   : > { %v741_v12 = vsub.f32 %v739_v11, %v740_v10 }
 0x19b   : > { %v742_v13 = vmax.f32 %v741_v12, 0.0 }
 0x19d   : > { %v744_v14 = vadd.f32 1e-05, %v742_v13 }
 0x19f   : > { %1279 = vrsqrt.f32 %v744_v14 }
 0x1a9   : > { %v1280_v16 = vpop.eup %1279 }
 0x1aa   : > { %v746_v18 = vmul.f32 %v1280_v16, %v743_v15 }
 0x1ac   : > { %v753_v20 = vmul.f32 %v1096_v17, %v746_v18 }
 0x1ae   : > { %v760_v21 = vadd.f32 %v1097_v19, %v753_v20 }
 0x1b0   : > { %v761_v22 = vpack.c.bf16 %v760_v21, %v760_v21 }
 0x1b2   : > { %1198 = vmatmul.mubr.bf16.vlgmr.msra.gmra.mrb[4].mxu0 %v761_v22 }
 0x285   : > { %v867_v26 = vpop.f32.mrb[4].mxu0 }
 0x286   : > { %v868_v27 = vadd.f32 %v1098_v25, %v867_v26  ;;  %v1199_v28 = vpop.f32.mrb[5].mxu0 }
 0x287   : > { %v870_v29 = vpop.f32.mrb[6].mxu0 }
 0x288   : > { %v873_v30 = vmax.f32 %v868_v27, 0.0  ;;  %v1200_v31 = vpop.f32.mrb[7].mxu0 }
 0x28a   : > { %v874_v32 = vpack.c.bf16 %v873_v30, %v873_v30 }
 0x28c   : > { %1218 = vmatmul.mubr.bf16.vlgmr.msra.gmra.mrb[4].mxu1 %v874_v32 }
 0x35f   : > { %v973_v33 = vpop.f32.mrb[4].mxu1 }
 0x360   : > { %v979_v35 = vadd.f32 %v973_v33, %v1471_v55  ;;  %v1219_v36 = vpop.f32.mrb[5].mxu1 }
 0x361   : > { %v976_v37 = vpop.f32.mrb[6].mxu1 }
 0x362   : > { %v987_v38 = vadd.f32 %v1115_v34, %v979_v35  ;;  %v1220_v39 = vpop.f32.mrb[7].mxu1 }
 0x364   : > { %988 = vst [vmem:[%s374_s25] sm:$0xff] %v987_v38 }
 0x365 PF: > { %s20_s13 = sadd.s32 1, %s1287_s13  }
 0x366   : > { %p17_p4 = scmp.ge.s32.totalorder %s20_s13, 4  }
 0x368   :  { %19 = sbr.rel (!%p17_p4) target bundleno = 1 (0x1), region = 93 }

</bundles_post_ra>
